<compile_context>
chip_gen: v6e
topology: v6e:2x2x1
jax: 0.10.0
libtpu: 0.0.40
codegen_flags: <defaults>
</compile_context>

<pallas_src>
import functools
import math

import jax
import jax.numpy as jnp
from jax.experimental import pallas as pl
from jax.experimental.pallas import tpu as pltpu


MS_KERNELS = (2, 3, 4, 5)
KMAX = max(MS_KERNELS)          # all branch weights are aligned into a 5-tap window
PAD = (KMAX - 1) // 2           # common 'same' padding (2 left / 2 right)

B_TILE = 8                      # samples per trunk grid step (multiple of 8, or == N)
TILE_NC = 2048                  # classes per head grid step (lane-dense, parallel)
HEAD_W_DTYPE = jnp.bfloat16     # halves the dominant HBM stream; f32 accumulation kept
# TODO(synk): on v7x, fp8 head weights (with per-column scales) would halve the
# weight stream again; needs accuracy validation so not done here.


# ----------------------------------------------------------------------------
# Kernels
# ----------------------------------------------------------------------------
def trunk_kernel(x_ref, ew_ref, eb_ref,
                 w0_ref, b0_ref, w1_ref, b1_ref,
                 w2_ref, b2_ref, w3_ref, b3_ref, feat_ref):
    """Embedding conv + 4 multi-scale blocks + pools + global max, B samples/step.

    x_ref   : (B, L, V)   batch tile, channels-last
    ew_ref  : (V, 16),  eb_ref : (1, 16)            embedding (k=1) conv
    w*_ref  : (5, Cin, Cout), b*_ref : (1, Cout)    per-tap fused multi-scale weights
    feat_ref: (B, 256)                              global-max features
    """
    B, L, V = x_ref.shape

    # Embedding ConvBlock: k=1 conv == matmul over all B*L positions at once.
    y = jnp.maximum(
        jnp.dot(x_ref[...].reshape(B * L, V), ew_ref[...],
                preferred_element_type=jnp.float32)
        + eb_ref[...], 0.0)                                        # (B*L, 16)

    def ms_block(y, lc, w_ref, b_ref, pool):
        """One MultiScaleConvBlock on flattened (B*lc, cin) activations."""
        m, cin = y.shape
        cout = b_ref.shape[-1]
        # Row position inside its own sample (used to zero cross-sample taps
        # introduced by rolling the flattened B*lc axis).
        l_pos = jax.lax.broadcasted_iota(jnp.int32, (B, lc, 1), 1).reshape(m, 1)

        acc = None
        for t in range(KMAX):
            off = t - PAD                          # tap offset in [-2, 2]
            if off == 0:
                shifted = y
            else:
                # shifted[p] = y[p + off] (circular), then zero out-of-sample rows.
                shifted = pltpu.roll(y, shift=(-off) % m, axis=0)
                if off < 0:
                    valid = l_pos >= -off
                else:
                    valid = l_pos < lc - off
                shifted = jnp.where(valid, shifted, 0.0)
            part = jnp.dot(shifted, w_ref[t], preferred_element_type=jnp.float32)
            acc = part if acc is None else acc + part

        z = jnp.maximum(acc + b_ref[...], 0.0)                     # (m, cout)
        if pool:                                                   # MaxPool1d(4, 4)
            # lc % 4 == 0, so pooling windows never cross sample boundaries.
            z = jnp.max(z.reshape(m // 4, 4, cout), axis=1)
        return z

    y = ms_block(y, L, w0_ref, b0_ref, True)        # (B*L/4,   32)
    y = ms_block(y, L // 4, w1_ref, b1_ref, True)   # (B*L/16,  64)
    y = ms_block(y, L // 16, w2_ref, b2_ref, True)  # (B*L/64, 128)
    y = ms_block(y, L // 64, w3_ref, b3_ref, False)  # (B*L/64, 256)

    l_last = L // 64
    feat_ref[...] = jnp.max(y.reshape(B, l_last, -1), axis=1)      # max over L


def head_kernel(f_ref, w_ref, b_ref, o_ref):
    """Batched classifier matmul for one class tile.

    f_ref: (N, 256) f32, w_ref: (256, TILE) bf16, b_ref: (1, TILE) f32,
    o_ref: (N, TILE) f32.  bf16 MXU matmul, f32 accumulation.
    """
    o_ref[...] = (jnp.dot(f_ref[...].astype(jnp.bfloat16), w_ref[...],
                          preferred_element_type=jnp.float32)
                  + b_ref[...]).astype(o_ref.dtype)


# ----------------------------------------------------------------------------
# Wrappers
# ----------------------------------------------------------------------------
def trunk(x_nlv, params, b_tile=B_TILE):
    """x_nlv: (N, L, V) channels-last -> per-sample global-max features (N, 256)."""
    N, L, V = x_nlv.shape
    # TODO(synk): general L needs explicit truncation/masking to match
    # PyTorch MaxPool1d(4,4) truncation; here we require L % 64 == 0.
    assert L % 64 == 0, "trunk assumes L divisible by 64 (three MaxPool1d(4,4))"

    ew, eb = params["emb_w"], params["emb_b"]
    ws, bs = params["ms_w"], params["ms_b"]
    cout = bs[-1].shape[-1]

    bt = min(b_tile, N)                       # bt is a multiple of 8 or == N
    n_pad = pl.cdiv(N, bt) * bt
    if n_pad != N:
        x_nlv = jnp.pad(x_nlv, ((0, n_pad - N), (0, 0), (0, 0)))

    def full(a):  # whole-array block, resident across the (parallel) batch grid
        return pl.BlockSpec(a.shape, lambda n, nd=a.ndim: (0,) * nd)

    feats = pl.pallas_call(
        trunk_kernel,
        out_shape=jax.ShapeDtypeStruct((n_pad, cout), jnp.float32),
        grid=(n_pad // bt,),
        in_specs=[pl.BlockSpec((bt, L, V), lambda n: (n, 0, 0)),
                  full(ew), full(eb),
                  full(ws[0]), full(bs[0]),
                  full(ws[1]), full(bs[1]),
                  full(ws[2]), full(bs[2]),
                  full(ws[3]), full(bs[3])],
        out_specs=pl.BlockSpec((bt, cout), lambda n: (n, 0)),
        compiler_params=pltpu.CompilerParams(
            dimension_semantics=("parallel",)),
    )(x_nlv, ew, eb, ws[0], bs[0], ws[1], bs[1], ws[2], bs[2], ws[3], bs[3])
    return feats[:N]


def head_logits(feats, w_padded, b_padded, tile_nc=TILE_NC):
    """feats: (N, 256); w_padded: (256, NCP) bf16; b_padded: (1, NCP) f32.

    Weight padding / bf16 cast happen once at parameter-prep time, NOT here.
    Returns padded logits (N, NCP); caller slices to the real class count.
    """
    N, C = feats.shape
    ncp = w_padded.shape[1]
    tile = min(tile_nc, ncp)
    assert ncp % tile == 0
    return pl.pallas_call(
        head_kernel,
        out_shape=jax.ShapeDtypeStruct((N, ncp), jnp.float32),
        grid=(ncp // tile,),
        in_specs=[pl.BlockSpec((N, C), lambda j: (0, 0)),
                  pl.BlockSpec((C, tile), lambda j: (0, j)),
                  pl.BlockSpec((1, tile), lambda j: (0, j))],
        out_specs=pl.BlockSpec((N, tile), lambda j: (0, j)),
        compiler_params=pltpu.CompilerParams(
            dimension_semantics=("parallel",)),
        cost_estimate=pl.CostEstimate(
            flops=2 * N * C * ncp,
            transcendentals=0,
            bytes_accessed=(w_padded.dtype.itemsize * C * ncp
                            + 4 * (N * C + N * ncp + ncp))),
    )(feats, w_padded, b_padded)
    # TODO(synk): latency-regime option: prefetch the first weight tile in a
    # cross-call DMA overlapping the trunk (P10); not needed at these sizes.


# ----------------------------------------------------------------------------
# Parameters / model
# ----------------------------------------------------------------------------
def prepare_head_params(w, b, tile_nc=TILE_NC):
    """Pad classifier weights to a lane/tile multiple and cast to bf16, ONCE."""
    c, nc = w.shape
    tile = min(tile_nc, pl.cdiv(nc, 128) * 128)
    ncp = pl.cdiv(nc, tile) * tile
    if ncp != nc:
        w = jnp.pad(w, ((0, 0), (0, ncp - nc)))   # padded cols -> logit 0, sliced off
        b = jnp.pad(b, ((0, ncp - nc),))
    return w.astype(HEAD_W_DTYPE), b.reshape(1, ncp).astype(jnp.float32)


def init_params(key, voc_size=22, num_classes=17930):
    keys = iter(jax.random.split(key, 32))

    def conv_w(k_rng, cin, cout, k):
        return jax.random.normal(k_rng, (k, cin, cout), jnp.float32) * (
            1.0 / math.sqrt(cin * k))

    params = {}
    # embedding ConvBlock(voc, 16, 1): k=1 conv -> plain (V, 16) matmul weight
    params["emb_w"] = conv_w(next(keys), voc_size, 16, 1).reshape(voc_size, 16)
    params["emb_b"] = jnp.zeros((1, 16), jnp.float32)

    ms_w, ms_b = [], []
    for cin, cout in ((16, 32), (32, 64), (64, 128), (128, 256)):
        bout = cout // len(MS_KERNELS)
        taps, biases = [], []
        for k in MS_KERNELS:
            w = conv_w(next(keys), cin, bout, k)                  # (k, cin, bout)
            # Align the k taps inside the common 5-tap / pad=2 window so the
            # fused conv matches per-branch 'same' padding (left = (k-1)//2,
            # extra on the right), matching PyTorch padding='same'.
            off = PAD - (k - 1) // 2
            wp = jnp.zeros((KMAX, cin, bout), jnp.float32).at[off:off + k].set(w)
            taps.append(wp)
            biases.append(jnp.zeros((bout,), jnp.float32))
        ms_w.append(jnp.concatenate(taps, axis=2))                # (5, cin, cout)
        ms_b.append(jnp.concatenate(biases).reshape(1, cout))
    params["ms_w"], params["ms_b"] = ms_w, ms_b

    lw = jax.random.normal(
        next(keys), (256, num_classes), jnp.float32) * (1.0 / math.sqrt(256.0))
    lb = jnp.zeros((num_classes,), jnp.float32)
    # pad + bf16 cast hoisted out of the jitted forward (done once, here)
    params["lin_w"], params["lin_b"] = prepare_head_params(lw, lb)
    return params


@functools.partial(jax.jit, static_argnames=("num_classes",))
def mini_mscnn_forward(x_nvl, params, num_classes):
    """x_nvl: (N, V, L) exactly like the PyTorch module's input."""
    # TODO(synk): for long sequences, pass int32 ids and gather the embedding
    # rows in-kernel instead of streaming f32 one-hot + this transpose.
    x = jnp.transpose(x_nvl, (0, 2, 1))            # channels-last (N, L, V)
    feats = trunk(x, params)                       # fused batched trunk -> (N, 256)
    logits = head_logits(feats, params["lin_w"], params["lin_b"])
    logits = logits[:, :num_classes]               # drop padded classes BEFORE softmax
    return jax.nn.softmax(logits, axis=-1)         # softmax over classes


# ----------------------------------------------------------------------------
if __name__ == "__main__":
    key = jax.random.PRNGKey(0)
    k_param, k_data = jax.random.split(key)

    N, VOC, L = 2, 22, 128          # L: 128 -> 32 -> 8 -> 2 through the pools
    NUM_CLASSES = 1000              # small stand-in for 17930 (exercises padding)

    params = init_params(k_param, voc_size=VOC, num_classes=NUM_CLASSES)

    # one-hot amino-acid sequences, shape (N, V, L) as in the PyTorch forward
    ids = jax.random.randint(k_data, (N, L), 0, VOC)
    x = jnp.transpose(jax.nn.one_hot(ids, VOC, dtype=jnp.float32), (0, 2, 1))

    probs = mini_mscnn_forward(x, params, num_classes=NUM_CLASSES)
    jax.block_until_ready(probs)

    assert probs.shape == (N, NUM_CLASSES)
    assert bool(jnp.all(jnp.isfinite(probs)))
    print("KERNEL_OK")
</pallas_src>

<mosaic_0001>
module attributes {stable_mosaic.version = 11 : i64} {
  func.func @head_kernel(%arg0: i32, %arg1: memref<2x256xf32, #tpu.memory_space<vmem>>, %arg2: memref<256x1024xbf16, #tpu.memory_space<vmem>>, %arg3: memref<1x1024xf32, #tpu.memory_space<vmem>>, %arg4: memref<2x1024xf32, #tpu.memory_space<vmem>>) attributes {dimension_semantics = [#tpu.dimension_semantics<parallel>], iteration_bounds = array<i64: 1>, scalar_prefetch = 0 : i64, scratch_operands = 0 : i64, tpu.core_type = #tpu.core_type<tc>, window_params = [{pipeline_mode = #tpu.pipeline_mode<synchronous>, transform_indices = @transform_0, window_bounds = array<i64: 2, 256>}, {transform_indices = @transform_1, window_bounds = array<i64: 256, 1024>}, {transform_indices = @transform_2, window_bounds = array<i64: 1, 1024>}, {transform_indices = @transform_3, window_bounds = array<i64: 2, 1024>}]} {
    %c0 = arith.constant 0 : index
    %c0_0 = arith.constant 0 : index
    %0 = vector.load %arg1[%c0, %c0_0] : memref<2x256xf32, #tpu.memory_space<vmem>>, vector<2x256xf32>
    %1 = arith.truncf %0 : vector<2x256xf32> to vector<2x256xbf16>
    %c0_1 = arith.constant 0 : index
    %c0_2 = arith.constant 0 : index
    %2 = vector.load %arg2[%c0_1, %c0_2] : memref<256x1024xbf16, #tpu.memory_space<vmem>>, vector<256x1024xbf16>
    %cst = arith.constant dense<0.000000e+00> : vector<2x1024xf32>
    %3 = tpu.matmul %1, %2, %cst {dimension_numbers = #tpu.dot_dimension_numbers<[1], [0], [0], [1], [0, 0, 1, 1], [], []>} : vector<2x256xbf16>, vector<256x1024xbf16>, vector<2x1024xf32> -> vector<2x1024xf32>
    %c0_3 = arith.constant 0 : index
    %c0_4 = arith.constant 0 : index
    %4 = vector.load %arg3[%c0_3, %c0_4] : memref<1x1024xf32, #tpu.memory_space<vmem>>, vector<1x1024xf32>
    %5 = vector.broadcast %4 : vector<1x1024xf32> to vector<2x1024xf32>
    %6 = arith.addf %3, %5 : vector<2x1024xf32>
    %c0_5 = arith.constant 0 : index
    %c0_6 = arith.constant 0 : index
    %7 = vector.load %arg4[%c0_5, %c0_6] : memref<2x1024xf32, #tpu.memory_space<vmem>>, vector<2x1024xf32>
    tpu.vector_store %arg4[%c0_5, %c0_6], %6 {strides = array<i32>} : memref<2x1024xf32, #tpu.memory_space<vmem>>, vector<2x1024xf32>,
    return
  }
  func.func @transform_0(%arg0: i32) -> (i32, i32) {
    %c0_i32 = arith.constant 0 : i32
    %c0_i32_0 = arith.constant 0 : i32
    %c0_i32_1 = arith.constant 0 : i32
    return %c0_i32, %c0_i32_0 : i32, i32
  }
  func.func @transform_1(%arg0: i32) -> (i32, i32) {
    %c0_i32 = arith.constant 0 : i32
    %c0_i32_0 = arith.constant 0 : i32
    return %c0_i32, %arg0 : i32, i32
  }
  func.func @transform_2(%arg0: i32) -> (i32, i32) {
    %c0_i32 = arith.constant 0 : i32
    %c0_i32_0 = arith.constant 0 : i32
    return %c0_i32, %arg0 : i32, i32
  }
  func.func @transform_3(%arg0: i32) -> (i32, i32) {
    %c0_i32 = arith.constant 0 : i32
    %c0_i32_0 = arith.constant 0 : i32
    return %c0_i32, %arg0 : i32, i32
  }
}

module attributes {stable_mosaic.version = 11 : i64} {
  func.func @trunk_kernel(%arg0: i32, %arg1: memref<2x128x22xf32, #tpu.memory_space<vmem>>, %arg2: memref<22x16xf32, #tpu.memory_space<vmem>>, %arg3: memref<1x16xf32, #tpu.memory_space<vmem>>, %arg4: memref<5x16x32xf32, #tpu.memory_space<vmem>>, %arg5: memref<1x32xf32, #tpu.memory_space<vmem>>, %arg6: memref<5x32x64xf32, #tpu.memory_space<vmem>>, %arg7: memref<1x64xf32, #tpu.memory_space<vmem>>, %arg8: memref<5x64x128xf32, #tpu.memory_space<vmem>>, %arg9: memref<1x128xf32, #tpu.memory_space<vmem>>, %arg10: memref<5x128x256xf32, #tpu.memory_space<vmem>>, %arg11: memref<1x256xf32, #tpu.memory_space<vmem>>, %arg12: memref<2x256xf32, #tpu.memory_space<vmem>>) attributes {dimension_semantics = [#tpu.dimension_semantics<parallel>], iteration_bounds = array<i64: 1>, scalar_prefetch = 0 : i64, scratch_operands = 0 : i64, tpu.core_type = #tpu.core_type<tc>, window_params = [{transform_indices = @transform_0, window_bounds = array<i64: 2, 128, 22>}, {pipeline_mode = #tpu.pipeline_mode<synchronous>, transform_indices = @transform_1, window_bounds = array<i64: 22, 16>}, {pipeline_mode = #tpu.pipeline_mode<synchronous>, transform_indices = @transform_2, window_bounds = array<i64: 1, 16>}, {pipeline_mode = #tpu.pipeline_mode<synchronous>, transform_indices = @transform_3, window_bounds = array<i64: 5, 16, 32>}, {pipeline_mode = #tpu.pipeline_mode<synchronous>, transform_indices = @transform_4, window_bounds = array<i64: 1, 32>}, {pipeline_mode = #tpu.pipeline_mode<synchronous>, transform_indices = @transform_5, window_bounds = array<i64: 5, 32, 64>}, {pipeline_mode = #tpu.pipeline_mode<synchronous>, transform_indices = @transform_6, window_bounds = array<i64: 1, 64>}, {pipeline_mode = #tpu.pipeline_mode<synchronous>, transform_indices = @transform_7, window_bounds = array<i64: 5, 64, 128>}, {pipeline_mode = #tpu.pipeline_mode<synchronous>, transform_indices = @transform_8, window_bounds = array<i64: 1, 128>}, {pipeline_mode = #tpu.pipeline_mode<synchronous>, transform_indices = @transform_9, window_bounds = array<i64: 5, 128, 256>}, {pipeline_mode = #tpu.pipeline_mode<synchronous>, transform_indices = @transform_10, window_bounds = array<i64: 1, 256>}, {transform_indices = @transform_11, window_bounds = array<i64: 2, 256>}]} {
    %c0 = arith.constant 0 : index
    %c0_0 = arith.constant 0 : index
    %c0_1 = arith.constant 0 : index
    %0 = vector.load %arg1[%c0, %c0_0, %c0_1] : memref<2x128x22xf32, #tpu.memory_space<vmem>>, vector<2x128x22xf32>
    %1 = vector.shape_cast %0 : vector<2x128x22xf32> to vector<256x22xf32>
    %c0_2 = arith.constant 0 : index
    %c0_3 = arith.constant 0 : index
    %2 = vector.load %arg2[%c0_2, %c0_3] : memref<22x16xf32, #tpu.memory_space<vmem>>, vector<22x16xf32>
    %cst = arith.constant dense<0.000000e+00> : vector<256x16xf32>
    %3 = tpu.matmul %1, %2, %cst {dimension_numbers = #tpu.dot_dimension_numbers<[1], [0], [0], [1], [0, 0, 1, 1], [], []>} : vector<256x22xf32>, vector<22x16xf32>, vector<256x16xf32> -> vector<256x16xf32>
    %c0_4 = arith.constant 0 : index
    %c0_5 = arith.constant 0 : index
    %4 = vector.load %arg3[%c0_4, %c0_5] : memref<1x16xf32, #tpu.memory_space<vmem>>, vector<1x16xf32>
    %5 = vector.broadcast %4 : vector<1x16xf32> to vector<256x16xf32>
    %6 = arith.addf %3, %5 : vector<256x16xf32>
    %cst_6 = arith.constant 0.000000e+00 : f32
    %7 = vector.broadcast %cst_6 : f32 to vector<256x16xf32>
    %8 = arith.maximumf %6, %7 : vector<256x16xf32>
    %9 = tpu.iota {dimensions = array<i32: 1>} : vector<2x128x1xi32>
    %10 = vector.shape_cast %9 : vector<2x128x1xi32> to vector<256x1xi32>
    %c2_i32 = arith.constant 2 : i32
    %11 = tpu.dynamic_rotate %8 by %c2_i32 dim 0 : vector<256x16xf32>, i32 -> vector<256x16xf32>
    %c2_i32_7 = arith.constant 2 : i32
    %12 = vector.broadcast %c2_i32_7 : i32 to vector<256x1xi32>
    %13 = arith.cmpi sge, %10, %12 : vector<256x1xi32>
    %cst_8 = arith.constant 0.000000e+00 : f32
    %14 = vector.shape_cast %13 : vector<256x1xi1> to vector<256x1xi1>
    %15 = vector.broadcast %14 : vector<256x1xi1> to vector<256x16xi1>
    %16 = vector.broadcast %cst_8 : f32 to vector<256x16xf32>
    %17 = arith.select %15, %11, %16 : vector<256x16xi1>, vector<256x16xf32>
    %c0_9 = arith.constant 0 : index
    %c0_10 = arith.constant 0 : index
    %c0_11 = arith.constant 0 : index
    %18 = vector.load %arg4[%c0_9, %c0_10, %c0_11] : memref<5x16x32xf32, #tpu.memory_space<vmem>>, vector<1x16x32xf32>
    %19 = vector.shape_cast %18 : vector<1x16x32xf32> to vector<16x32xf32>
    %cst_12 = arith.constant dense<0.000000e+00> : vector<256x32xf32>
    %20 = tpu.matmul %17, %19, %cst_12 {dimension_numbers = #tpu.dot_dimension_numbers<[1], [0], [0], [1], [0, 0, 1, 1], [], []>} : vector<256x16xf32>, vector<16x32xf32>, vector<256x32xf32> -> vector<256x32xf32>
    %c1_i32 = arith.constant 1 : i32
    %21 = tpu.dynamic_rotate %8 by %c1_i32 dim 0 : vector<256x16xf32>, i32 -> vector<256x16xf32>
    %c1_i32_13 = arith.constant 1 : i32
    %22 = vector.broadcast %c1_i32_13 : i32 to vector<256x1xi32>
    %23 = arith.cmpi sge, %10, %22 : vector<256x1xi32>
    %cst_14 = arith.constant 0.000000e+00 : f32
    %24 = vector.shape_cast %23 : vector<256x1xi1> to vector<256x1xi1>
    %25 = vector.broadcast %24 : vector<256x1xi1> to vector<256x16xi1>
    %26 = vector.broadcast %cst_14 : f32 to vector<256x16xf32>
    %27 = arith.select %25, %21, %26 : vector<256x16xi1>, vector<256x16xf32>
    %c1 = arith.constant 1 : index
    %c0_15 = arith.constant 0 : index
    %c0_16 = arith.constant 0 : index
    %28 = vector.load %arg4[%c1, %c0_15, %c0_16] : memref<5x16x32xf32, #tpu.memory_space<vmem>>, vector<1x16x32xf32>
    %29 = vector.shape_cast %28 : vector<1x16x32xf32> to vector<16x32xf32>
    %cst_17 = arith.constant dense<0.000000e+00> : vector<256x32xf32>
    %30 = tpu.matmul %27, %29, %cst_17 {dimension_numbers = #tpu.dot_dimension_numbers<[1], [0], [0], [1], [0, 0, 1, 1], [], []>} : vector<256x16xf32>, vector<16x32xf32>, vector<256x32xf32> -> vector<256x32xf32>
    %31 = arith.addf %20, %30 : vector<256x32xf32>
    %c2 = arith.constant 2 : index
    %c0_18 = arith.constant 0 : index
    %c0_19 = arith.constant 0 : index
    %32 = vector.load %arg4[%c2, %c0_18, %c0_19] : memref<5x16x32xf32, #tpu.memory_space<vmem>>, vector<1x16x32xf32>
    %33 = vector.shape_cast %32 : vector<1x16x32xf32> to vector<16x32xf32>
    %cst_20 = arith.constant dense<0.000000e+00> : vector<256x32xf32>
    %34 = tpu.matmul %8, %33, %cst_20 {dimension_numbers = #tpu.dot_dimension_numbers<[1], [0], [0], [1], [0, 0, 1, 1], [], []>} : vector<256x16xf32>, vector<16x32xf32>, vector<256x32xf32> -> vector<256x32xf32>
    %35 = arith.addf %31, %34 : vector<256x32xf32>
    %c255_i32 = arith.constant 255 : i32
    %36 = tpu.dynamic_rotate %8 by %c255_i32 dim 0 : vector<256x16xf32>, i32 -> vector<256x16xf32>
    %c127_i32 = arith.constant 127 : i32
    %37 = vector.broadcast %c127_i32 : i32 to vector<256x1xi32>
    %38 = arith.cmpi slt, %10, %37 : vector<256x1xi32>
    %cst_21 = arith.constant 0.000000e+00 : f32
    %39 = vector.shape_cast %38 : vector<256x1xi1> to vector<256x1xi1>
    %40 = vector.broadcast %39 : vector<256x1xi1> to vector<256x16xi1>
    %41 = vector.broadcast %cst_21 : f32 to vector<256x16xf32>
    %42 = arith.select %40, %36, %41 : vector<256x16xi1>, vector<256x16xf32>
    %c3 = arith.constant 3 : index
    %c0_22 = arith.constant 0 : index
    %c0_23 = arith.constant 0 : index
    %43 = vector.load %arg4[%c3, %c0_22, %c0_23] : memref<5x16x32xf32, #tpu.memory_space<vmem>>, vector<1x16x32xf32>
    %44 = vector.shape_cast %43 : vector<1x16x32xf32> to vector<16x32xf32>
    %cst_24 = arith.constant dense<0.000000e+00> : vector<256x32xf32>
    %45 = tpu.matmul %42, %44, %cst_24 {dimension_numbers = #tpu.dot_dimension_numbers<[1], [0], [0], [1], [0, 0, 1, 1], [], []>} : vector<256x16xf32>, vector<16x32xf32>, vector<256x32xf32> -> vector<256x32xf32>
    %46 = arith.addf %35, %45 : vector<256x32xf32>
    %c254_i32 = arith.constant 254 : i32
    %47 = tpu.dynamic_rotate %8 by %c254_i32 dim 0 : vector<256x16xf32>, i32 -> vector<256x16xf32>
    %c126_i32 = arith.constant 126 : i32
    %48 = vector.broadcast %c126_i32 : i32 to vector<256x1xi32>
    %49 = arith.cmpi slt, %10, %48 : vector<256x1xi32>
    %cst_25 = arith.constant 0.000000e+00 : f32
    %50 = vector.shape_cast %49 : vector<256x1xi1> to vector<256x1xi1>
    %51 = vector.broadcast %50 : vector<256x1xi1> to vector<256x16xi1>
    %52 = vector.broadcast %cst_25 : f32 to vector<256x16xf32>
    %53 = arith.select %51, %47, %52 : vector<256x16xi1>, vector<256x16xf32>
    %c4 = arith.constant 4 : index
    %c0_26 = arith.constant 0 : index
    %c0_27 = arith.constant 0 : index
    %54 = vector.load %arg4[%c4, %c0_26, %c0_27] : memref<5x16x32xf32, #tpu.memory_space<vmem>>, vector<1x16x32xf32>
    %55 = vector.shape_cast %54 : vector<1x16x32xf32> to vector<16x32xf32>
    %cst_28 = arith.constant dense<0.000000e+00> : vector<256x32xf32>
    %56 = tpu.matmul %53, %55, %cst_28 {dimension_numbers = #tpu.dot_dimension_numbers<[1], [0], [0], [1], [0, 0, 1, 1], [], []>} : vector<256x16xf32>, vector<16x32xf32>, vector<256x32xf32> -> vector<256x32xf32>
    %57 = arith.addf %46, %56 : vector<256x32xf32>
    %c0_29 = arith.constant 0 : index
    %c0_30 = arith.constant 0 : index
    %58 = vector.load %arg5[%c0_29, %c0_30] : memref<1x32xf32, #tpu.memory_space<vmem>>, vector<1x32xf32>
    %59 = vector.broadcast %58 : vector<1x32xf32> to vector<256x32xf32>
    %60 = arith.addf %57, %59 : vector<256x32xf32>
    %cst_31 = arith.constant 0.000000e+00 : f32
    %61 = vector.broadcast %cst_31 : f32 to vector<256x32xf32>
    %62 = arith.maximumf %60, %61 : vector<256x32xf32>
    %63 = vector.shape_cast %62 : vector<256x32xf32> to vector<64x4x32xf32>
    %cst_32 = arith.constant dense<0xFF800000> : vector<64x32xf32>
    %64 = vector.multi_reduction <maximumf>, %63, %cst_32 [1] : vector<64x4x32xf32> to vector<64x32xf32>
    %65 = tpu.iota {dimensions = array<i32: 1>} : vector<2x32x1xi32>
    %66 = vector.shape_cast %65 : vector<2x32x1xi32> to vector<64x1xi32>
    %c2_i32_33 = arith.constant 2 : i32
    %67 = tpu.dynamic_rotate %64 by %c2_i32_33 dim 0 : vector<64x32xf32>, i32 -> vector<64x32xf32>
    %c2_i32_34 = arith.constant 2 : i32
    %68 = vector.broadcast %c2_i32_34 : i32 to vector<64x1xi32>
    %69 = arith.cmpi sge, %66, %68 : vector<64x1xi32>
    %cst_35 = arith.constant 0.000000e+00 : f32
    %70 = vector.shape_cast %69 : vector<64x1xi1> to vector<64x1xi1>
    %71 = vector.broadcast %70 : vector<64x1xi1> to vector<64x32xi1>
    %72 = vector.broadcast %cst_35 : f32 to vector<64x32xf32>
    %73 = arith.select %71, %67, %72 : vector<64x32xi1>, vector<64x32xf32>
    %c0_36 = arith.constant 0 : index
    %c0_37 = arith.constant 0 : index
    %c0_38 = arith.constant 0 : index
    %74 = vector.load %arg6[%c0_36, %c0_37, %c0_38] : memref<5x32x64xf32, #tpu.memory_space<vmem>>, vector<1x32x64xf32>
    %75 = vector.shape_cast %74 : vector<1x32x64xf32> to vector<32x64xf32>
    %cst_39 = arith.constant dense<0.000000e+00> : vector<64x64xf32>
    %76 = tpu.matmul %73, %75, %cst_39 {dimension_numbers = #tpu.dot_dimension_numbers<[1], [0], [0], [1], [0, 0, 1, 1], [], []>} : vector<64x32xf32>, vector<32x64xf32>, vector<64x64xf32> -> vector<64x64xf32>
    %c1_i32_40 = arith.constant 1 : i32
    %77 = tpu.dynamic_rotate %64 by %c1_i32_40 dim 0 : vector<64x32xf32>, i32 -> vector<64x32xf32>
    %c1_i32_41 = arith.constant 1 : i32
    %78 = vector.broadcast %c1_i32_41 : i32 to vector<64x1xi32>
    %79 = arith.cmpi sge, %66, %78 : vector<64x1xi32>
    %cst_42 = arith.constant 0.000000e+00 : f32
    %80 = vector.shape_cast %79 : vector<64x1xi1> to vector<64x1xi1>
    %81 = vector.broadcast %80 : vector<64x1xi1> to vector<64x32xi1>
    %82 = vector.broadcast %cst_42 : f32 to vector<64x32xf32>
    %83 = arith.select %81, %77, %82 : vector<64x32xi1>, vector<64x32xf32>
    %c1_43 = arith.constant 1 : index
    %c0_44 = arith.constant 0 : index
    %c0_45 = arith.constant 0 : index
    %84 = vector.load %arg6[%c1_43, %c0_44, %c0_45] : memref<5x32x64xf32, #tpu.memory_space<vmem>>, vector<1x32x64xf32>
    %85 = vector.shape_cast %84 : vector<1x32x64xf32> to vector<32x64xf32>
    %cst_46 = arith.constant dense<0.000000e+00> : vector<64x64xf32>
    %86 = tpu.matmul %83, %85, %cst_46 {dimension_numbers = #tpu.dot_dimension_numbers<[1], [0], [0], [1], [0, 0, 1, 1], [], []>} : vector<64x32xf32>, vector<32x64xf32>, vector<64x64xf32> -> vector<64x64xf32>
    %87 = arith.addf %76, %86 : vector<64x64xf32>
    %c2_47 = arith.constant 2 : index
    %c0_48 = arith.constant 0 : index
    %c0_49 = arith.constant 0 : index
    %88 = vector.load %arg6[%c2_47, %c0_48, %c0_49] : memref<5x32x64xf32, #tpu.memory_space<vmem>>, vector<1x32x64xf32>
    %89 = vector.shape_cast %88 : vector<1x32x64xf32> to vector<32x64xf32>
    %cst_50 = arith.constant dense<0.000000e+00> : vector<64x64xf32>
    %90 = tpu.matmul %64, %89, %cst_50 {dimension_numbers = #tpu.dot_dimension_numbers<[1], [0], [0], [1], [0, 0, 1, 1], [], []>} : vector<64x32xf32>, vector<32x64xf32>, vector<64x64xf32> -> vector<64x64xf32>
    %91 = arith.addf %87, %90 : vector<64x64xf32>
    %c63_i32 = arith.constant 63 : i32
    %92 = tpu.dynamic_rotate %64 by %c63_i32 dim 0 : vector<64x32xf32>, i32 -> vector<64x32xf32>
    %c31_i32 = arith.constant 31 : i32
    %93 = vector.broadcast %c31_i32 : i32 to vector<64x1xi32>
    %94 = arith.cmpi slt, %66, %93 : vector<64x1xi32>
    %cst_51 = arith.constant 0.000000e+00 : f32
    %95 = vector.shape_cast %94 : vector<64x1xi1> to vector<64x1xi1>
    %96 = vector.broadcast %95 : vector<64x1xi1> to vector<64x32xi1>
    %97 = vector.broadcast %cst_51 : f32 to vector<64x32xf32>
    %98 = arith.select %96, %92, %97 : vector<64x32xi1>, vector<64x32xf32>
    %c3_52 = arith.constant 3 : index
    %c0_53 = arith.constant 0 : index
    %c0_54 = arith.constant 0 : index
    %99 = vector.load %arg6[%c3_52, %c0_53, %c0_54] : memref<5x32x64xf32, #tpu.memory_space<vmem>>, vector<1x32x64xf32>
    %100 = vector.shape_cast %99 : vector<1x32x64xf32> to vector<32x64xf32>
    %cst_55 = arith.constant dense<0.000000e+00> : vector<64x64xf32>
    %101 = tpu.matmul %98, %100, %cst_55 {dimension_numbers = #tpu.dot_dimension_numbers<[1], [0], [0], [1], [0, 0, 1, 1], [], []>} : vector<64x32xf32>, vector<32x64xf32>, vector<64x64xf32> -> vector<64x64xf32>
    %102 = arith.addf %91, %101 : vector<64x64xf32>
    %c62_i32 = arith.constant 62 : i32
    %103 = tpu.dynamic_rotate %64 by %c62_i32 dim 0 : vector<64x32xf32>, i32 -> vector<64x32xf32>
    %c30_i32 = arith.constant 30 : i32
    %104 = vector.broadcast %c30_i32 : i32 to vector<64x1xi32>
    %105 = arith.cmpi slt, %66, %104 : vector<64x1xi32>
    %cst_56 = arith.constant 0.000000e+00 : f32
    %106 = vector.shape_cast %105 : vector<64x1xi1> to vector<64x1xi1>
    %107 = vector.broadcast %106 : vector<64x1xi1> to vector<64x32xi1>
    %108 = vector.broadcast %cst_56 : f32 to vector<64x32xf32>
    %109 = arith.select %107, %103, %108 : vector<64x32xi1>, vector<64x32xf32>
    %c4_57 = arith.constant 4 : index
    %c0_58 = arith.constant 0 : index
    %c0_59 = arith.constant 0 : index
    %110 = vector.load %arg6[%c4_57, %c0_58, %c0_59] : memref<5x32x64xf32, #tpu.memory_space<vmem>>, vector<1x32x64xf32>
    %111 = vector.shape_cast %110 : vector<1x32x64xf32> to vector<32x64xf32>
    %cst_60 = arith.constant dense<0.000000e+00> : vector<64x64xf32>
    %112 = tpu.matmul %109, %111, %cst_60 {dimension_numbers = #tpu.dot_dimension_numbers<[1], [0], [0], [1], [0, 0, 1, 1], [], []>} : vector<64x32xf32>, vector<32x64xf32>, vector<64x64xf32> -> vector<64x64xf32>
    %113 = arith.addf %102, %112 : vector<64x64xf32>
    %c0_61 = arith.constant 0 : index
    %c0_62 = arith.constant 0 : index
    %114 = vector.load %arg7[%c0_61, %c0_62] : memref<1x64xf32, #tpu.memory_space<vmem>>, vector<1x64xf32>
    %115 = vector.broadcast %114 : vector<1x64xf32> to vector<64x64xf32>
    %116 = arith.addf %113, %115 : vector<64x64xf32>
    %cst_63 = arith.constant 0.000000e+00 : f32
    %117 = vector.broadcast %cst_63 : f32 to vector<64x64xf32>
    %118 = arith.maximumf %116, %117 : vector<64x64xf32>
    %119 = vector.shape_cast %118 : vector<64x64xf32> to vector<16x4x64xf32>
    %cst_64 = arith.constant dense<0xFF800000> : vector<16x64xf32>
    %120 = vector.multi_reduction <maximumf>, %119, %cst_64 [1] : vector<16x4x64xf32> to vector<16x64xf32>
    %121 = tpu.iota {dimensions = array<i32: 1>} : vector<2x8x1xi32>
    %122 = vector.shape_cast %121 : vector<2x8x1xi32> to vector<16x1xi32>
    %c2_i32_65 = arith.constant 2 : i32
    %123 = tpu.dynamic_rotate %120 by %c2_i32_65 dim 0 : vector<16x64xf32>, i32 -> vector<16x64xf32>
    %c2_i32_66 = arith.constant 2 : i32
    %124 = vector.broadcast %c2_i32_66 : i32 to vector<16x1xi32>
    %125 = arith.cmpi sge, %122, %124 : vector<16x1xi32>
    %cst_67 = arith.constant 0.000000e+00 : f32
    %126 = vector.shape_cast %125 : vector<16x1xi1> to vector<16x1xi1>
    %127 = vector.broadcast %126 : vector<16x1xi1> to vector<16x64xi1>
    %128 = vector.broadcast %cst_67 : f32 to vector<16x64xf32>
    %129 = arith.select %127, %123, %128 : vector<16x64xi1>, vector<16x64xf32>
    %c0_68 = arith.constant 0 : index
    %c0_69 = arith.constant 0 : index
    %c0_70 = arith.constant 0 : index
    %130 = vector.load %arg8[%c0_68, %c0_69, %c0_70] : memref<5x64x128xf32, #tpu.memory_space<vmem>>, vector<1x64x128xf32>
    %131 = vector.shape_cast %130 : vector<1x64x128xf32> to vector<64x128xf32>
    %cst_71 = arith.constant dense<0.000000e+00> : vector<16x128xf32>
    %132 = tpu.matmul %129, %131, %cst_71 {dimension_numbers = #tpu.dot_dimension_numbers<[1], [0], [0], [1], [0, 0, 1, 1], [], []>} : vector<16x64xf32>, vector<64x128xf32>, vector<16x128xf32> -> vector<16x128xf32>
    %c1_i32_72 = arith.constant 1 : i32
    %133 = tpu.dynamic_rotate %120 by %c1_i32_72 dim 0 : vector<16x64xf32>, i32 -> vector<16x64xf32>
    %c1_i32_73 = arith.constant 1 : i32
    %134 = vector.broadcast %c1_i32_73 : i32 to vector<16x1xi32>
    %135 = arith.cmpi sge, %122, %134 : vector<16x1xi32>
    %cst_74 = arith.constant 0.000000e+00 : f32
    %136 = vector.shape_cast %135 : vector<16x1xi1> to vector<16x1xi1>
    %137 = vector.broadcast %136 : vector<16x1xi1> to vector<16x64xi1>
    %138 = vector.broadcast %cst_74 : f32 to vector<16x64xf32>
    %139 = arith.select %137, %133, %138 : vector<16x64xi1>, vector<16x64xf32>
    %c1_75 = arith.constant 1 : index
    %c0_76 = arith.constant 0 : index
    %c0_77 = arith.constant 0 : index
    %140 = vector.load %arg8[%c1_75, %c0_76, %c0_77] : memref<5x64x128xf32, #tpu.memory_space<vmem>>, vector<1x64x128xf32>
    %141 = vector.shape_cast %140 : vector<1x64x128xf32> to vector<64x128xf32>
    %cst_78 = arith.constant dense<0.000000e+00> : vector<16x128xf32>
    %142 = tpu.matmul %139, %141, %cst_78 {dimension_numbers = #tpu.dot_dimension_numbers<[1], [0], [0], [1], [0, 0, 1, 1], [], []>} : vector<16x64xf32>, vector<64x128xf32>, vector<16x128xf32> -> vector<16x128xf32>
    %143 = arith.addf %132, %142 : vector<16x128xf32>
    %c2_79 = arith.constant 2 : index
    %c0_80 = arith.constant 0 : index
    %c0_81 = arith.constant 0 : index
    %144 = vector.load %arg8[%c2_79, %c0_80, %c0_81] : memref<5x64x128xf32, #tpu.memory_space<vmem>>, vector<1x64x128xf32>
    %145 = vector.shape_cast %144 : vector<1x64x128xf32> to vector<64x128xf32>
    %cst_82 = arith.constant dense<0.000000e+00> : vector<16x128xf32>
    %146 = tpu.matmul %120, %145, %cst_82 {dimension_numbers = #tpu.dot_dimension_numbers<[1], [0], [0], [1], [0, 0, 1, 1], [], []>} : vector<16x64xf32>, vector<64x128xf32>, vector<16x128xf32> -> vector<16x128xf32>
    %147 = arith.addf %143, %146 : vector<16x128xf32>
    %c15_i32 = arith.constant 15 : i32
    %148 = tpu.dynamic_rotate %120 by %c15_i32 dim 0 : vector<16x64xf32>, i32 -> vector<16x64xf32>
    %c7_i32 = arith.constant 7 : i32
    %149 = vector.broadcast %c7_i32 : i32 to vector<16x1xi32>
    %150 = arith.cmpi slt, %122, %149 : vector<16x1xi32>
    %cst_83 = arith.constant 0.000000e+00 : f32
    %151 = vector.shape_cast %150 : vector<16x1xi1> to vector<16x1xi1>
    %152 = vector.broadcast %151 : vector<16x1xi1> to vector<16x64xi1>
    %153 = vector.broadcast %cst_83 : f32 to vector<16x64xf32>
    %154 = arith.select %152, %148, %153 : vector<16x64xi1>, vector<16x64xf32>
    %c3_84 = arith.constant 3 : index
    %c0_85 = arith.constant 0 : index
    %c0_86 = arith.constant 0 : index
    %155 = vector.load %arg8[%c3_84, %c0_85, %c0_86] : memref<5x64x128xf32, #tpu.memory_space<vmem>>, vector<1x64x128xf32>
    %156 = vector.shape_cast %155 : vector<1x64x128xf32> to vector<64x128xf32>
    %cst_87 = arith.constant dense<0.000000e+00> : vector<16x128xf32>
    %157 = tpu.matmul %154, %156, %cst_87 {dimension_numbers = #tpu.dot_dimension_numbers<[1], [0], [0], [1], [0, 0, 1, 1], [], []>} : vector<16x64xf32>, vector<64x128xf32>, vector<16x128xf32> -> vector<16x128xf32>
    %158 = arith.addf %147, %157 : vector<16x128xf32>
    %c14_i32 = arith.constant 14 : i32
    %159 = tpu.dynamic_rotate %120 by %c14_i32 dim 0 : vector<16x64xf32>, i32 -> vector<16x64xf32>
    %c6_i32 = arith.constant 6 : i32
    %160 = vector.broadcast %c6_i32 : i32 to vector<16x1xi32>
    %161 = arith.cmpi slt, %122, %160 : vector<16x1xi32>
    %cst_88 = arith.constant 0.000000e+00 : f32
    %162 = vector.shape_cast %161 : vector<16x1xi1> to vector<16x1xi1>
    %163 = vector.broadcast %162 : vector<16x1xi1> to vector<16x64xi1>
    %164 = vector.broadcast %cst_88 : f32 to vector<16x64xf32>
    %165 = arith.select %163, %159, %164 : vector<16x64xi1>, vector<16x64xf32>
    %c4_89 = arith.constant 4 : index
    %c0_90 = arith.constant 0 : index
    %c0_91 = arith.constant 0 : index
    %166 = vector.load %arg8[%c4_89, %c0_90, %c0_91] : memref<5x64x128xf32, #tpu.memory_space<vmem>>, vector<1x64x128xf32>
    %167 = vector.shape_cast %166 : vector<1x64x128xf32> to vector<64x128xf32>
    %cst_92 = arith.constant dense<0.000000e+00> : vector<16x128xf32>
    %168 = tpu.matmul %165, %167, %cst_92 {dimension_numbers = #tpu.dot_dimension_numbers<[1], [0], [0], [1], [0, 0, 1, 1], [], []>} : vector<16x64xf32>, vector<64x128xf32>, vector<16x128xf32> -> vector<16x128xf32>
    %169 = arith.addf %158, %168 : vector<16x128xf32>
    %c0_93 = arith.constant 0 : index
    %c0_94 = arith.constant 0 : index
    %170 = vector.load %arg9[%c0_93, %c0_94] : memref<1x128xf32, #tpu.memory_space<vmem>>, vector<1x128xf32>
    %171 = vector.broadcast %170 : vector<1x128xf32> to vector<16x128xf32>
    %172 = arith.addf %169, %171 : vector<16x128xf32>
    %cst_95 = arith.constant 0.000000e+00 : f32
    %173 = vector.broadcast %cst_95 : f32 to vector<16x128xf32>
    %174 = arith.maximumf %172, %173 : vector<16x128xf32>
    %175 = vector.shape_cast %174 : vector<16x128xf32> to vector<4x4x128xf32>
    %cst_96 = arith.constant dense<0xFF800000> : vector<4x128xf32>
    %176 = vector.multi_reduction <maximumf>, %175, %cst_96 [1] : vector<4x4x128xf32> to vector<4x128xf32>
    %177 = tpu.iota {dimensions = array<i32: 1>} : vector<2x2x1xi32>
    %178 = vector.shape_cast %177 : vector<2x2x1xi32> to vector<4x1xi32>
    %c2_i32_97 = arith.constant 2 : i32
    %179 = tpu.dynamic_rotate %176 by %c2_i32_97 dim 0 : vector<4x128xf32>, i32 -> vector<4x128xf32>
    %c2_i32_98 = arith.constant 2 : i32
    %180 = vector.broadcast %c2_i32_98 : i32 to vector<4x1xi32>
    %181 = arith.cmpi sge, %178, %180 : vector<4x1xi32>
    %cst_99 = arith.constant 0.000000e+00 : f32
    %182 = vector.shape_cast %181 : vector<4x1xi1> to vector<4x1xi1>
    %183 = vector.broadcast %182 : vector<4x1xi1> to vector<4x128xi1>
    %184 = vector.broadcast %cst_99 : f32 to vector<4x128xf32>
    %185 = arith.select %183, %179, %184 : vector<4x128xi1>, vector<4x128xf32>
    %c0_100 = arith.constant 0 : index
    %c0_101 = arith.constant 0 : index
    %c0_102 = arith.constant 0 : index
    %186 = vector.load %arg10[%c0_100, %c0_101, %c0_102] : memref<5x128x256xf32, #tpu.memory_space<vmem>>, vector<1x128x256xf32>
    %187 = vector.shape_cast %186 : vector<1x128x256xf32> to vector<128x256xf32>
    %cst_103 = arith.constant dense<0.000000e+00> : vector<4x256xf32>
    %188 = tpu.matmul %185, %187, %cst_103 {dimension_numbers = #tpu.dot_dimension_numbers<[1], [0], [0], [1], [0, 0, 1, 1], [], []>} : vector<4x128xf32>, vector<128x256xf32>, vector<4x256xf32> -> vector<4x256xf32>
    %c1_i32_104 = arith.constant 1 : i32
    %189 = tpu.dynamic_rotate %176 by %c1_i32_104 dim 0 : vector<4x128xf32>, i32 -> vector<4x128xf32>
    %c1_i32_105 = arith.constant 1 : i32
    %190 = vector.broadcast %c1_i32_105 : i32 to vector<4x1xi32>
    %191 = arith.cmpi sge, %178, %190 : vector<4x1xi32>
    %cst_106 = arith.constant 0.000000e+00 : f32
    %192 = vector.shape_cast %191 : vector<4x1xi1> to vector<4x1xi1>
    %193 = vector.broadcast %192 : vector<4x1xi1> to vector<4x128xi1>
    %194 = vector.broadcast %cst_106 : f32 to vector<4x128xf32>
    %195 = arith.select %193, %189, %194 : vector<4x128xi1>, vector<4x128xf32>
    %c1_107 = arith.constant 1 : index
    %c0_108 = arith.constant 0 : index
    %c0_109 = arith.constant 0 : index
    %196 = vector.load %arg10[%c1_107, %c0_108, %c0_109] : memref<5x128x256xf32, #tpu.memory_space<vmem>>, vector<1x128x256xf32>
    %197 = vector.shape_cast %196 : vector<1x128x256xf32> to vector<128x256xf32>
    %cst_110 = arith.constant dense<0.000000e+00> : vector<4x256xf32>
    %198 = tpu.matmul %195, %197, %cst_110 {dimension_numbers = #tpu.dot_dimension_numbers<[1], [0], [0], [1], [0, 0, 1, 1], [], []>} : vector<4x128xf32>, vector<128x256xf32>, vector<4x256xf32> -> vector<4x256xf32>
    %199 = arith.addf %188, %198 : vector<4x256xf32>
    %c2_111 = arith.constant 2 : index
    %c0_112 = arith.constant 0 : index
    %c0_113 = arith.constant 0 : index
    %200 = vector.load %arg10[%c2_111, %c0_112, %c0_113] : memref<5x128x256xf32, #tpu.memory_space<vmem>>, vector<1x128x256xf32>
    %201 = vector.shape_cast %200 : vector<1x128x256xf32> to vector<128x256xf32>
    %cst_114 = arith.constant dense<0.000000e+00> : vector<4x256xf32>
    %202 = tpu.matmul %176, %201, %cst_114 {dimension_numbers = #tpu.dot_dimension_numbers<[1], [0], [0], [1], [0, 0, 1, 1], [], []>} : vector<4x128xf32>, vector<128x256xf32>, vector<4x256xf32> -> vector<4x256xf32>
    %203 = arith.addf %199, %202 : vector<4x256xf32>
    %c3_i32 = arith.constant 3 : i32
    %204 = tpu.dynamic_rotate %176 by %c3_i32 dim 0 : vector<4x128xf32>, i32 -> vector<4x128xf32>
    %c1_i32_115 = arith.constant 1 : i32
    %205 = vector.broadcast %c1_i32_115 : i32 to vector<4x1xi32>
    %206 = arith.cmpi slt, %178, %205 : vector<4x1xi32>
    %cst_116 = arith.constant 0.000000e+00 : f32
    %207 = vector.shape_cast %206 : vector<4x1xi1> to vector<4x1xi1>
    %208 = vector.broadcast %207 : vector<4x1xi1> to vector<4x128xi1>
    %209 = vector.broadcast %cst_116 : f32 to vector<4x128xf32>
    %210 = arith.select %208, %204, %209 : vector<4x128xi1>, vector<4x128xf32>
    %c3_117 = arith.constant 3 : index
    %c0_118 = arith.constant 0 : index
    %c0_119 = arith.constant 0 : index
    %211 = vector.load %arg10[%c3_117, %c0_118, %c0_119] : memref<5x128x256xf32, #tpu.memory_space<vmem>>, vector<1x128x256xf32>
    %212 = vector.shape_cast %211 : vector<1x128x256xf32> to vector<128x256xf32>
    %cst_120 = arith.constant dense<0.000000e+00> : vector<4x256xf32>
    %213 = tpu.matmul %210, %212, %cst_120 {dimension_numbers = #tpu.dot_dimension_numbers<[1], [0], [0], [1], [0, 0, 1, 1], [], []>} : vector<4x128xf32>, vector<128x256xf32>, vector<4x256xf32> -> vector<4x256xf32>
    %214 = arith.addf %203, %213 : vector<4x256xf32>
    %c2_i32_121 = arith.constant 2 : i32
    %215 = tpu.dynamic_rotate %176 by %c2_i32_121 dim 0 : vector<4x128xf32>, i32 -> vector<4x128xf32>
    %c0_i32 = arith.constant 0 : i32
    %216 = vector.broadcast %c0_i32 : i32 to vector<4x1xi32>
    %217 = arith.cmpi slt, %178, %216 : vector<4x1xi32>
    %cst_122 = arith.constant 0.000000e+00 : f32
    %218 = vector.shape_cast %217 : vector<4x1xi1> to vector<4x1xi1>
    %219 = vector.broadcast %218 : vector<4x1xi1> to vector<4x128xi1>
    %220 = vector.broadcast %cst_122 : f32 to vector<4x128xf32>
    %221 = arith.select %219, %215, %220 : vector<4x128xi1>, vector<4x128xf32>
    %c4_123 = arith.constant 4 : index
    %c0_124 = arith.constant 0 : index
    %c0_125 = arith.constant 0 : index
    %222 = vector.load %arg10[%c4_123, %c0_124, %c0_125] : memref<5x128x256xf32, #tpu.memory_space<vmem>>, vector<1x128x256xf32>
    %223 = vector.shape_cast %222 : vector<1x128x256xf32> to vector<128x256xf32>
    %cst_126 = arith.constant dense<0.000000e+00> : vector<4x256xf32>
    %224 = tpu.matmul %221, %223, %cst_126 {dimension_numbers = #tpu.dot_dimension_numbers<[1], [0], [0], [1], [0, 0, 1, 1], [], []>} : vector<4x128xf32>, vector<128x256xf32>, vector<4x256xf32> -> vector<4x256xf32>
    %225 = arith.addf %214, %224 : vector<4x256xf32>
    %c0_127 = arith.constant 0 : index
    %c0_128 = arith.constant 0 : index
    %226 = vector.load %arg11[%c0_127, %c0_128] : memref<1x256xf32, #tpu.memory_space<vmem>>, vector<1x256xf32>
    %227 = vector.broadcast %226 : vector<1x256xf32> to vector<4x256xf32>
    %228 = arith.addf %225, %227 : vector<4x256xf32>
    %cst_129 = arith.constant 0.000000e+00 : f32
    %229 = vector.broadcast %cst_129 : f32 to vector<4x256xf32>
    %230 = arith.maximumf %228, %229 : vector<4x256xf32>
    %231 = vector.shape_cast %230 : vector<4x256xf32> to vector<2x2x256xf32>
    %cst_130 = arith.constant dense<0xFF800000> : vector<2x256xf32>
    %232 = vector.multi_reduction <maximumf>, %231, %cst_130 [1] : vector<2x2x256xf32> to vector<2x256xf32>
    %c0_131 = arith.constant 0 : index
    %c0_132 = arith.constant 0 : index
    %233 = vector.load %arg12[%c0_131, %c0_132] : memref<2x256xf32, #tpu.memory_space<vmem>>, vector<2x256xf32>
    tpu.vector_store %arg12[%c0_131, %c0_132], %232 {strides = array<i32>} : memref<2x256xf32, #tpu.memory_space<vmem>>, vector<2x256xf32>,
    return
  }
  func.func @transform_0(%arg0: i32) -> (i32, i32, i32) {
    %c0_i32 = arith.constant 0 : i32
    %c0_i32_0 = arith.constant 0 : i32
    %c0_i32_1 = arith.constant 0 : i32
    return %arg0, %c0_i32, %c0_i32_0 : i32, i32, i32
  }
  func.func @transform_1(%arg0: i32) -> (i32, i32) {
    %c0_i32 = arith.constant 0 : i32
    %c0_i32_0 = arith.constant 0 : i32
    %c0_i32_1 = arith.constant 0 : i32
    return %c0_i32, %c0_i32_0 : i32, i32
  }
  func.func @transform_2(%arg0: i32) -> (i32, i32) {
    %c0_i32 = arith.constant 0 : i32
    %c0_i32_0 = arith.constant 0 : i32
    %c0_i32_1 = arith.constant 0 : i32
    return %c0_i32, %c0_i32_0 : i32, i32
  }
  func.func @transform_3(%arg0: i32) -> (i32, i32, i32) {
    %c0_i32 = arith.constant 0 : i32
    %c0_i32_0 = arith.constant 0 : i32
    %c0_i32_1 = arith.constant 0 : i32
    %c0_i32_2 = arith.constant 0 : i32
    return %c0_i32, %c0_i32_0, %c0_i32_1 : i32, i32, i32
  }
  func.func @transform_4(%arg0: i32) -> (i32, i32) {
    %c0_i32 = arith.constant 0 : i32
    %c0_i32_0 = arith.constant 0 : i32
    %c0_i32_1 = arith.constant 0 : i32
    return %c0_i32, %c0_i32_0 : i32, i32
  }
  func.func @transform_5(%arg0: i32) -> (i32, i32, i32) {
    %c0_i32 = arith.constant 0 : i32
    %c0_i32_0 = arith.constant 0 : i32
    %c0_i32_1 = arith.constant 0 : i32
    %c0_i32_2 = arith.constant 0 : i32
    return %c0_i32, %c0_i32_0, %c0_i32_1 : i32, i32, i32
  }
  func.func @transform_6(%arg0: i32) -> (i32, i32) {
    %c0_i32 = arith.constant 0 : i32
    %c0_i32_0 = arith.constant 0 : i32
    %c0_i32_1 = arith.constant 0 : i32
    return %c0_i32, %c0_i32_0 : i32, i32
  }
  func.func @transform_7(%arg0: i32) -> (i32, i32, i32) {
    %c0_i32 = arith.constant 0 : i32
    %c0_i32_0 = arith.constant 0 : i32
    %c0_i32_1 = arith.constant 0 : i32
    %c0_i32_2 = arith.constant 0 : i32
    return %c0_i32, %c0_i32_0, %c0_i32_1 : i32, i32, i32
  }
  func.func @transform_8(%arg0: i32) -> (i32, i32) {
    %c0_i32 = arith.constant 0 : i32
    %c0_i32_0 = arith.constant 0 : i32
    %c0_i32_1 = arith.constant 0 : i32
    return %c0_i32, %c0_i32_0 : i32, i32
  }
  func.func @transform_9(%arg0: i32) -> (i32, i32, i32) {
    %c0_i32 = arith.constant 0 : i32
    %c0_i32_0 = arith.constant 0 : i32
    %c0_i32_1 = arith.constant 0 : i32
    %c0_i32_2 = arith.constant 0 : i32
    return %c0_i32, %c0_i32_0, %c0_i32_1 : i32, i32, i32
  }
  func.func @transform_10(%arg0: i32) -> (i32, i32) {
    %c0_i32 = arith.constant 0 : i32
    %c0_i32_0 = arith.constant 0 : i32
    %c0_i32_1 = arith.constant 0 : i32
    return %c0_i32, %c0_i32_0 : i32, i32
  }
  func.func @transform_11(%arg0: i32) -> (i32, i32) {
    %c0_i32 = arith.constant 0 : i32
    %c0_i32_0 = arith.constant 0 : i32
    return %arg0, %c0_i32 : i32, i32
  }
}

</mosaic_0001>

<bundles_post_ra>
// kernel: mini_mscnn_forward.3
= control target key start
LH: loop header
LB: loop body
LE: loop exit
PB: predicated region body
PF: predicated region fallthrough
CT: control target
= control target key end

     0   :  { %s1617_s1 = inlined_call_operand.vmem [shape: bf16[256,1024], index: 1, kind: input, shape index: {}]   ;;  %s1618_s0 = inlined_call_operand.vmem [shape: f32[2,256], index: 0, kind: input, shape index: {}]   ;;  %s1619_s2 = inlined_call_operand.vmem [shape: f32[1,1024], index: 2, kind: input, shape index: {}]   ;;  %s1620_s3 = inlined_call_operand.vmem [shape: f32[2,1024], index: 3, kind: output, shape index: {}]  }
   0x1   :  { %v84_v0 = vld [vmem:[%s1617_s1 + $0x1c0] sm:$0xff]  ;;  %v85_v2 = vld [vmem:[%s1617_s1 + $0x1c8] sm:$0xff] }
   0x2   :  { %v88_v1 = vld [vmem:[%s1617_s1 + $0x1e0] sm:$0xff]  ;;  %v89_v4 = vld [vmem:[%s1617_s1 + $0x1e8] sm:$0xff] }
   0x3   :  { %v1110_v3 = vcombine.high %v84_v0, %v88_v1  ;;  %v1109_v5 = vcombine.low %v84_v0, %v88_v1  ;;  %v76_v6 = vld [vmem:[%s1617_s1 + $0x180] sm:$0xff]  ;;  %v1112_v8 = vcombine.high %v85_v2, %v89_v4  ;;  %v1111_v9 = vcombine.low %v85_v2, %v89_v4  ;;  %v77_v11 = vld [vmem:[%s1617_s1 + $0x188] sm:$0xff] }
   0x4   :  { %v80_v7 = vld [vmem:[%s1617_s1 + $0x1a0] sm:$0xff]  ;;  %v81_v12 = vld [vmem:[%s1617_s1 + $0x1a8] sm:$0xff] }
   0x5   :  { %v1102_v10 = vcombine.high %v76_v6, %v80_v7  ;;  %v68_v13 = vld [vmem:[%s1617_s1 + $0x140] sm:$0xff]  ;;  %838 = vmatprep.subr.bf16.mxu0 %v1110_v3  ;;  %v1104_v14 = vcombine.high %v77_v11, %v81_v12  ;;  %v69_v16 = vld [vmem:[%s1617_s1 + $0x148] sm:$0xff]  ;;  %879 = vmatprep.subr.bf16.mxu1 %v1112_v8  ;;  %v1101_v18 = vcombine.low %v76_v6, %v80_v7 }
   0x6   :  { %v72_v15 = vld [vmem:[%s1617_s1 + $0x160] sm:$0xff]  ;;  %v73_v17 = vld [vmem:[%s1617_s1 + $0x168] sm:$0xff]  ;;  %839 = vmatpush1.bf16.msra.mxu0 %v1109_v5  ;;  %880 = vmatpush1.bf16.msra.mxu1 %v1111_v9  ;;  %v1103_v19 = vcombine.low %v77_v11, %v81_v12 }
   0x7   :  { %840 = vmatprep.subr.bf16.mxu0 %v1102_v10  ;;  %v1094_v20 = vcombine.high %v68_v13, %v72_v15  ;;  %881 = vmatprep.subr.bf16.mxu1 %v1104_v14  ;;  %v1096_v21 = vcombine.high %v69_v16, %v73_v17  ;;  %v60_v22 = vld [vmem:[%s1617_s1 + $0x100] sm:$0xff]  ;;  %v61_v24 = vld [vmem:[%s1617_s1 + $0x108] sm:$0xff]  ;;  %v1093_v26 = vcombine.low %v68_v13, %v72_v15 }
   0x8   :  { %v64_v23 = vld [vmem:[%s1617_s1 + $0x120] sm:$0xff]  ;;  %v65_v25 = vld [vmem:[%s1617_s1 + $0x128] sm:$0xff]  ;;  %v1095_v27 = vcombine.low %v69_v16, %v73_v17 }
   0x9   :  { %v1086_v28 = vcombine.high %v60_v22, %v64_v23  ;;  %v1088_v29 = vcombine.high %v61_v24, %v65_v25  ;;  %v52_v30 = vld [vmem:[%s1617_s1 + $0xc0] sm:$0xff]  ;;  %v53_v32 = vld [vmem:[%s1617_s1 + $0xc8] sm:$0xff]  ;;  %v1085_v34 = vcombine.low %v60_v22, %v64_v23  ;;  %v1087_v35 = vcombine.low %v61_v24, %v65_v25 }
   0xa   :  { %841 = vmatpush1.bf16.msra.mxu0 %v1101_v18  ;;  %882 = vmatpush1.bf16.msra.mxu1 %v1103_v19  ;;  %v56_v31 = vld [vmem:[%s1617_s1 + $0xe0] sm:$0xff]  ;;  %v57_v33 = vld [vmem:[%s1617_s1 + $0xe8] sm:$0xff] }
   0xb   :  { %842 = vmatprep.subr.bf16.mxu0 %v1094_v20  ;;  %883 = vmatprep.subr.bf16.mxu1 %v1096_v21  ;;  %v1078_v36 = vcombine.high %v52_v30, %v56_v31  ;;  %v1080_v37 = vcombine.high %v53_v32, %v57_v33  ;;  %v44_v38 = vld [vmem:[%s1617_s1 + $0x80] sm:$0xff]  ;;  %v45_v40 = vld [vmem:[%s1617_s1 + $0x88] sm:$0xff]  ;;  %v1077_v42 = vcombine.low %v52_v30, %v56_v31 }
   0xc   :  { %v48_v39 = vld [vmem:[%s1617_s1 + $0xa0] sm:$0xff]  ;;  %v49_v41 = vld [vmem:[%s1617_s1 + $0xa8] sm:$0xff]  ;;  %v1079_v43 = vcombine.low %v53_v32, %v57_v33 }
   0xd   :  { %v1070_v44 = vcombine.high %v44_v38, %v48_v39  ;;  %v1072_v45 = vcombine.high %v45_v40, %v49_v41  ;;  %v36_v46 = vld [vmem:[%s1617_s1 + $0x40] sm:$0xff]  ;;  %v37_v48 = vld [vmem:[%s1617_s1 + $0x48] sm:$0xff]  ;;  %v1069_v50 = vcombine.low %v44_v38, %v48_v39  ;;  %v1071_v51 = vcombine.low %v45_v40, %v49_v41 }
   0xe   :  { %843 = vmatpush1.bf16.msra.mxu0 %v1093_v26  ;;  %884 = vmatpush1.bf16.msra.mxu1 %v1095_v27  ;;  %v40_v47 = vld [vmem:[%s1617_s1 + $0x60] sm:$0xff]  ;;  %v41_v49 = vld [vmem:[%s1617_s1 + $0x68] sm:$0xff] }
   0xf   :  { %844 = vmatprep.subr.bf16.mxu0 %v1086_v28  ;;  %885 = vmatprep.subr.bf16.mxu1 %v1088_v29  ;;  %v1062_v52 = vcombine.high %v36_v46, %v40_v47  ;;  %v1290_v53 = vld.sshfl [vmem:[%s1618_s0] sm:$0x33 pattern:$0x76325410]  ;;  %v1064_v54 = vcombine.high %v37_v48, %v41_v49  ;;  %v29_v58 = vld [vmem:[%s1617_s1 + $0x8] sm:$0xff]  ;;  %v1061_v60 = vcombine.low %v36_v46, %v40_v47 }
  0x10   :  { %v28_v55 = vld [vmem:[%s1617_s1] sm:$0xff]  ;;  %v23_v57 = vcombine.high %v1290_v53, %v1290_v53  ;;  %v33_v59 = vld [vmem:[%s1617_s1 + $0x28] sm:$0xff]  ;;  %v1063_v62 = vcombine.low %v37_v48, %v41_v49 }
  0x11   :  { %v32_v56 = vld [vmem:[%s1617_s1 + $0x20] sm:$0xff]  ;;  %v1056_v0 = vcombine.high %v29_v58, %v33_v59  ;;  %v149_v3 = vld [vmem:[%s1617_s1 + $0x3c8] sm:$0xff]  ;;  %v1055_v6 = vcombine.low %v29_v58, %v33_v59 }
  0x12   :  { %845 = vmatpush1.bf16.msra.mxu0 %v1085_v34  ;;  %886 = vmatpush1.bf16.msra.mxu1 %v1087_v35  ;;  %v1306_v61 = vpack.c.bf16 %v23_v57, %v23_v57  ;;  %v1054_v63 = vcombine.high %v28_v55, %v32_v56  ;;  %v148_v1 = vld [vmem:[%s1617_s1 + $0x3c0] sm:$0xff]  ;;  %v153_v4 = vld [vmem:[%s1617_s1 + $0x3e8] sm:$0xff]  ;;  %v1053_v5 = vcombine.low %v28_v55, %v32_v56 }
  0x13   :  { %846 = vmatprep.subr.bf16.mxu0 %v1078_v36  ;;  %887 = vmatprep.subr.bf16.mxu1 %v1080_v37  ;;  %v152_v2 = vld [vmem:[%s1617_s1 + $0x3e0] sm:$0xff]  ;;  %v1176_v8 = vcombine.high %v149_v3, %v153_v4  ;;  %v141_v11 = vld [vmem:[%s1617_s1 + $0x388] sm:$0xff]  ;;  %v1175_v14 = vcombine.low %v149_v3, %v153_v4  ;;  %v86_v3 = vld [vmem:[%s1617_s1 + $0x1d0] sm:$0xff] }
  0x14   :  { %870 = vmatprep.mubr.bf16.mxu0 %v1306_v61  ;;  %911 = vmatprep.mubr.bf16.mxu1 %v1306_v61  ;;  %v1174_v7 = vcombine.high %v148_v1, %v152_v2  ;;  %v140_v9 = vld [vmem:[%s1617_s1 + $0x380] sm:$0xff]  ;;  %v145_v12 = vld [vmem:[%s1617_s1 + $0x3a8] sm:$0xff]  ;;  %v1173_v13 = vcombine.low %v148_v1, %v152_v2  ;;  %v90_v4 = vld [vmem:[%s1617_s1 + $0x1f0] sm:$0xff] }
  0x15   :  { %v144_v10 = vld [vmem:[%s1617_s1 + $0x3a0] sm:$0xff]  ;;  %v1168_v16 = vcombine.high %v141_v11, %v145_v12  ;;  %v133_v19 = vld [vmem:[%s1617_s1 + $0x348] sm:$0xff]  ;;  %v1167_v22 = vcombine.low %v141_v11, %v145_v12  ;;  %v78_v11 = vld [vmem:[%s1617_s1 + $0x190] sm:$0xff] }
  0x16   :  { %847 = vmatpush1.bf16.msra.mxu0 %v1077_v42  ;;  %888 = vmatpush1.bf16.msra.mxu1 %v1079_v43  ;;  %v1166_v15 = vcombine.high %v140_v9, %v144_v10  ;;  %v132_v17 = vld [vmem:[%s1617_s1 + $0x340] sm:$0xff]  ;;  %v137_v20 = vld [vmem:[%s1617_s1 + $0x368] sm:$0xff]  ;;  %v1165_v21 = vcombine.low %v140_v9, %v144_v10  ;;  %v1114_v9 = vcombine.high %v86_v3, %v90_v4  ;;  %v82_v12 = vld [vmem:[%s1617_s1 + $0x1b0] sm:$0xff] }
  0x17   :  { %848 = vmatprep.subr.bf16.mxu0 %v1070_v44  ;;  %889 = vmatprep.subr.bf16.mxu1 %v1072_v45  ;;  %v136_v18 = vld [vmem:[%s1617_s1 + $0x360] sm:$0xff]  ;;  %v1160_v24 = vcombine.high %v133_v19, %v137_v20  ;;  %v125_v27 = vld [vmem:[%s1617_s1 + $0x308] sm:$0xff]  ;;  %v1159_v30 = vcombine.low %v133_v19, %v137_v20  ;;  %v74_v20 = vld [vmem:[%s1617_s1 + $0x170] sm:$0xff] }
  0x18   :  { %v1158_v23 = vcombine.high %v132_v17, %v136_v18  ;;  %v124_v25 = vld [vmem:[%s1617_s1 + $0x300] sm:$0xff]  ;;  %v129_v28 = vld [vmem:[%s1617_s1 + $0x328] sm:$0xff]  ;;  %v1157_v29 = vcombine.low %v132_v17, %v136_v18  ;;  %v1106_v18 = vcombine.high %v78_v11, %v82_v12 }
  0x19   :  { %v128_v26 = vld [vmem:[%s1617_s1 + $0x320] sm:$0xff]  ;;  %v1152_v32 = vcombine.high %v125_v27, %v129_v28  ;;  %v117_v35 = vld [vmem:[%s1617_s1 + $0x2c8] sm:$0xff]  ;;  %v1151_v38 = vcombine.low %v125_v27, %v129_v28  ;;  %v62_v27 = vld [vmem:[%s1617_s1 + $0x110] sm:$0xff] }
  0x1a   :  { %849 = vmatpush1.bf16.msra.mxu0 %v1069_v50  ;;  %890 = vmatpush1.bf16.msra.mxu1 %v1071_v51  ;;  %v1150_v31 = vcombine.high %v124_v25, %v128_v26  ;;  %v116_v33 = vld [vmem:[%s1617_s1 + $0x2c0] sm:$0xff]  ;;  %v121_v36 = vld [vmem:[%s1617_s1 + $0x2e8] sm:$0xff]  ;;  %v1149_v37 = vcombine.low %v124_v25, %v128_v26  ;;  %v66_v28 = vld [vmem:[%s1617_s1 + $0x130] sm:$0xff] }
  0x1b   :  { %850 = vmatprep.subr.bf16.mxu0 %v1062_v52  ;;  %891 = vmatprep.subr.bf16.mxu1 %v1064_v54  ;;  %v120_v34 = vld [vmem:[%s1617_s1 + $0x2e0] sm:$0xff]  ;;  %v1144_v40 = vcombine.high %v117_v35, %v121_v36  ;;  %v109_v43 = vld [vmem:[%s1617_s1 + $0x288] sm:$0xff]  ;;  %v1143_v46 = vcombine.low %v117_v35, %v121_v36  ;;  %v54_v35 = vld [vmem:[%s1617_s1 + $0xd0] sm:$0xff] }
  0x1c   :  { %v1142_v39 = vcombine.high %v116_v33, %v120_v34  ;;  %v108_v41 = vld [vmem:[%s1617_s1 + $0x280] sm:$0xff]  ;;  %v113_v44 = vld [vmem:[%s1617_s1 + $0x2a8] sm:$0xff]  ;;  %v1141_v45 = vcombine.low %v116_v33, %v120_v34  ;;  %v1090_v33 = vcombine.high %v62_v27, %v66_v28  ;;  %v58_v36 = vld [vmem:[%s1617_s1 + $0xf0] sm:$0xff] }
  0x1d   :  { %v112_v42 = vld [vmem:[%s1617_s1 + $0x2a0] sm:$0xff]  ;;  %v1136_v48 = vcombine.high %v109_v43, %v113_v44  ;;  %v101_v51 = vld [vmem:[%s1617_s1 + $0x248] sm:$0xff]  ;;  %v1135_v55 = vcombine.low %v109_v43, %v113_v44  ;;  %v50_v43 = vld [vmem:[%s1617_s1 + $0xb0] sm:$0xff] }
  0x1e   :  { %851 = vmatpush1.bf16.msra.mxu0 %v1061_v60  ;;  %892 = vmatpush1.bf16.msra.mxu1 %v1063_v62  ;;  %v1134_v47 = vcombine.high %v108_v41, %v112_v42  ;;  %v100_v49 = vld [vmem:[%s1617_s1 + $0x240] sm:$0xff]  ;;  %v105_v52 = vld [vmem:[%s1617_s1 + $0x268] sm:$0xff]  ;;  %v1133_v54 = vcombine.low %v108_v41, %v112_v42  ;;  %v46_v42 = vld [vmem:[%s1617_s1 + $0x90] sm:$0xff] }
  0x1f   :  { %852 = vmatprep.subr.bf16.mxu0 %v1054_v63  ;;  %893 = vmatprep.subr.bf16.mxu1 %v1056_v0  ;;  %v104_v50 = vld [vmem:[%s1617_s1 + $0x260] sm:$0xff]  ;;  %v1128_v57 = vcombine.high %v101_v51, %v105_v52  ;;  %v93_v60 = vld [vmem:[%s1617_s1 + $0x208] sm:$0xff]  ;;  %v1127_v0 = vcombine.low %v101_v51, %v105_v52  ;;  %v47_v44 = vld [vmem:[%s1617_s1 + $0x98] sm:$0xff] }
  0x20   :  { %v1126_v56 = vcombine.high %v100_v49, %v104_v50  ;;  %v92_v58 = vld [vmem:[%s1617_s1 + $0x200] sm:$0xff]  ;;  %v97_v62 = vld [vmem:[%s1617_s1 + $0x228] sm:$0xff]  ;;  %v1125_v63 = vcombine.low %v100_v49, %v104_v50  ;;  %v38_v50 = vld [vmem:[%s1617_s1 + $0x50] sm:$0xff] }
  0x21   :  { %v96_v59 = vld [vmem:[%s1617_s1 + $0x220] sm:$0xff]  ;;  %v1120_v2 = vcombine.high %v93_v60, %v97_v62  ;;  %v42_v51 = vld [vmem:[%s1617_s1 + $0x70] sm:$0xff]  ;;  %v39_v52 = vld [vmem:[%s1617_s1 + $0x58] sm:$0xff] }
  0x22   :  { %853 = vmatpush1.bf16.msra.mxu0 %v1053_v5  ;;  %894 = vmatpush1.bf16.msra.mxu1 %v1055_v6  ;;  %v1118_v1 = vcombine.high %v92_v58, %v96_v59  ;;  %v87_v5 = vld [vmem:[%s1617_s1 + $0x1d8] sm:$0xff] }
  0x23   :  { %854 = vmatprep.subr.bf16.mxu0 %v1174_v7  ;;  %895 = vmatprep.subr.bf16.mxu1 %v1176_v8  ;;  %v91_v6 = vld [vmem:[%s1617_s1 + $0x1f8] sm:$0xff]  ;;  %v1117_v7 = vcombine.low %v92_v58, %v96_v59  ;;  %v1119_v8 = vcombine.low %v93_v60, %v97_v62  ;;  %v30_v59 = vld [vmem:[%s1617_s1 + $0x10] sm:$0xff] }
  0x24   :  { %v1116_v10 = vcombine.high %v87_v5, %v91_v6  ;;  %v1115_v17 = vcombine.low %v87_v5, %v91_v6  ;;  %v34_v60 = vld [vmem:[%s1617_s1 + $0x30] sm:$0xff]  ;;  %v31_v62 = vld [vmem:[%s1617_s1 + $0x18] sm:$0xff] }
  0x25   :  { %v154_v5 = vld [vmem:[%s1617_s1 + $0x3f0] sm:$0xff]  ;;  %v151_v6 = vld [vmem:[%s1617_s1 + $0x3d8] sm:$0xff] }
  0x26   :  { %855 = vmatpush2.bf16.msra.mxu0 %v1173_v13  ;;  %896 = vmatpush2.bf16.msra.mxu1 %v1175_v14  ;;  %v1426_v13 = vpack.c.bf16 %v1290_v53, %v1290_v53  ;;  %v79_v14 = vld [vmem:[%s1617_s1 + $0x198] sm:$0xff]  ;;  %v70_v53 = vld [vmem:[%s1617_s1 + $0x150] sm:$0xff] }
  0x27   :  { %856 = vmatprep.subr.bf16.mxu0 %v1166_v15  ;;  %897 = vmatprep.subr.bf16.mxu1 %v1168_v16  ;;  %v83_v15 = vld [vmem:[%s1617_s1 + $0x1b8] sm:$0xff]  ;;  %v1113_v16 = vcombine.low %v86_v3, %v90_v4  ;;  %v1098_v25 = vcombine.high %v70_v53, %v74_v20  ;;  %v150_v4 = vld [vmem:[%s1617_s1 + $0x3d0] sm:$0xff] }
  0x28   :  { %v1108_v19 = vcombine.high %v79_v14, %v83_v15 }
  0x2a   :  { %857 = vmatpush2.bf16.msra.mxu0 %v1165_v21  ;;  %898 = vmatpush2.bf16.msra.mxu1 %v1167_v22  ;;  %v71_v21 = vld [vmem:[%s1617_s1 + $0x158] sm:$0xff] }
  0x2b   :  { %858 = vmatprep.subr.bf16.mxu0 %v1158_v23  ;;  %899 = vmatprep.subr.bf16.mxu1 %v1160_v24  ;;  %v75_v22 = vld [vmem:[%s1617_s1 + $0x178] sm:$0xff]  ;;  %v1105_v23 = vcombine.low %v78_v11, %v82_v12  ;;  %v1107_v24 = vcombine.low %v79_v14, %v83_v15  ;;  %v142_v12 = vld [vmem:[%s1617_s1 + $0x390] sm:$0xff] }
  0x2c   :  { %v1100_v26 = vcombine.high %v71_v21, %v75_v22  ;;  %v146_v14 = vld [vmem:[%s1617_s1 + $0x3b0] sm:$0xff]  ;;  %v143_v15 = vld [vmem:[%s1617_s1 + $0x398] sm:$0xff] }
  0x2e   :  { %859 = vmatpush2.bf16.msra.mxu0 %v1157_v29  ;;  %900 = vmatpush2.bf16.msra.mxu1 %v1159_v30  ;;  %v63_v29 = vld [vmem:[%s1617_s1 + $0x118] sm:$0xff] }
  0x2f   :  { %860 = vmatprep.subr.bf16.mxu0 %v1150_v31  ;;  %901 = vmatprep.subr.bf16.mxu1 %v1152_v32  ;;  %v67_v30 = vld [vmem:[%s1617_s1 + $0x138] sm:$0xff]  ;;  %v1097_v31 = vcombine.low %v70_v53, %v74_v20  ;;  %v1099_v32 = vcombine.low %v71_v21, %v75_v22  ;;  %v134_v20 = vld [vmem:[%s1617_s1 + $0x350] sm:$0xff] }
  0x30   :  { %v1092_v34 = vcombine.high %v63_v29, %v67_v30  ;;  %v138_v21 = vld [vmem:[%s1617_s1 + $0x370] sm:$0xff]  ;;  %v135_v22 = vld [vmem:[%s1617_s1 + $0x358] sm:$0xff] }
  0x32   :  { %861 = vmatpush2.bf16.msra.mxu0 %v1149_v37  ;;  %902 = vmatpush2.bf16.msra.mxu1 %v1151_v38  ;;  %v59_v37 = vld [vmem:[%s1617_s1 + $0xf8] sm:$0xff]  ;;  %v1089_v38 = vcombine.low %v62_v27, %v66_v28  ;;  %v126_v28 = vld [vmem:[%s1617_s1 + $0x310] sm:$0xff] }
  0x33   :  { %862 = vmatprep.subr.bf16.mxu0 %v1142_v39  ;;  %903 = vmatprep.subr.bf16.mxu1 %v1144_v40  ;;  %v1091_v39 = vcombine.low %v63_v29, %v67_v30  ;;  %v1082_v40 = vcombine.high %v54_v35, %v58_v36  ;;  %v130_v29 = vld [vmem:[%s1617_s1 + $0x330] sm:$0xff]  ;;  %v127_v30 = vld [vmem:[%s1617_s1 + $0x318] sm:$0xff] }
  0x36   :  { %863 = vmatpush2.bf16.msra.mxu0 %v1141_v45  ;;  %904 = vmatpush2.bf16.msra.mxu1 %v1143_v46  ;;  %v51_v45 = vld [vmem:[%s1617_s1 + $0xb8] sm:$0xff]  ;;  %v1081_v46 = vcombine.low %v54_v35, %v58_v36  ;;  %v118_v36 = vld [vmem:[%s1617_s1 + $0x2d0] sm:$0xff] }
  0x37   :  { %864 = vmatprep.subr.bf16.mxu0 %v1134_v47  ;;  %905 = vmatprep.subr.bf16.mxu1 %v1136_v48  ;;  %v1074_v48 = vcombine.high %v46_v42, %v50_v43  ;;  %v1076_v49 = vcombine.high %v47_v44, %v51_v45 }
  0x3a   :  { %865 = vmatpush2.bf16.msra.mxu0 %v1133_v54  ;;  %906 = vmatpush2.bf16.msra.mxu1 %v1135_v55  ;;  %v43_v54 = vld [vmem:[%s1617_s1 + $0x78] sm:$0xff]  ;;  %v1073_v55 = vcombine.low %v46_v42, %v50_v43  ;;  %v110_v43 = vld [vmem:[%s1617_s1 + $0x290] sm:$0xff] }
  0x3b   :  { %866 = vmatprep.subr.bf16.mxu0 %v1126_v56  ;;  %907 = vmatprep.subr.bf16.mxu1 %v1128_v57  ;;  %v1075_v56 = vcombine.low %v47_v44, %v51_v45  ;;  %v1066_v57 = vcombine.high %v38_v50, %v42_v51  ;;  %v1068_v58 = vcombine.high %v39_v52, %v43_v54  ;;  %v114_v44 = vld [vmem:[%s1617_s1 + $0x2b0] sm:$0xff]  ;;  %v111_v45 = vld [vmem:[%s1617_s1 + $0x298] sm:$0xff] }
  0x3e   :  { %867 = vmatpush2.bf16.msra.mxu0 %v1125_v63  ;;  %908 = vmatpush2.bf16.msra.mxu1 %v1127_v0  ;;  %v35_v63 = vld [vmem:[%s1617_s1 + $0x38] sm:$0xff]  ;;  %v1065_v0 = vcombine.low %v38_v50, %v42_v51  ;;  %v102_v51 = vld [vmem:[%s1617_s1 + $0x250] sm:$0xff] }
  0x3f   :  { %868 = vmatprep.subr.bf16.mxu0 %v1118_v1  ;;  %909 = vmatprep.subr.bf16.mxu1 %v1120_v2  ;;  %v1067_v1 = vcombine.low %v39_v52, %v43_v54  ;;  %v1058_v2 = vcombine.high %v30_v59, %v34_v60  ;;  %v1060_v3 = vcombine.high %v31_v62, %v35_v63  ;;  %v106_v52 = vld [vmem:[%s1617_s1 + $0x270] sm:$0xff]  ;;  %v103_v54 = vld [vmem:[%s1617_s1 + $0x258] sm:$0xff] }
  0x42   :  { %869 = vmatpush2.bf16.msra.mxu0 %v1117_v7  ;;  %910 = vmatpush2.bf16.msra.mxu1 %v1119_v8  ;;  %v155_v7 = vld [vmem:[%s1617_s1 + $0x3f8] sm:$0xff]  ;;  %v1057_v8 = vcombine.low %v30_v59, %v34_v60  ;;  %v94_v60 = vld [vmem:[%s1617_s1 + $0x210] sm:$0xff] }
  0x43   :  { %920 = vmatprep.subr.bf16.mxu0 %v1114_v9  ;;  %961 = vmatprep.subr.bf16.mxu1 %v1116_v10  ;;  %v1059_v9 = vcombine.low %v31_v62, %v35_v63  ;;  %v1178_v10 = vcombine.high %v150_v4, %v154_v5  ;;  %v1180_v11 = vcombine.high %v151_v6, %v155_v7  ;;  %v98_v62 = vld [vmem:[%s1617_s1 + $0x230] sm:$0xff]  ;;  %v95_v63 = vld [vmem:[%s1617_s1 + $0x218] sm:$0xff] }
  0x45   :  { %871 = vmatmul.mubr.bf16.vlgmr.msra.gmra.mxu0 %v1426_v13  ;;  %912 = vmatmul.mubr.bf16.vlgmr.msra.gmra.mxu1 %v1426_v13 }
  0x46   :  { %921 = vmatpush1.bf16.msra.mxu0 %v1113_v16  ;;  %962 = vmatpush1.bf16.msra.mxu1 %v1115_v17  ;;  %v147_v16 = vld [vmem:[%s1617_s1 + $0x3b8] sm:$0xff]  ;;  %v1177_v17 = vcombine.low %v150_v4, %v154_v5  ;;  %v1121_v5 = vcombine.low %v94_v60, %v98_v62 }
  0x47   :  { %922 = vmatprep.subr.bf16.mxu0 %v1106_v18  ;;  %963 = vmatprep.subr.bf16.mxu1 %v1108_v19  ;;  %v1179_v18 = vcombine.low %v151_v6, %v155_v7  ;;  %v1170_v19 = vcombine.high %v142_v12, %v146_v14  ;;  %v1172_v53 = vcombine.high %v143_v15, %v147_v16  ;;  %v158_v7 = vlaneseq }
  0x48   :  { %952 = vmatprep.mubr.bf16.mxu0 %v1306_v61  ;;  %993 = vmatprep.mubr.bf16.mxu1 %v1306_v61  ;;  %v55_v61 = vld [vmem:[%s1617_s1 + $0xd8] sm:$0xff] }
  0x49   :  { %v1084_v41 = vcombine.high %v55_v61, %v59_v37  ;;  %v1083_v47 = vcombine.low %v55_v61, %v59_v37  ;;  %v122_v61 = vld [vmem:[%s1617_s1 + $0x2f0] sm:$0xff]  ;;  %v119_v37 = vld [vmem:[%s1617_s1 + $0x2d8] sm:$0xff] }
  0x4a   :  { %923 = vmatpush1.bf16.msra.mxu0 %v1105_v23  ;;  %964 = vmatpush1.bf16.msra.mxu1 %v1107_v24  ;;  %v139_v23 = vld [vmem:[%s1617_s1 + $0x378] sm:$0xff]  ;;  %v1169_v24 = vcombine.low %v142_v12, %v146_v14 }
  0x4b   :  { %924 = vmatprep.subr.bf16.mxu0 %v1098_v25  ;;  %965 = vmatprep.subr.bf16.mxu1 %v1100_v26  ;;  %v1171_v25 = vcombine.low %v143_v15, %v147_v16  ;;  %v1162_v26 = vcombine.high %v134_v20, %v138_v21  ;;  %v1164_v27 = vcombine.high %v135_v22, %v139_v23 }
  0x4e   :  { %925 = vmatpush1.bf16.msra.mxu0 %v1097_v31  ;;  %966 = vmatpush1.bf16.msra.mxu1 %v1099_v32  ;;  %v131_v31 = vld [vmem:[%s1617_s1 + $0x338] sm:$0xff]  ;;  %v1161_v32 = vcombine.low %v134_v20, %v138_v21  ;;  %v1182_v21 = vmov 1983009808  }
  0x4f   :  { %926 = vmatprep.subr.bf16.mxu0 %v1090_v33  ;;  %967 = vmatprep.subr.bf16.mxu1 %v1092_v34  ;;  %v1163_v33 = vcombine.low %v135_v22, %v139_v23  ;;  %v1154_v34 = vcombine.high %v126_v28, %v130_v29  ;;  %v1156_v35 = vcombine.high %v127_v30, %v131_v31  ;;  %v1013_v22 = vunpack.c.l.s4 %v1182_v21 }
  0x52   :  { %927 = vmatpush1.bf16.msra.mxu0 %v1089_v38  ;;  %968 = vmatpush1.bf16.msra.mxu1 %v1091_v39  ;;  %v123_v38 = vld [vmem:[%s1617_s1 + $0x2f8] sm:$0xff]  ;;  %v1153_v39 = vcombine.low %v126_v28, %v130_v29 }
  0x53   :  { %928 = vmatprep.subr.bf16.mxu0 %v1082_v40  ;;  %969 = vmatprep.subr.bf16.mxu1 %v1084_v41  ;;  %v1155_v40 = vcombine.low %v127_v30, %v131_v31  ;;  %v1146_v41 = vcombine.high %v118_v36, %v122_v61  ;;  %v1148_v42 = vcombine.high %v119_v37, %v123_v38 }
  0x56   :  { %929 = vmatpush1.bf16.msra.mxu0 %v1081_v46  ;;  %970 = vmatpush1.bf16.msra.mxu1 %v1083_v47  ;;  %v115_v46 = vld [vmem:[%s1617_s1 + $0x2b8] sm:$0xff]  ;;  %v1145_v47 = vcombine.low %v118_v36, %v122_v61 }
  0x57   :  { %930 = vmatprep.subr.bf16.mxu0 %v1074_v48  ;;  %971 = vmatprep.subr.bf16.mxu1 %v1076_v49  ;;  %v1147_v48 = vcombine.low %v119_v37, %v123_v38  ;;  %v1138_v49 = vcombine.high %v110_v43, %v114_v44  ;;  %v1140_v50 = vcombine.high %v111_v45, %v115_v46 }
  0x5a   :  { %931 = vmatpush1.bf16.msra.mxu0 %v1073_v55  ;;  %972 = vmatpush1.bf16.msra.mxu1 %v1075_v56  ;;  %v107_v55 = vld [vmem:[%s1617_s1 + $0x278] sm:$0xff]  ;;  %v1137_v56 = vcombine.low %v110_v43, %v114_v44 }
  0x5b   :  { %932 = vmatprep.subr.bf16.mxu0 %v1066_v57  ;;  %973 = vmatprep.subr.bf16.mxu1 %v1068_v58  ;;  %v1139_v57 = vcombine.low %v111_v45, %v115_v46  ;;  %v1130_v58 = vcombine.high %v102_v51, %v106_v52  ;;  %v1132_v59 = vcombine.high %v103_v54, %v107_v55 }
  0x5e   :  { %933 = vmatpush1.bf16.msra.mxu0 %v1065_v0  ;;  %974 = vmatpush1.bf16.msra.mxu1 %v1067_v1  ;;  %v99_v0 = vld [vmem:[%s1617_s1 + $0x238] sm:$0xff]  ;;  %v1129_v1 = vcombine.low %v102_v51, %v106_v52 }
  0x5f   :  { %934 = vmatprep.subr.bf16.mxu0 %v1058_v2  ;;  %975 = vmatprep.subr.bf16.mxu1 %v1060_v3  ;;  %v1131_v2 = vcombine.low %v103_v54, %v107_v55  ;;  %v1122_v3 = vcombine.high %v94_v60, %v98_v62  ;;  %v1124_v4 = vcombine.high %v95_v63, %v99_v0 }
  0x60   :  { %v1123_v6 = vcombine.low %v95_v63, %v99_v0 }
  0x62   :  { %935 = vmatpush1.bf16.msra.mxu0 %v1057_v8  ;;  %976 = vmatpush1.bf16.msra.mxu1 %v1059_v9  ;;  %v159_v8 = vshrl.u32 %v158_v7, 7 }
  0x63   :  { %936 = vmatprep.subr.bf16.mxu0 %v1178_v10  ;;  %977 = vmatprep.subr.bf16.mxu1 %v1180_v11  ;;  %v156_v10 = vld [vmem:[%s1619_s2] sm:$0xff] }
  0x64   :  { %v176_v9 = vsub.s32 4, %v159_v8  ;;  %v184_v12 = vsub.s32 6, %v159_v8  ;;  %v180_v15 = vsub.s32 5, %v159_v8  ;;  %v188_v16 = vsub.s32 7, %v159_v8 }
  0x65   :  { %v164_v20 = vsub.s32 1, %v159_v8 }
  0x66   :  { %937 = vmatpush2.bf16.msra.mxu0 %v1177_v17  ;;  %978 = vmatpush2.bf16.msra.mxu1 %v1179_v18  ;;  %v177_v11 = vrot.slane %v156_v10, %v176_v9  ;;  %v185_v14 = vrot.slane %v156_v10, %v184_v12  ;;  %v181_v17 = vrot.slane %v156_v10, %v180_v15 }
  0x67   :  { %938 = vmatprep.subr.bf16.mxu0 %v1170_v19  ;;  %979 = vmatprep.subr.bf16.mxu1 %v1172_v53  ;;  %v189_v18 = vrot.slane %v156_v10, %v188_v16  ;;  %v160_v19 = vsub.s32 0, %v159_v8  ;;  %v168_v53 = vsub.s32 2, %v159_v8 }
  0x69   :  { %v161_v23 = vrot.slane %v156_v10, %v160_v19 }
  0x6a   :  { %939 = vmatpush2.bf16.msra.mxu0 %v1169_v24  ;;  %980 = vmatpush2.bf16.msra.mxu1 %v1171_v25  ;;  %v169_v24 = vrot.slane %v156_v10, %v168_v53  ;;  %v165_v25 = vrot.slane %v156_v10, %v164_v20 }
  0x6b   :  { %940 = vmatprep.subr.bf16.mxu0 %v1162_v26  ;;  %981 = vmatprep.subr.bf16.mxu1 %v1164_v27  ;;  %v1014_v26 = vunpack.c.0.s8 %v1013_v22 }
  0x6e   :  { %941 = vmatpush2.bf16.msra.mxu0 %v1161_v32  ;;  %982 = vmatpush2.bf16.msra.mxu1 %v1163_v33 }
  0x6f   :  { %942 = vmatprep.subr.bf16.mxu0 %v1154_v34  ;;  %983 = vmatprep.subr.bf16.mxu1 %v1156_v35  ;;  %v1017_v34 = vsub.s32 %v1014_v26, %v159_v8 }
  0x72   :  { %943 = vmatpush2.bf16.msra.mxu0 %v1153_v39  ;;  %984 = vmatpush2.bf16.msra.mxu1 %v1155_v40 }
  0x73   :  { %944 = vmatprep.subr.bf16.mxu0 %v1146_v41  ;;  %985 = vmatprep.subr.bf16.mxu1 %v1148_v42 }
  0x76   :  { %945 = vmatpush2.bf16.msra.mxu0 %v1145_v47  ;;  %986 = vmatpush2.bf16.msra.mxu1 %v1147_v48 }
  0x77   :  { %946 = vmatprep.subr.bf16.mxu0 %v1138_v49  ;;  %987 = vmatprep.subr.bf16.mxu1 %v1140_v50 }
  0x7a   :  { %947 = vmatpush2.bf16.msra.mxu0 %v1137_v56  ;;  %988 = vmatpush2.bf16.msra.mxu1 %v1139_v57 }
  0x7b   :  { %948 = vmatprep.subr.bf16.mxu0 %v1130_v58  ;;  %989 = vmatprep.subr.bf16.mxu1 %v1132_v59 }
  0x7e   :  { %949 = vmatpush2.bf16.msra.mxu0 %v1129_v1  ;;  %990 = vmatpush2.bf16.msra.mxu1 %v1131_v2 }
  0x7f   :  { %950 = vmatprep.subr.bf16.mxu0 %v1122_v3  ;;  %991 = vmatprep.subr.bf16.mxu1 %v1124_v4 }
  0x82   :  { %951 = vmatpush2.bf16.msra.mxu0 %v1121_v5  ;;  %992 = vmatpush2.bf16.msra.mxu1 %v1123_v6 }
  0x85   :  { %953 = vmatmul.mubr.bf16.vlgmr.msra.gmra.mxu0 %v1426_v13  ;;  %994 = vmatmul.mubr.bf16.vlgmr.msra.gmra.mxu1 %v1426_v13  ;;  %v172_v13 = vsub.s32 3, %v159_v8 }
  0x87   :  { %v173_v28 = vrot.slane %v156_v10, %v172_v13 }
 0x105   :  { %v872_v27 = vpop.f32.mrf.mxu0  ;;  %v913_v30 = vpop.f32.mrf.mxu1 }
 0x106   :  { %v873_v29 = vadd.f32 %v872_v27, %v161_v23  ;;  %v914_v31 = vadd.f32 %v913_v30, %v169_v24 }
 0x107   :  { %v874_v32 = vpop.f32.mrf.mxu0  ;;  %v915_v35 = vpop.f32.mrf.mxu1 }
 0x108   :  { %v875_v33 = vadd.f32 %v874_v32, %v165_v25  ;;  %v916_v36 = vadd.f32 %v915_v35, %v173_v28 }
 0x109   :  { %v876_v61 = vpop.f32.mrf.mxu0  ;;  %v917_v38 = vpop.f32.mrf.mxu1 }
 0x10a   :  { %v1010_v37 = vcombine.low %v873_v29, %v875_v33  ;;  %v1011_v39 = vcombine.low %v914_v31, %v916_v36 }
 0x10b   :  { %v877_v40 = vpop.f32.mrf.mxu0  ;;  %v918_v42 = vpop.f32.mrf.mxu1 }
 0x10c   :  { %v1018_v41 = vrot.slane %v1010_v37, %v1017_v34  ;;  %v1025_v43 = vrot.slane %v1011_v39, %v1017_v34 }
 0x10e   :  { %v1026_v44 = vcombine.low %v1018_v41, %v1025_v43 }
 0x110   :  { %1046 = vst [vmem:[%s1620_s3] sm:$0xff] %v1026_v44 }
 0x145   :  { %v954_v45 = vpop.f32.mrf.mxu0  ;;  %v995_v46 = vpop.f32.mrf.mxu1 }
 0x146   :  { %v955_v48 = vadd.f32 %v954_v45, %v177_v11  ;;  %v996_v51 = vadd.f32 %v995_v46, %v185_v14 }
 0x147   :  { %v956_v47 = vpop.f32.mrf.mxu0  ;;  %v997_v50 = vpop.f32.mrf.mxu1 }
 0x148   :  { %v957_v49 = vadd.f32 %v956_v47, %v181_v17  ;;  %v998_v52 = vadd.f32 %v997_v50, %v189_v18 }
 0x149   :  { %v958_v54 = vpop.f32.mrf.mxu0  ;;  %v999_v56 = vpop.f32.mrf.mxu1 }
 0x14a   :  { %v1027_v55 = vcombine.low %v955_v48, %v957_v49  ;;  %v1028_v57 = vcombine.low %v996_v51, %v998_v52 }
 0x14b   :  { %v959_v58 = vpop.f32.mrf.mxu0  ;;  %v1000_v60 = vpop.f32.mrf.mxu1 }
 0x14c   :  { %v1035_v59 = vrot.slane %v1027_v55, %v1017_v34  ;;  %v1042_v62 = vrot.slane %v1028_v57, %v1017_v34 }
 0x14e   :  { %v1043_v63 = vcombine.low %v1035_v59, %v1042_v62 }
 0x150   :  { %1047 = vst [vmem:[%s1620_s3 + $0x8] sm:$0xff] %v1043_v63 }

// kernel: mini_mscnn_forward.2
= control target key start
LH: loop header
LB: loop body
LE: loop exit
PB: predicated region body
PF: predicated region fallthrough
CT: control target
= control target key end

     0   :  { %16 = vsyncpa [#allocation3], 0  ;;  %s9433_s0 = inlined_call_operand.vmem [shape: f32[2,128,22], index: 0, kind: input, shape index: {}]   ;;  %s9434_s1 = inlined_call_operand.vmem [shape: f32[22,16], index: 1, kind: input, shape index: {}]   ;;  %s9435_s2 = inlined_call_operand.vmem [shape: f32[1,16], index: 2, kind: input, shape index: {}]   ;;  %s9436_s3 = inlined_call_operand.hbm [shape: f32[5,16,32], index: 3, kind: input, shape index: {}]   ;;  %s9437_s4 = inlined_call_operand.vmem [shape: f32[1,32], index: 4, kind: input, shape index: {}]   ;;  %s9438_s5 = inlined_call_operand.hbm [shape: f32[5,32,64], index: 5, kind: input, shape index: {}]   ;;  %s9439_s6 = inlined_call_operand.vmem [shape: f32[1,64], index: 6, kind: input, shape index: {}]   ;;  %s9440_s7 = inlined_call_operand.vmem [shape: f32[5,64,128], index: 7, kind: input, shape index: {}]   ;;  %s9441_s8 = inlined_call_operand.vmem [shape: f32[1,128], index: 8, kind: input, shape index: {}]   ;;  %s9442_s9 = inlined_call_operand.hbm [shape: f32[5,128,256], index: 9, kind: input, shape index: {}]   ;;  %s9443_s10 = inlined_call_operand.vmem [shape: f32[1,256], index: 10, kind: input, shape index: {}]   ;;  %s9444_s11 = inlined_call_operand.vmem [shape: f32[2,256], index: 11, kind: output, shape index: {}]  }
   0x1   :  { %17 = vsyncpa [#allocation5], 0  ;;  %s6991_s17 = smov [#allocation4]   ;;  %s6992_s19 = smov [#allocation2]  }
   0x2   :  { %s43_s18 = sshll.u32 %s6991_s17, 4  ;;  %s29_s20 = sshll.u32 %s6992_s19, 4  ;;  %s44_s18 = int_to_ptr.vmem [resolvable:$true] %s43_s18  ;;  %s30_s20 = int_to_ptr.vmem [resolvable:$true] %s29_s20 }
   0x3   :  { %s6935_s21 = scalar_lea.vmem %s44_s18, 2560  ;;  %p6940_p1 = scmp.lt.s32.totalorder %s44_s18, %s44_s18 }
   0x4   :  { %p6936_p0 = scmp.ne.s32.totalorder %s44_s18, %s6935_s21  ;;  %p6941_p2 = scmp.lt.s32.totalorder %s6935_s21, %s6935_s21 }
   0x6   :  { %p6942_p3 = por %p6941_p2, %p6940_p1 }
   0x8   :  { %p6943_p4 = pnand %p6942_p3, %p6936_p0 }
   0xa   :  { %6946 = shalt.err (!%p6943_p4)
}
   0xb   :  { %s6993_s22 = smov 128   ;;  %s6994_s23 = smov 8  }
   0xc   :  { %49 = dma.hbm_to_vmem [thread:$0]  %s9438_s5, 2560, %s44_s18, [#allocation5], %s6993_s22, %s6993_s22, %s6994_s23  }
   0xd   :  { %s6955_s26 = scalar_lea.vmem %s30_s20, 1280  ;;  %p6960_p6 = scmp.lt.s32.totalorder %s30_s20, %s30_s20 }
   0xe   :  { %p6956_p5 = scmp.ne.s32.totalorder %s30_s20, %s6955_s26  ;;  %p6961_p7 = scmp.lt.s32.totalorder %s6955_s26, %s6955_s26 }
  0x10   :  { %p6962_p8 = por %p6961_p7, %p6960_p6 }
  0x12   :  { %p6963_p9 = pnand %p6962_p8, %p6956_p5 }
  0x14   :  { %6966 = shalt.err (!%p6963_p9)
}
  0x15   :  { %35 = dma.hbm_to_vmem [thread:$0]  %s9436_s3, 1280, %s30_s20, [#allocation3], %s6993_s22, %s6993_s22, %s6994_s23  }
  0x16   :  { %s6995_s29 = smov [#allocation6]  }
  0x17   :  { %s61_s30 = sshll.u32 %s6995_s29, 4  ;;  %s62_s30 = int_to_ptr.vmem [resolvable:$true] %s61_s30 }
  0x18   :  { %s6975_s12 = scalar_lea.vmem %s62_s30, 20480  ;;  %p6980_p11 = scmp.lt.s32.totalorder %s62_s30, %s62_s30 }
  0x19   :  { %p6976_p10 = scmp.ne.s32.totalorder %s62_s30, %s6975_s12  ;;  %p6981_p12 = scmp.lt.s32.totalorder %s6975_s12, %s6975_s12 }
  0x1b   :  { %p6982_p13 = por %p6981_p12, %p6980_p11 }
  0x1d   :  { %p6983_p0 = pnand %p6982_p13, %p6976_p10 }
  0x1f   :  { %6986 = shalt.err (!%p6983_p0)
}
  0x20   :  { %s6996_s5 = smov 256   ;;  %s6997_s13 = smov 16  }
  0x21   :  { %67 = dma.hbm_to_vmem [thread:$0]  %s9442_s9, 20480, %s62_s30, [#allocation5], %s6996_s5, %s6996_s5, %s6997_s13  }
  0x22   :  { %6987 = dma.done.wait [#allocation3], 1280  }
  0x23   :  { %6988 = vsyncadd [#allocation3], 4294966016 }
  0x24   :  { %6989 = dma.done.wait [#allocation5], 23040  }
  0x25   :  { %6990 = vsyncadd [#allocation5], 4294944256  ;;  %vm218_vm0 = vcmask 1045504   ;;  %vm121_vm1 = vcmask 179200   ;;  %v113_v0 = vld [vmem:[%s9434_s1 + $0x10] sm:$0x3f]  ;;  %v479_v42 = vlaneseq }
  0x26   :  { %v112_v1 = vld [vmem:[%s9434_s1 + $0x8] sm:$0xff]  ;;  %6407 = vmatprep.subr.msk.mxu0 %vm218_vm0, %v113_v0  ;;  %v79_v2 = vld [vmem:[%s9433_s0] sm:$0xff]  ;;  %v81_v5 = vld [vmem:[%s9433_s0 + $0x10] sm:$0xff]  ;;  %vm791_vm2 = vcmask 130048   ;;  %vm2959_vm11 = vcmask 257024   ;;  %vm3472_vm12 = vcmask 1041409  }
  0x27   :  { %6408 = vmatpush3.msk.msra.mxu0 %vm218_vm0, %v113_v0  ;;  %v111_v3 = vld [vmem:[%s9434_s1] sm:$0xff]  ;;  %6413 = vmatprep.mubr.msk.f32.mxu0 %vm121_vm1, %v79_v2  ;;  %v80_v4 = vld [vmem:[%s9433_s0 + $0x8] sm:$0xff]  ;;  %v82_v6 = vld [vmem:[%s9433_s0 + $0x18] sm:$0xff]  ;;  %v7216_v47 = vshrl.u32 %v479_v42, 7  ;;  %vm3474_vm13 = vcmask 1042434   ;;  %vm3476_vm14 = vcmask 1043459  }
  0x28   :  { %6409 = vmatprep.subr.mxu0 %v112_v1  ;;  %v83_v7 = vld [vmem:[%s9433_s0 + $0x20] sm:$0xff]  ;;  %v84_v8 = vld [vmem:[%s9433_s0 + $0x28] sm:$0xff]  ;;  %v85_v9 = vld [vmem:[%s9433_s0 + $0x30] sm:$0xff]  ;;  %vm3478_vm15 = vcmask 1044484   ;;  %vm3480_vm0 = vcmask 1045509  }
  0x29   :  { %6410 = vmatpush3.msra.mxu0 %v112_v1  ;;  %v86_v10 = vld [vmem:[%s9433_s0 + $0x38] sm:$0xff]  ;;  %v87_v11 = vld [vmem:[%s9433_s0 + $0x40] sm:$0xff]  ;;  %v88_v12 = vld [vmem:[%s9433_s0 + $0x48] sm:$0xff]  ;;  %9457 = vst [vmem:[#allocation9_spill] sm:$0xff] %v7216_v47  ;;  %vm528_vm3 = vcmp.lt.s32.totalorder %v7216_v47, 2  ;;  %vm1822_vm4 = vcmp.lt.s32.totalorder %v7216_v47, 7 }
  0x2a   :  { %6411 = vmatprep.subr.mxu0 %v111_v3  ;;  %v89_v13 = vld [vmem:[%s9433_s0 + $0x50] sm:$0xff]  ;;  %v90_v14 = vld [vmem:[%s9433_s0 + $0x58] sm:$0xff]  ;;  %v91_v15 = vld [vmem:[%s9433_s0 + $0x60] sm:$0xff]  ;;  %vm675_vm5 = vcmp.lt.s32.totalorder %v7216_v47, 1  ;;  %vm2323_vm6 = vcmp.lt.s32.totalorder %v7216_v47, 6  ;;  %vm708_vm7 = vcmp.ge.s32.totalorder %v7216_v47, 1 }
  0x2b   :  { %6412 = vmatpush3.msra.mxu0 %v111_v3  ;;  %v92_v16 = vld [vmem:[%s9433_s0 + $0x68] sm:$0xff]  ;;  %v93_v17 = vld [vmem:[%s9433_s0 + $0x70] sm:$0xff]  ;;  %v94_v18 = vld [vmem:[%s9433_s0 + $0x78] sm:$0xff]  ;;  %vm561_vm10 = vcmp.ge.s32.totalorder %v7216_v47, 2 }
  0x2c   :  { %6414 = vmatmul.mubr.msk.f32.vlgmr.msra.gmra.mxu0 %vm121_vm1, %v80_v4  ;;  %v95_v19 = vld [vmem:[%s9433_s0 + $0x80] sm:$0xff]  ;;  %v96_v20 = vld [vmem:[%s9433_s0 + $0x88] sm:$0xff]  ;;  %v97_v21 = vld [vmem:[%s9433_s0 + $0x90] sm:$0xff] }
  0x2d   :  { %6416 = vmatprep.mubr.msk.f32.mxu0 %vm121_vm1, %v81_v5  ;;  %v98_v22 = vld [vmem:[%s9433_s0 + $0x98] sm:$0xff]  ;;  %v99_v23 = vld [vmem:[%s9433_s0 + $0xa0] sm:$0xff]  ;;  %v100_v24 = vld [vmem:[%s9433_s0 + $0xa8] sm:$0xff] }
  0x2e   :  { %v101_v25 = vld [vmem:[%s9433_s0 + $0xb0] sm:$0xff]  ;;  %v102_v26 = vld [vmem:[%s9433_s0 + $0xb8] sm:$0xff]  ;;  %v103_v27 = vld [vmem:[%s9433_s0 + $0xc0] sm:$0xff] }
  0x2f   :  { %v104_v28 = vld [vmem:[%s9433_s0 + $0xc8] sm:$0xff]  ;;  %v105_v29 = vld [vmem:[%s9433_s0 + $0xd0] sm:$0xff]  ;;  %v106_v30 = vld [vmem:[%s9433_s0 + $0xd8] sm:$0xff] }
  0x30   :  { %6417 = vmatmul.mubr.msk.f32.gmra.mxu0 %vm121_vm1, %v82_v6  ;;  %v107_v31 = vld [vmem:[%s9433_s0 + $0xe0] sm:$0xff]  ;;  %v108_v32 = vld [vmem:[%s9433_s0 + $0xe8] sm:$0xff]  ;;  %v109_v33 = vld [vmem:[%s9433_s0 + $0xf0] sm:$0xff] }
  0x31   :  { %6419 = vmatprep.mubr.msk.f32.mxu0 %vm121_vm1, %v83_v7  ;;  %v110_v34 = vld [vmem:[%s9433_s0 + $0xf8] sm:$0xff]  ;;  %v1436_v35 = vld [vmem:[#allocation2 + $0x28] sm:$0xff]  ;;  %v1435_v36 = vld [vmem:[#allocation2 + $0x20] sm:$0xff] }
  0x32   :  { %6565 = vmatprep.subr.mxu0 %v1436_v35  ;;  %v790_v37 = vld [vmem:[#allocation2 + $0x18] sm:$0xff]  ;;  %v789_v38 = vld [vmem:[#allocation2 + $0x10] sm:$0xff]  ;;  %v2438_v39 = vld [vmem:[#allocation2 + $0x48] sm:$0xff] }
  0x33   :  { %6566 = vmatpush3.msra.mxu0 %v1436_v35  ;;  %6461 = vmatprep.subr.mxu1 %v790_v37  ;;  %v7206_v40 = vld [vmem:[#allocation2 + $0x8] sm:$0xff]  ;;  %v7212_v41 = vld [vmem:[%s9435_s2] ss:$0 sm:$0xff] }
  0x34   :  { %6420 = vmatmul.mubr.msk.f32.gmra.mxu0 %vm121_vm1, %v84_v8  ;;  %6567 = vmatprep.subr.mxu0 %v1435_v36  ;;  %v2437_v54 = vld [vmem:[#allocation2 + $0x40] sm:$0xff] }
  0x35   :  { %6422 = vmatprep.mubr.msk.f32.mxu0 %vm121_vm1, %v85_v9  ;;  %6568 = vmatpush3.msra.mxu0 %v1435_v36 }
  0x36   :  { %6462 = vmatpush3.msra.mxu1 %v790_v37  ;;  %6669 = vmatprep.subr.mxu0 %v2438_v39 }
  0x37   :  { %6463 = vmatprep.subr.mxu1 %v789_v38 }
  0x38   :  { %6423 = vmatmul.mubr.msk.f32.gmra.mxu0 %vm121_vm1, %v86_v10  ;;  %6464 = vmatpush3.msra.mxu1 %v789_v38 }
  0x39   :  { %6425 = vmatprep.mubr.msk.f32.mxu0 %vm121_vm1, %v87_v11  ;;  %6513 = vmatprep.subr.mxu1 %v7206_v40 }
  0x3c   :  { %6426 = vmatmul.mubr.msk.f32.gmra.mxu0 %vm121_vm1, %v88_v12 }
  0x3d   :  { %6428 = vmatprep.mubr.msk.f32.mxu0 %vm121_vm1, %v89_v13 }
  0x40   :  { %6429 = vmatmul.mubr.msk.f32.gmra.mxu0 %vm121_vm1, %v90_v14 }
  0x41   :  { %6431 = vmatprep.mubr.msk.f32.mxu0 %vm121_vm1, %v91_v15 }
  0x44   :  { %6432 = vmatmul.mubr.msk.f32.gmra.mxu0 %vm121_vm1, %v92_v16 }
  0x45   :  { %6434 = vmatprep.mubr.msk.f32.mxu0 %vm121_vm1, %v93_v17 }
  0x48   :  { %6435 = vmatmul.mubr.msk.f32.gmra.mxu0 %vm121_vm1, %v94_v18 }
  0x49   :  { %6437 = vmatprep.mubr.msk.f32.mxu0 %vm121_vm1, %v95_v19 }
  0x4c   :  { %6438 = vmatmul.mubr.msk.f32.gmra.mxu0 %vm121_vm1, %v96_v20 }
  0x4d   :  { %6440 = vmatprep.mubr.msk.f32.mxu0 %vm121_vm1, %v97_v21 }
  0x50   :  { %6441 = vmatmul.mubr.msk.f32.gmra.mxu0 %vm121_vm1, %v98_v22 }
  0x51   :  { %6443 = vmatprep.mubr.msk.f32.mxu0 %vm121_vm1, %v99_v23 }
  0x54   :  { %6444 = vmatmul.mubr.msk.f32.gmra.mxu0 %vm121_vm1, %v100_v24 }
  0x55   :  { %6446 = vmatprep.mubr.msk.f32.mxu0 %vm121_vm1, %v101_v25 }
  0x58   :  { %6447 = vmatmul.mubr.msk.f32.gmra.mxu0 %vm121_vm1, %v102_v26 }
  0x59   :  { %6449 = vmatprep.mubr.msk.f32.mxu0 %vm121_vm1, %v103_v27 }
  0x5c   :  { %6450 = vmatmul.mubr.msk.f32.gmra.mxu0 %vm121_vm1, %v104_v28 }
  0x5d   :  { %6452 = vmatprep.mubr.msk.f32.mxu0 %vm121_vm1, %v105_v29 }
  0x60   :  { %6453 = vmatmul.mubr.msk.f32.gmra.mxu0 %vm121_vm1, %v106_v30 }
  0x61   :  { %6455 = vmatprep.mubr.msk.f32.mxu0 %vm121_vm1, %v107_v31 }
  0x64   :  { %6456 = vmatmul.mubr.msk.f32.gmra.mxu0 %vm121_vm1, %v108_v32 }
  0x65   :  { %6458 = vmatprep.mubr.msk.f32.mxu0 %vm121_vm1, %v109_v33 }
  0x68   :  { %6459 = vmatmul.mubr.msk.f32.gmra.mxu0 %vm121_vm1, %v110_v34  ;;  %vm3482_vm1 = vcmask 1046534  }
  0xec   :  { %v6415_v43 = vpop.f32.mrf.mxu0 }
  0xed   :  { %v294_v44 = vadd.f32 %v6415_v43, %v7212_v41 }
  0xee   :  { %v288_v45 = vpop.f32.mrf.mxu0 }
  0xef   :  { %v289_v46 = vadd.f32 %v7212_v41, %v288_v45  ;;  %v7218_v48 = vmax.f32 %v294_v44, 0.0 }
  0xf0   :  { %v6418_v49 = vpop.f32.mrf.mxu0 }
  0xf1   :  { %v7220_v50 = vmax.f32 %v289_v46, 0.0  ;;  %v304_v51 = vadd.f32 %v6418_v49, %v7212_v41  ;;  %v497_v57 = vrot.slane %v7218_v48, 6  ;;  %v9448_v0 = vrot.slane %v7218_v48, 1 }
  0xf2   :  { %v298_v52 = vpop.f32.mrf.mxu0 }
  0xf3   :  { %9458 = vst [vmem:[#allocation10_spill] sm:$0xff] %v7220_v50  ;;  %v299_v53 = vadd.f32 %v7212_v41, %v298_v52  ;;  %6569 = vmatprep.mubr.msk.f32.mxu0 %vm791_vm2, %v7220_v50  ;;  %v9446_v56 = vrot.slane %v7220_v50, 6  ;;  %v9447_v58 = vrot.slane %v7220_v50, 1  ;;  %v7235_v60 = vmax.f32 %v304_v51, 0.0 }
  0xf4   :  { %v6421_v55 = vpop.f32.mrf.mxu0  ;;  %6570 = vmatmul.mubr.msk.f32.vlgmr.msra.gmra.mxu0 %vm791_vm2, %v7218_v48 }
  0xf5   :  { %v7232_v59 = vmax.f32 %v299_v53, 0.0  ;;  %6670 = vmatpush3.msra.mxu0 %v2438_v39  ;;  %v314_v61 = vadd.f32 %v6421_v55, %v7212_v41  ;;  %v7242_v63 = vsel %vm528_vm3, %v9446_v56, %v497_v57  ;;  %v7257_v4 = vsel %vm1822_vm4, %v9447_v58, %v9448_v0 }
  0xf6   :  { %v308_v62 = vpop.f32.mrf.mxu0  ;;  %6671 = vmatprep.subr.mxu0 %v2437_v54  ;;  %9459 = vst [vmem:[#allocation11_spill] sm:$0xff] %v7242_v63  ;;  %9460 = vst [vmem:[#allocation12_spill] sm:$0xff] %v7257_v4  ;;  %v499_v9 = vrot.slane %v7235_v60, 6  ;;  %v646_v4 = vrot.slane %v7235_v60, 7 }
  0xf7   :  { %v309_v1 = vadd.f32 %v7212_v41, %v308_v62  ;;  %6572 = vmatprep.mubr.msk.f32.mxu0 %vm791_vm2, %v7232_v59  ;;  %6672 = vmatpush3.msra.mxu0 %v2437_v54  ;;  %v498_v3 = vrot.slane %v7232_v59, 6  ;;  %v7261_v6 = vmax.f32 %v314_v61, 0.0  ;;  %v2293_v0 = vrot.slane %v7232_v59, 2 }
  0xf8   :  { %v6424_v2 = vpop.f32.mrf.mxu0  ;;  %6573 = vmatmul.mubr.msk.f32.gmra.mxu0 %vm791_vm2, %v7235_v60 }
  0xf9   :  { %v7259_v5 = vmax.f32 %v309_v1, 0.0  ;;  %v324_v7 = vadd.f32 %v6424_v2, %v7212_v41  ;;  %v7272_v12 = vsel %vm528_vm3, %v497_v57, %v498_v3  ;;  %v7276_v13 = vsel %vm528_vm3, %v498_v3, %v499_v9 }
  0xfa   :  { %v318_v8 = vpop.f32.mrf.mxu0  ;;  %9461 = vst [vmem:[#allocation13_spill] sm:$0xff] %v7272_v12  ;;  %9462 = vst [vmem:[#allocation14_spill] sm:$0xff] %v7276_v13  ;;  %v501_v19 = vrot.slane %v7261_v6, 6 }
  0xfb   :  { %v319_v10 = vadd.f32 %v7212_v41, %v318_v8  ;;  %6575 = vmatprep.mubr.msk.f32.mxu0 %vm791_vm2, %v7259_v5  ;;  %v500_v14 = vrot.slane %v7259_v5, 6  ;;  %v7281_v16 = vmax.f32 %v324_v7, 0.0 }
  0xfc   :  { %v6427_v11 = vpop.f32.mrf.mxu0  ;;  %6576 = vmatmul.mubr.msk.f32.gmra.mxu0 %vm791_vm2, %v7261_v6 }
  0xfd   :  { %v7279_v15 = vmax.f32 %v319_v10, 0.0  ;;  %v334_v17 = vadd.f32 %v6427_v11, %v7212_v41  ;;  %v7292_v22 = vsel %vm528_vm3, %v499_v9, %v500_v14  ;;  %v7296_v23 = vsel %vm528_vm3, %v500_v14, %v501_v19 }
  0xfe   :  { %v328_v18 = vpop.f32.mrf.mxu0  ;;  %9463 = vst [vmem:[#allocation15_spill] sm:$0xff] %v7292_v22  ;;  %9464 = vst [vmem:[#allocation16_spill] sm:$0xff] %v7296_v23  ;;  %v503_v29 = vrot.slane %v7281_v16, 6 }
  0xff   :  { %v329_v20 = vadd.f32 %v7212_v41, %v328_v18  ;;  %6578 = vmatprep.mubr.msk.f32.mxu0 %vm791_vm2, %v7279_v15  ;;  %v502_v24 = vrot.slane %v7279_v15, 6  ;;  %v7301_v26 = vmax.f32 %v334_v17, 0.0 }
 0x100   :  { %v6430_v21 = vpop.f32.mrf.mxu0  ;;  %6579 = vmatmul.mubr.msk.f32.gmra.mxu0 %vm791_vm2, %v7281_v16 }
 0x101   :  { %v7299_v25 = vmax.f32 %v329_v20, 0.0  ;;  %v344_v27 = vadd.f32 %v6430_v21, %v7212_v41  ;;  %v7312_v32 = vsel %vm528_vm3, %v501_v19, %v502_v24  ;;  %v7316_v33 = vsel %vm528_vm3, %v502_v24, %v503_v29 }
 0x102   :  { %v338_v28 = vpop.f32.mrf.mxu0  ;;  %9465 = vst [vmem:[#allocation17_spill] sm:$0xff] %v7312_v32  ;;  %9466 = vst [vmem:[#allocation18_spill] sm:$0xff] %v7316_v33  ;;  %v505_v39 = vrot.slane %v7301_v26, 6  ;;  %v2297_v32 = vrot.slane %v7279_v15, 2 }
 0x103   :  { %v339_v30 = vadd.f32 %v7212_v41, %v338_v28  ;;  %6581 = vmatprep.mubr.msk.f32.mxu0 %vm791_vm2, %v7299_v25  ;;  %v504_v34 = vrot.slane %v7299_v25, 6  ;;  %v7321_v36 = vmax.f32 %v344_v27, 0.0 }
 0x104   :  { %v6433_v31 = vpop.f32.mrf.mxu0  ;;  %6582 = vmatmul.mubr.msk.f32.gmra.mxu0 %vm791_vm2, %v7301_v26 }
 0x105   :  { %v7319_v35 = vmax.f32 %v339_v30, 0.0  ;;  %v354_v37 = vadd.f32 %v6433_v31, %v7212_v41  ;;  %v7332_v44 = vsel %vm528_vm3, %v503_v29, %v504_v34  ;;  %v7336_v45 = vsel %vm528_vm3, %v504_v34, %v505_v39 }
 0x106   :  { %v348_v38 = vpop.f32.mrf.mxu0  ;;  %9467 = vst [vmem:[#allocation19_spill] sm:$0xff] %v7332_v44  ;;  %9468 = vst [vmem:[#allocation20_spill] sm:$0xff] %v7336_v45  ;;  %v507_v54 = vrot.slane %v7321_v36, 6 }
 0x107   :  { %v349_v42 = vadd.f32 %v7212_v41, %v348_v38  ;;  %6584 = vmatprep.mubr.msk.f32.mxu0 %vm791_vm2, %v7319_v35  ;;  %v506_v46 = vrot.slane %v7319_v35, 6  ;;  %v7341_v51 = vmax.f32 %v354_v37, 0.0 }
 0x108   :  { %v6436_v43 = vpop.f32.mrf.mxu0  ;;  %6585 = vmatmul.mubr.msk.f32.gmra.mxu0 %vm791_vm2, %v7321_v36 }
 0x109   :  { %v7339_v49 = vmax.f32 %v349_v42, 0.0  ;;  %v364_v52 = vadd.f32 %v6436_v43, %v7212_v41  ;;  %v7352_v61 = vsel %vm528_vm3, %v505_v39, %v506_v46  ;;  %v7356_v62 = vsel %vm528_vm3, %v506_v46, %v507_v54 }
 0x10a   :  { %v358_v53 = vpop.f32.mrf.mxu0  ;;  %9469 = vst [vmem:[#allocation21_spill] sm:$0xff] %v7352_v61  ;;  %9470 = vst [vmem:[#allocation22_spill] sm:$0xff] %v7356_v62  ;;  %v509_v9 = vrot.slane %v7341_v51, 6 }
 0x10b   :  { %v359_v55 = vadd.f32 %v7212_v41, %v358_v53  ;;  %6587 = vmatprep.mubr.msk.f32.mxu0 %vm791_vm2, %v7339_v49  ;;  %v508_v1 = vrot.slane %v7339_v49, 6  ;;  %v7361_v3 = vmax.f32 %v364_v52, 0.0 }
 0x10c   :  { %v6439_v57 = vpop.f32.mrf.mxu0  ;;  %6588 = vmatmul.mubr.msk.f32.gmra.mxu0 %vm791_vm2, %v7341_v51 }
 0x10d   :  { %v7359_v2 = vmax.f32 %v359_v55, 0.0  ;;  %v374_v7 = vadd.f32 %v6439_v57, %v7212_v41  ;;  %v7372_v14 = vsel %vm528_vm3, %v507_v54, %v508_v1  ;;  %v7376_v17 = vsel %vm528_vm3, %v508_v1, %v509_v9 }
 0x10e   :  { %v368_v8 = vpop.f32.mrf.mxu0  ;;  %9471 = vst [vmem:[#allocation23_spill] sm:$0xff] %v7372_v14  ;;  %9472 = vst [vmem:[#allocation24_spill] sm:$0xff] %v7376_v17  ;;  %v511_v27 = vrot.slane %v7361_v3, 6 }
 0x10f   :  { %v369_v10 = vadd.f32 %v7212_v41, %v368_v8  ;;  %6590 = vmatprep.mubr.msk.f32.mxu0 %vm791_vm2, %v7359_v2  ;;  %v510_v18 = vrot.slane %v7359_v2, 6  ;;  %v7381_v20 = vmax.f32 %v374_v7, 0.0 }
 0x110   :  { %v6442_v11 = vpop.f32.mrf.mxu0  ;;  %6591 = vmatmul.mubr.msk.f32.gmra.mxu0 %vm791_vm2, %v7361_v3 }
 0x111   :  { %v7379_v19 = vmax.f32 %v369_v10, 0.0  ;;  %v384_v21 = vadd.f32 %v6442_v11, %v7212_v41  ;;  %v7392_v30 = vsel %vm528_vm3, %v509_v9, %v510_v18  ;;  %v7396_v31 = vsel %vm528_vm3, %v510_v18, %v511_v27 }
 0x112   :  { %v378_v24 = vpop.f32.mrf.mxu0  ;;  %9473 = vst [vmem:[#allocation25_spill] sm:$0xff] %v7392_v30  ;;  %9474 = vst [vmem:[#allocation26_spill] sm:$0xff] %v7396_v31  ;;  %v513_v43 = vrot.slane %v7381_v20, 6  ;;  %v9449_v9 = vrot.slane %v7220_v50, 7  ;;  %v9445_v10 = vrot.slane %v7220_v50, 2 }
 0x113   :  { %v379_v28 = vadd.f32 %v7212_v41, %v378_v24  ;;  %6593 = vmatprep.mubr.msk.f32.mxu0 %vm791_vm2, %v7379_v19  ;;  %v512_v34 = vrot.slane %v7379_v19, 6  ;;  %v7401_v38 = vmax.f32 %v384_v21, 0.0 }
 0x114   :  { %v6445_v29 = vpop.f32.mrf.mxu0  ;;  %6594 = vmatmul.mubr.msk.f32.gmra.mxu0 %vm791_vm2, %v7381_v20 }
 0x115   :  { %v7399_v37 = vmax.f32 %v379_v28, 0.0  ;;  %v394_v39 = vadd.f32 %v6445_v29, %v7212_v41  ;;  %v7412_v53 = vsel %vm528_vm3, %v511_v27, %v512_v34  ;;  %v7416_v54 = vsel %vm528_vm3, %v512_v34, %v513_v43 }
 0x116   :  { %v388_v42 = vpop.f32.mrf.mxu0  ;;  %9475 = vst [vmem:[#allocation27_spill] sm:$0xff] %v7412_v53  ;;  %9476 = vst [vmem:[#allocation28_spill] sm:$0xff] %v7416_v54  ;;  %v2292_v27 = vrot.slane %v7218_v48, 2  ;;  %v644_v28 = vrot.slane %v7218_v48, 7 }
 0x117   :  { %v389_v46 = vadd.f32 %v7212_v41, %v388_v42  ;;  %6596 = vmatprep.mubr.msk.f32.mxu0 %vm791_vm2, %v7399_v37  ;;  %v7420_v57 = vmax.f32 %v394_v39, 0.0  ;;  %v514_v18 = vrot.slane %v7399_v37, 6  ;;  %v515_v42 = vrot.slane %v7401_v38, 6 }
 0x118   :  { %v6448_v52 = vpop.f32.mrf.mxu0  ;;  %6597 = vmatmul.mubr.msk.f32.gmra.mxu0 %vm791_vm2, %v7401_v38  ;;  %v7507_v53 = vsel %vm2323_vm6, %v2292_v27, %v2293_v0 }
 0x119   :  { %v7418_v55 = vmax.f32 %v389_v46, 0.0  ;;  %v404_v1 = vadd.f32 %v6448_v52, %v7212_v41  ;;  %v7449_v52 = vsel %vm2323_vm6, %v9445_v10, %v2292_v27  ;;  %v7469_v10 = vsel %vm528_vm3, %v514_v18, %v515_v42 }
 0x11a   :  { %v398_v7 = vpop.f32.mrf.mxu0  ;;  %9478 = vst [vmem:[#allocation30_spill] sm:$0xff] %v7469_v10 }
 0x11b   :  { %v399_v8 = vadd.f32 %v7212_v41, %v398_v7  ;;  %6599 = vmatprep.mubr.msk.f32.mxu0 %vm791_vm2, %v7418_v55  ;;  %v516_v21 = vrot.slane %v7418_v55, 6  ;;  %v7438_v29 = vmax.f32 %v404_v1, 0.0  ;;  %v7455_v1 = vsel %vm675_vm5, %v9449_v9, %v644_v28 }
 0x11c   :  { %v6451_v11 = vpop.f32.mrf.mxu0  ;;  %6600 = vmatmul.mubr.msk.f32.gmra.mxu0 %vm791_vm2, %v7420_v57  ;;  %v7458_v7 = vadd.s32 120, %v7216_v47  ;;  %v2294_v9 = vrot.slane %v7235_v60, 2 }
 0x11d   :  { %v7434_v24 = vmax.f32 %v399_v8, 0.0  ;;  %v414_v34 = vadd.f32 %v6451_v11, %v7212_v41  ;;  %v645_v11 = vrot.slane %v7232_v59, 7  ;;  %v7473_v56 = vsel %vm528_vm3, %v515_v42, %v516_v21 }
 0x11e   :  { %v408_v39 = vpop.f32.mrf.mxu0  ;;  %9479 = vst [vmem:[#allocation31_spill] sm:$0xff] %v7473_v56  ;;  %v2295_v56 = vrot.slane %v7259_v5, 2  ;;  %v7511_v17 = vsel %vm2323_vm6, %v2293_v0, %v2294_v9  ;;  %v519_v62 = vrot.slane %v7438_v29, 6  ;;  %vm1870_vm8 = vcmp.lt.s32.totalorder %v7458_v7, 127 }
 0x11f   :  { %v409_v46 = vadd.f32 %v7212_v41, %v408_v39  ;;  %6602 = vmatprep.mubr.msk.f32.mxu0 %vm791_vm2, %v7434_v24  ;;  %v7465_v39 = vsel %vm528_vm3, %v513_v43, %v514_v18  ;;  %v7480_v54 = vmax.f32 %v414_v34, 0.0  ;;  %v517_v18 = vrot.slane %v7420_v57, 6 }
 0x120   :  { %v6454_v8 = vpop.f32.mrf.mxu0  ;;  %6603 = vmatmul.mubr.msk.f32.gmra.mxu0 %vm791_vm2, %v7438_v29  ;;  %9477 = vst [vmem:[#allocation29_spill] sm:$0xff] %v7465_v39  ;;  %v518_v10 = vrot.slane %v7434_v24, 6  ;;  %vm2371_vm9 = vcmp.lt.s32.totalorder %v7458_v7, 126  ;;  %v9521_v7 = vld [vmem:[#allocation16_spill] sm:$0xff] }
 0x121   :  { %v7475_v58 = vmax.f32 %v409_v46, 0.0  ;;  %v424_v43 = vadd.f32 %v6454_v8, %v7212_v41  ;;  %v647_v46 = vrot.slane %v7259_v5, 7  ;;  %v7495_v8 = vsel %vm675_vm5, %v644_v28, %v645_v11 }
 0x122   :  { %v418_v39 = vpop.f32.mrf.mxu0  ;;  %v7515_v28 = vsel %vm675_vm5, %v645_v11, %v646_v4  ;;  %v7532_v11 = vsel %vm2323_vm6, %v2294_v9, %v2295_v56  ;;  %v7540_v61 = vsel %vm528_vm3, %v517_v18, %v518_v10 }
 0x123   :  { %v419_v42 = vadd.f32 %v7212_v41, %v418_v39  ;;  %6605 = vmatprep.mubr.msk.f32.mxu0 %vm791_vm2, %v7475_v58  ;;  %v7499_v39 = vsel %vm528_vm3, %v516_v21, %v517_v18  ;;  %v520_v31 = vrot.slane %v7475_v58, 6  ;;  %v7517_v21 = vmax.f32 %v424_v43, 0.0  ;;  %9481 = vst [vmem:[#allocation33_spill] sm:$0xff] %v7540_v61 }
 0x124   :  { %v6457_v34 = vpop.f32.mrf.mxu0  ;;  %6606 = vmatmul.mubr.msk.f32.gmra.mxu0 %vm791_vm2, %v7480_v54  ;;  %9480 = vst [vmem:[#allocation32_spill] sm:$0xff] %v7499_v39  ;;  %v7528_v0 = vsel %vm675_vm5, %v646_v4, %v647_v46  ;;  %v648_v43 = vrot.slane %v7261_v6, 7  ;;  %v7544_v4 = vsel %vm528_vm3, %v518_v10, %v519_v62 }
 0x125   :  { %v7503_v30 = vmax.f32 %v419_v42, 0.0  ;;  %v434_v39 = vadd.f32 %v6457_v34, %v7212_v41  ;;  %v2296_v42 = vrot.slane %v7261_v6, 2  ;;  %9482 = vst [vmem:[#allocation34_spill] sm:$0xff] %v7544_v4  ;;  %v7548_v9 = vsel %vm528_vm3, %v519_v62, %v520_v31 }
 0x126   :  { %v428_v14 = vpop.f32.mrf.mxu0  ;;  %9483 = vst [vmem:[#allocation35_spill] sm:$0xff] %v7548_v9  ;;  %v7562_v10 = vsel %vm675_vm5, %v647_v46, %v648_v43  ;;  %v2298_v62 = vrot.slane %v7281_v16, 2  ;;  %v2299_v4 = vrot.slane %v7299_v25, 2 }
 0x127   :  { %v429_v27 = vadd.f32 %v7212_v41, %v428_v14  ;;  %6608 = vmatprep.mubr.msk.f32.mxu0 %vm791_vm2, %v7503_v30  ;;  %v649_v14 = vrot.slane %v7279_v15, 7  ;;  %v7555_v33 = vsel %vm2323_vm6, %v2295_v56, %v2296_v42  ;;  %v7558_v18 = vmax.f32 %v434_v39, 0.0 }
 0x128   :  { %v6460_v34 = vpop.f32.mrf.mxu0  ;;  %6609 = vmatmul.mubr.msk.f32.gmra.mxu0 %vm791_vm2, %v7517_v21  ;;  %v650_v56 = vrot.slane %v7281_v16, 7  ;;  %v651_v39 = vrot.slane %v7299_v25, 7  ;;  %v7590_v22 = vsel %vm2323_vm6, %v2296_v42, %v2297_v32  ;;  %v9485_v42 = vrot.slane %v7220_v50, 7 }
 0x129   :  { %v7550_v45 = vmax.f32 %v429_v27, 0.0  ;;  %v444_v44 = vadd.f32 %v6460_v34, %v7212_v41  ;;  %v521_v27 = vrot.slane %v7480_v54, 6  ;;  %v7577_v46 = vsel %vm675_vm5, %v648_v43, %v649_v14 }
 0x12a   :  { %v438_v61 = vpop.f32.mrf.mxu0  ;;  %v7594_v43 = vsel %vm2323_vm6, %v2297_v32, %v2298_v62  ;;  %v7598_v13 = vsel %vm675_vm5, %v649_v14, %v650_v56  ;;  %v7613_v14 = vsel %vm675_vm5, %v650_v56, %v651_v39  ;;  %v7626_v50 = vsel %vm2323_vm6, %v2298_v62, %v2299_v4 }
 0x12b   :  { %v7566_v9 = vmax.f32 %v444_v44, 0.0  ;;  %v439_v34 = vadd.f32 %v7212_v41, %v438_v61  ;;  %6611 = vmatprep.mubr.msk.f32.mxu0 %vm791_vm2, %v7550_v45  ;;  %v7582_v44 = vsel %vm528_vm3, %v520_v31, %v521_v27  ;;  %v522_v41 = vrot.slane %v7503_v30, 6 }
 0x12c   :  { %6612 = vmatmul.mubr.msk.f32.gmra.mxu0 %vm791_vm2, %v7558_v18  ;;  %9484 = vst [vmem:[#allocation36_spill] sm:$0xff] %v7582_v44  ;;  %v523_v44 = vrot.slane %v7517_v21, 6  ;;  %v9453_v31 = vrot.slane %v7301_v26, 7 }
 0x12d   :  { %v7585_v61 = vmax.f32 %v439_v34, 0.0  ;;  %v9452_v23 = vrot.slane %v7566_v9, 7  ;;  %v524_v34 = vrot.slane %v7550_v45, 6  ;;  %v7618_v12 = vsel %vm528_vm3, %v521_v27, %v522_v41 }
 0x12e   :  { %v7636_v27 = vsel %vm528_vm3, %v522_v41, %v523_v44  ;;  %v7645_v62 = vsel %vm675_vm5, %v651_v39, %v9453_v31  ;;  %v525_v41 = vrot.slane %v7558_v18, 6 }
 0x12f   :  { %6614 = vmatprep.mubr.msk.f32.mxu0 %vm791_vm2, %v7585_v61  ;;  %v707_v32 = vsel %vm675_vm5, %v9452_v23, %v9485_v42  ;;  %v9486_v42 = vrot.slane %v7301_v26, 2  ;;  %v641_v23 = vld [vmem:[#allocation2] sm:$0xff]  ;;  %v7657_v39 = vsel %vm528_vm3, %v523_v44, %v524_v34  ;;  %v9489_v44 = vrot.slane %v7235_v60, 1 }
 0x130   :  { %6615 = vmatmul.mubr.msk.f32.gmra.mxu0 %vm791_vm2, %v7566_v9  ;;  %v756_v63 = vsel %vm708_vm7, %v707_v32, 0.0 }
 0x131   :  { %v7632_v56 = vsel %vm2323_vm6, %v2299_v4, %v9486_v42  ;;  %6465 = vmatprep.mubr.msk.f32.mxu1 %vm791_vm2, %v756_v63  ;;  %6673 = vmatprep.mubr.msk.f32.mxu0 %vm791_vm2, %v7449_v52  ;;  %v9454_v52 = vrot.slane %v7566_v9, 6  ;;  %v7663_v42 = vld [vmem:[#allocation2 + $0x38] sm:$0xff]  ;;  %v526_v4 = vrot.slane %v7585_v61, 6  ;;  %v9488_v63 = vrot.slane %v7218_v48, 1 }
 0x132   :  { %6466 = vmatmul.mubr.msk.f32.vlgmr.msra.gmra.mxu1 %vm791_vm2, %v7455_v1  ;;  %v9487_v1 = vrot.slane %v7232_v59, 1  ;;  %v7687_v48 = vsel %vm528_vm3, %v524_v34, %v525_v41  ;;  %v1797_v59 = vrot.slane %v7281_v16, 1  ;;  %v1798_v16 = vrot.slane %v7299_v25, 1 }
 0x133   :  { %6514 = vmatpush3.msra.mxu1 %v7206_v40  ;;  %6468 = vmatprep.mubr.msk.f32.mxu1 %vm791_vm2, %v7495_v8  ;;  %v1794_v8 = vrot.slane %v7259_v5, 1  ;;  %v7696_v5 = vsel %vm528_vm3, %v525_v41, %v526_v4  ;;  %v1799_v34 = vrot.slane %v7301_v26, 1 }
 0x134   :  { %v7672_v31 = vsel %vm1822_vm4, %v9488_v63, %v9487_v1  ;;  %v9490_v32 = vmov %v9487_v1  ;;  %6674 = vmatmul.mubr.msk.f32.vlgmr.msra.gmra.mxu0 %vm791_vm2, %v7507_v53  ;;  %6515 = vmatprep.subr.mxu1 %v641_v23  ;;  %v1795_v63 = vrot.slane %v7261_v6, 1  ;;  %v1796_v1 = vrot.slane %v7279_v15, 1 }
 0x135   :  { %v7680_v40 = vsel %vm1822_vm4, %v9490_v32, %v9489_v44  ;;  %6676 = vmatprep.mubr.msk.f32.mxu0 %vm791_vm2, %v7511_v17  ;;  %6516 = vmatpush3.msra.mxu1 %v641_v23  ;;  %v7702_v53 = vsel %vm528_vm3, %v526_v4, %v9454_v52  ;;  %v9491_v6 = vmov %v9489_v44  ;;  %v7731_v25 = vsel %vm1822_vm4, %v1797_v59, %v1798_v16 }
 0x136   :  { %v7708_v15 = vsel %vm1822_vm4, %v9491_v6, %v1794_v8  ;;  %6469 = vmatmul.mubr.msk.f32.gmra.mxu1 %vm791_vm2, %v7515_v28  ;;  %6617 = vmatprep.subr.mxu1 %v7663_v42  ;;  %v7716_v23 = vsel %vm1822_vm4, %v1794_v8, %v1795_v63  ;;  %v7720_v17 = vsel %vm1822_vm4, %v1795_v63, %v1796_v1  ;;  %v1800_v28 = vrot.slane %v7319_v35, 1 }
 0x137   :  { %v7724_v60 = vsel %vm1822_vm4, %v1796_v1, %v1797_v59  ;;  %6471 = vmatprep.mubr.msk.f32.mxu1 %vm791_vm2, %v7528_v0  ;;  %v1801_v32 = vrot.slane %v7321_v36, 1  ;;  %v1802_v4 = vrot.slane %v7339_v49, 1  ;;  %v7740_v41 = vsel %vm1822_vm4, %v1798_v16, %v1799_v34 }
 0x138   :  { %6677 = vmatmul.mubr.msk.f32.gmra.mxu0 %vm791_vm2, %v7532_v11  ;;  %v1803_v44 = vrot.slane %v7341_v51, 1  ;;  %v1804_v0 = vrot.slane %v7359_v2, 1  ;;  %v1805_v8 = vrot.slane %v7361_v3, 1  ;;  %v7749_v63 = vsel %vm1822_vm4, %v1799_v34, %v1800_v28 }
 0x139   :  { %6679 = vmatprep.mubr.msk.f32.mxu0 %vm791_vm2, %v7555_v33  ;;  %v7753_v11 = vsel %vm1822_vm4, %v1800_v28, %v1801_v32  ;;  %v7757_v1 = vsel %vm1822_vm4, %v1801_v32, %v1802_v4  ;;  %v1806_v59 = vrot.slane %v7379_v19, 1  ;;  %v1807_v34 = vrot.slane %v7381_v20, 1 }
 0x13a   :  { %6472 = vmatmul.mubr.msk.f32.gmra.mxu1 %vm791_vm2, %v7562_v10  ;;  %v7764_v33 = vsel %vm1822_vm4, %v1802_v4, %v1803_v44  ;;  %v7768_v6 = vsel %vm1822_vm4, %v1803_v44, %v1804_v0  ;;  %v7772_v16 = vsel %vm1822_vm4, %v1804_v0, %v1805_v8  ;;  %v1808_v28 = vrot.slane %v7399_v37, 1 }
 0x13b   :  { %6474 = vmatprep.mubr.msk.f32.mxu1 %vm791_vm2, %v7577_v46  ;;  %v1838_v10 = vsel %vm1822_vm4, %v1805_v8, %v1806_v59  ;;  %v1809_v32 = vrot.slane %v7401_v38, 1  ;;  %v1810_v4 = vrot.slane %v7418_v55, 1  ;;  %v7790_v0 = vsel %vm1822_vm4, %v1806_v59, %v1807_v34 }
 0x13c   :  { %6680 = vmatmul.mubr.msk.f32.gmra.mxu0 %vm791_vm2, %v7590_v22  ;;  %v7786_v44 = vsel %vm1870_vm8, %v1838_v10, 0.0  ;;  %v1811_v46 = vrot.slane %v7420_v57, 1  ;;  %v1812_v8 = vrot.slane %v7434_v24, 1  ;;  %v7798_v52 = vsel %vm1822_vm4, %v1807_v34, %v1808_v28 }
 0x13d   :  { %6682 = vmatprep.mubr.msk.f32.mxu0 %vm791_vm2, %v7594_v43  ;;  %v7802_v22 = vsel %vm1822_vm4, %v1808_v28, %v1809_v32  ;;  %v7806_v10 = vsel %vm1822_vm4, %v1809_v32, %v1810_v4  ;;  %v1813_v59 = vrot.slane %v7438_v29, 1  ;;  %v1814_v28 = vrot.slane %v7475_v58, 1 }
 0x13e   :  { %9492 = vst [vmem:[#allocation37_spill] sm:$0xff] %v7802_v22  ;;  %6475 = vmatmul.mubr.msk.f32.gmra.mxu1 %vm791_vm2, %v7598_v13  ;;  %v7813_v43 = vsel %vm1822_vm4, %v1810_v4, %v1811_v46  ;;  %v7817_v34 = vsel %vm1822_vm4, %v1811_v46, %v1812_v8  ;;  %v1815_v22 = vrot.slane %v7480_v54, 1  ;;  %v1816_v13 = vrot.slane %v7503_v30, 1 }
 0x13f   :  { %9493 = vst [vmem:[#allocation38_spill] sm:$0xff] %v7813_v43  ;;  %9494 = vst [vmem:[#allocation39_spill] sm:$0xff] %v7817_v34  ;;  %6477 = vmatprep.mubr.msk.f32.mxu1 %vm791_vm2, %v7613_v14  ;;  %v7825_v32 = vsel %vm1822_vm4, %v1812_v8, %v1813_v59  ;;  %v1817_v4 = vrot.slane %v7517_v21, 1  ;;  %v1818_v43 = vrot.slane %v7550_v45, 1  ;;  %v7834_v46 = vsel %vm1822_vm4, %v1813_v59, %v1814_v28 }
 0x140   :  { %9495 = vst [vmem:[#allocation40_spill] sm:$0xff] %v7825_v32  ;;  %6683 = vmatmul.mubr.msk.f32.gmra.mxu0 %vm791_vm2, %v7626_v50  ;;  %v7838_v14 = vsel %vm1822_vm4, %v1814_v28, %v1815_v22  ;;  %v1819_v8 = vrot.slane %v7558_v18, 1  ;;  %v1820_v32 = vrot.slane %v7585_v61, 1  ;;  %v7846_v34 = vsel %vm1822_vm4, %v1815_v22, %v1816_v13 }
 0x141   :  { %9496 = vst [vmem:[#allocation41_spill] sm:$0xff] %v7838_v14  ;;  %6685 = vmatprep.mubr.msk.f32.mxu0 %vm791_vm2, %v7632_v56  ;;  %9497 = vst [vmem:[#allocation42_spill] sm:$0xff] %v7846_v34  ;;  %v7850_v50 = vsel %vm1822_vm4, %v1816_v13, %v1817_v4  ;;  %v7854_v59 = vsel %vm1822_vm4, %v1817_v4, %v1818_v43  ;;  %v1821_v28 = vrot.slane %v7566_v9, 1  ;;  %v9500_v14 = vrot.slane %v7319_v35, 7 }
 0x142   :  { %9498 = vst [vmem:[#allocation43_spill] sm:$0xff] %v7850_v50  ;;  %9499 = vst [vmem:[#allocation44_spill] sm:$0xff] %v7854_v59  ;;  %6478 = vmatmul.mubr.msk.f32.gmra.mxu1 %vm791_vm2, %v7645_v62  ;;  %v9501_v56 = vrot.slane %v7301_v26, 7  ;;  %v655_v34 = vrot.slane %v7339_v49, 7  ;;  %v7868_v13 = vsel %vm1822_vm4, %v1818_v43, %v1819_v8  ;;  %v7872_v4 = vsel %vm1822_vm4, %v1819_v8, %v1820_v32  ;;  %v9505_v43 = vld [vmem:[#allocation10_spill] sm:$0xff] }
 0x143   :  { %9502 = vst [vmem:[#allocation45_spill] sm:$0xff] %v7868_v13  ;;  %v9503_v62 = vrot.slane %v7319_v35, 2  ;;  %v9504_v59 = vrot.slane %v7301_v26, 2  ;;  %v9506_v13 = vrot.slane %v9505_v43, 1 }
 0x144   :  { %v697_v22 = vsel %vm675_vm5, %v9501_v56, %v9500_v14  ;;  %v2303_v14 = vrot.slane %v7339_v49, 2  ;;  %v7884_v56 = vsel %vm1822_vm4, %v1820_v32, %v1821_v28  ;;  %v9509_v32 = vrot.slane %v7321_v36, 7 }
 0x145   :  { %6480 = vmatprep.mubr.msk.f32.mxu1 %vm791_vm2, %v697_v22  ;;  %v2345_v50 = vsel %vm2323_vm6, %v9504_v59, %v9503_v62  ;;  %v1854_v8 = vsel %vm1822_vm4, %v1821_v28, %v9506_v13  ;;  %v9507_v22 = vrot.slane %v7321_v36, 2  ;;  %v9508_v26 = vmov %v9503_v62 }
 0x146   :  { %6686 = vmatmul.mubr.msk.f32.gmra.mxu0 %vm791_vm2, %v2345_v50  ;;  %v7899_v49 = vsel %vm1870_vm8, %v1854_v8, 0.0  ;;  %v9510_v62 = vrot.slane %v7319_v35, 7  ;;  %v9511_v28 = vmov %v9509_v32  ;;  %v657_v8 = vrot.slane %v7359_v2, 7 }
 0x147   :  { %v2344_v59 = vsel %vm2323_vm6, %v9508_v26, %v9507_v22  ;;  %v695_v13 = vsel %vm675_vm5, %v9511_v28, %v655_v34  ;;  %v2304_v22 = vrot.slane %v7341_v51, 2  ;;  %v9512_v26 = vrot.slane %v7321_v36, 2 }
 0x148   :  { %6688 = vmatprep.mubr.msk.f32.mxu0 %vm791_vm2, %v2344_v59  ;;  %v696_v50 = vsel %vm675_vm5, %v9510_v62, %v9509_v32  ;;  %v656_v59 = vrot.slane %v7341_v51, 7  ;;  %v2305_v32 = vrot.slane %v7359_v2, 2  ;;  %v659_v62 = vrot.slane %v7379_v19, 7 }
 0x149   :  { %6481 = vmatmul.mubr.msk.f32.gmra.mxu1 %vm791_vm2, %v696_v50  ;;  %v2343_v35 = vsel %vm2323_vm6, %v9512_v26, %v2303_v14  ;;  %v2342_v50 = vsel %vm2323_vm6, %v2303_v14, %v2304_v22  ;;  %v2307_v28 = vrot.slane %v7379_v19, 2  ;;  %v2306_v2 = vrot.slane %v7361_v3, 2 }
 0x14a   :  { %6483 = vmatprep.mubr.msk.f32.mxu1 %vm791_vm2, %v695_v13  ;;  %6689 = vmatmul.mubr.msk.f32.gmra.mxu0 %vm791_vm2, %v2343_v35  ;;  %v694_v36 = vsel %vm675_vm5, %v655_v34, %v656_v59  ;;  %v658_v13 = vrot.slane %v7361_v3, 7  ;;  %v693_v51 = vsel %vm675_vm5, %v656_v59, %v657_v8  ;;  %v2341_v14 = vsel %vm2323_vm6, %v2304_v22, %v2305_v32 }
 0x14b   :  { %6691 = vmatprep.mubr.msk.f32.mxu0 %vm791_vm2, %v2342_v50  ;;  %v2340_v34 = vsel %vm2323_vm6, %v2305_v32, %v2306_v2  ;;  %v2339_v26 = vsel %vm2323_vm6, %v2306_v2, %v2307_v28  ;;  %v2308_v35 = vrot.slane %v7381_v20, 2  ;;  %v661_v59 = vrot.slane %v7399_v37, 7 }
 0x14c   :  { %v691_v19 = vsel %vm675_vm5, %v658_v13, %v659_v62  ;;  %v692_v3 = vsel %vm675_vm5, %v657_v8, %v658_v13  ;;  %v2419_v32 = vsel %vm2371_vm9, %v2339_v26, 0.0  ;;  %v660_v50 = vrot.slane %v7381_v20, 7 }
 0x14d   :  { %6484 = vmatmul.mubr.msk.f32.gmra.mxu1 %vm791_vm2, %v694_v36  ;;  %v772_v22 = vsel %vm708_vm7, %v691_v19, 0.0  ;;  %v2309_v36 = vrot.slane %v7399_v37, 2  ;;  %v2338_v8 = vsel %vm2323_vm6, %v2307_v28, %v2308_v35  ;;  %v2310_v2 = vrot.slane %v7401_v38, 2 }
 0x14e   :  { %6486 = vmatprep.mubr.msk.f32.mxu1 %vm791_vm2, %v693_v51  ;;  %6692 = vmatmul.mubr.msk.f32.gmra.mxu0 %vm791_vm2, %v2341_v14  ;;  %v690_v13 = vsel %vm675_vm5, %v659_v62, %v660_v50  ;;  %v689_v51 = vsel %vm675_vm5, %v660_v50, %v661_v59  ;;  %v663_v20 = vrot.slane %v7418_v55, 7  ;;  %v662_v28 = vrot.slane %v7401_v38, 7 }
 0x14f   :  { %6694 = vmatprep.mubr.msk.f32.mxu0 %vm791_vm2, %v2340_v34  ;;  %v2337_v37 = vsel %vm2323_vm6, %v2308_v35, %v2309_v36  ;;  %v2311_v14 = vrot.slane %v7418_v55, 2  ;;  %v2336_v62 = vsel %vm2323_vm6, %v2309_v36, %v2310_v2  ;;  %v2312_v26 = vrot.slane %v7420_v57, 2 }
 0x150   :  { %v688_v19 = vsel %vm675_vm5, %v661_v59, %v662_v28  ;;  %v687_v34 = vsel %vm675_vm5, %v662_v28, %v663_v20  ;;  %v665_v38 = vrot.slane %v7434_v24, 7  ;;  %v2314_v50 = vrot.slane %v7438_v29, 2 }
 0x151   :  { %6487 = vmatmul.mubr.msk.f32.gmra.mxu1 %vm791_vm2, %v692_v3  ;;  %v2335_v55 = vsel %vm2323_vm6, %v2310_v2, %v2311_v14  ;;  %v664_v3 = vrot.slane %v7420_v57, 7  ;;  %v2334_v35 = vsel %vm2323_vm6, %v2311_v14, %v2312_v26  ;;  %v667_v57 = vrot.slane %v7475_v58, 7 }
 0x152   :  { %6489 = vmatprep.mubr.msk.f32.mxu1 %vm791_vm2, %v772_v22  ;;  %6695 = vmatmul.mubr.msk.f32.gmra.mxu0 %vm791_vm2, %v2419_v32  ;;  %v2313_v22 = vrot.slane %v7434_v24, 2  ;;  %v666_v36 = vrot.slane %v7438_v29, 7  ;;  %v669_v29 = vrot.slane %v7503_v30, 7  ;;  %v2317_v28 = vrot.slane %v7503_v30, 2 }
 0x153   :  { %6697 = vmatprep.mubr.msk.f32.mxu0 %vm791_vm2, %v2338_v8  ;;  %v686_v59 = vsel %vm675_vm5, %v663_v20, %v664_v3  ;;  %v685_v32 = vsel %vm675_vm5, %v664_v3, %v665_v38  ;;  %v2315_v8 = vrot.slane %v7475_v58, 2  ;;  %v2316_v20 = vrot.slane %v7480_v54, 2 }
 0x154   :  { %v2333_v24 = vsel %vm2323_vm6, %v2312_v26, %v2313_v22  ;;  %v683_v2 = vsel %vm675_vm5, %v666_v36, %v667_v57  ;;  %v670_v26 = vrot.slane %v7517_v21, 7  ;;  %vm3600_vm8 = vcmask 261120  }
 0x155   :  { %6490 = vmatmul.mubr.msk.f32.gmra.mxu1 %vm791_vm2, %v690_v13  ;;  %v2332_v13 = vsel %vm2323_vm6, %v2313_v22, %v2314_v50  ;;  %v2331_v58 = vsel %vm2323_vm6, %v2314_v50, %v2315_v8  ;;  %v2330_v14 = vsel %vm2323_vm6, %v2315_v8, %v2316_v20  ;;  %v2329_v30 = vsel %vm2323_vm6, %v2316_v20, %v2317_v28 }
 0x156   :  { %6492 = vmatprep.mubr.msk.f32.mxu1 %vm791_vm2, %v689_v51  ;;  %6698 = vmatmul.mubr.msk.f32.gmra.mxu0 %vm791_vm2, %v2337_v37  ;;  %v684_v51 = vsel %vm675_vm5, %v665_v38, %v666_v36  ;;  %v668_v37 = vrot.slane %v7480_v54, 7  ;;  %v671_v54 = vrot.slane %v7550_v45, 7  ;;  %v2319_v38 = vrot.slane %v7550_v45, 2 }
 0x157   :  { %6700 = vmatprep.mubr.msk.f32.mxu0 %vm791_vm2, %v2336_v62  ;;  %v680_v3 = vsel %vm675_vm5, %v669_v29, %v670_v26  ;;  %v9514_v8 = vrot.slane %v7566_v9, 6 }
 0x158   :  { %v682_v62 = vsel %vm675_vm5, %v667_v57, %v668_v37  ;;  %v679_v22 = vsel %vm675_vm5, %v670_v26, %v671_v54  ;;  %v2322_v57 = vrot.slane %v7566_v9, 2  ;;  %v9526_v26 = vld [vmem:[#allocation21_spill] sm:$0xff] }
 0x159   :  { %6493 = vmatmul.mubr.msk.f32.gmra.mxu1 %vm791_vm2, %v688_v19  ;;  %v681_v19 = vsel %vm675_vm5, %v668_v37, %v669_v29  ;;  %v9516_v29 = vrot.slane %v7566_v9, 7  ;;  %v9518_v9 = vld [vmem:[#allocation13_spill] sm:$0xff] }
 0x15a   :  { %6495 = vmatprep.mubr.msk.f32.mxu1 %vm791_vm2, %v687_v34  ;;  %6701 = vmatmul.mubr.msk.f32.gmra.mxu0 %vm791_vm2, %v2335_v55  ;;  %v2318_v34 = vrot.slane %v7517_v21, 2  ;;  %v673_v21 = vrot.slane %v7585_v61, 7 }
 0x15b   :  { %6703 = vmatprep.mubr.msk.f32.mxu0 %vm791_vm2, %v2334_v35  ;;  %v2320_v35 = vrot.slane %v7558_v18, 2 }
 0x15c   :  { %v2328_v55 = vsel %vm2323_vm6, %v2317_v28, %v2318_v34  ;;  %v2327_v45 = vsel %vm2323_vm6, %v2318_v34, %v2319_v38  ;;  %v1936_v28 = vld [vmem:[#allocation2 + $0x30] sm:$0xff] }
 0x15d   :  { %6496 = vmatmul.mubr.msk.f32.gmra.mxu1 %vm791_vm2, %v686_v59  ;;  %v672_v59 = vrot.slane %v7558_v18, 7  ;;  %v2326_v50 = vsel %vm2323_vm6, %v2319_v38, %v2320_v35  ;;  %v9522_v34 = vld [vmem:[#allocation17_spill] sm:$0xff]  ;;  %v9527_v38 = vld [vmem:[#allocation22_spill] sm:$0xff] }
 0x15e   :  { %6498 = vmatprep.mubr.msk.f32.mxu1 %vm791_vm2, %v685_v32  ;;  %6704 = vmatmul.mubr.msk.f32.gmra.mxu0 %vm791_vm2, %v2333_v24  ;;  %v2321_v32 = vrot.slane %v7585_v61, 2  ;;  %v9513_v61 = vrot.slane %v9505_v43, 6 }
 0x15f   :  { %6706 = vmatprep.mubr.msk.f32.mxu0 %vm791_vm2, %v2332_v13  ;;  %v678_v24 = vsel %vm675_vm5, %v671_v54, %v672_v59  ;;  %v677_v36 = vsel %vm675_vm5, %v672_v59, %v673_v21  ;;  %v9523_v54 = vld [vmem:[#allocation18_spill] sm:$0xff]  ;;  %v9533_v59 = vld [vmem:[#allocation28_spill] sm:$0xff] }
 0x160   :  { %v2325_v18 = vsel %vm2323_vm6, %v2320_v35, %v2321_v32  ;;  %v560_v13 = vsel %vm528_vm3, %v9514_v8, %v9513_v61  ;;  %v9531_v35 = vld [vmem:[#allocation26_spill] sm:$0xff]  ;;  %v9540_v61 = vld [vmem:[#allocation35_spill] sm:$0xff]  ;;  %v9541_v8 = vld [vmem:[#allocation36_spill] sm:$0xff] }
 0x161   :  { %6499 = vmatmul.mubr.msk.f32.gmra.mxu1 %vm791_vm2, %v684_v51  ;;  %v2324_v51 = vsel %vm2323_vm6, %v2321_v32, %v2322_v57  ;;  %v609_v37 = vsel %vm561_vm10, %v560_v13, 0.0  ;;  %v9534_v32 = vld [vmem:[#allocation29_spill] sm:$0xff]  ;;  %v9542_v13 = vld [vmem:[#allocation12_spill] sm:$0xff] }
 0x162   :  { %6501 = vmatprep.mubr.msk.f32.mxu1 %vm791_vm2, %v683_v2  ;;  %6707 = vmatmul.mubr.msk.f32.gmra.mxu0 %vm791_vm2, %v2331_v58  ;;  %v9515_v2 = vrot.slane %v9505_v43, 2  ;;  %v676_v58 = vsel %vm675_vm5, %v673_v21, %v9516_v29  ;;  %v9532_v21 = vld [vmem:[#allocation27_spill] sm:$0xff] }
 0x163   :  { %6709 = vmatprep.mubr.msk.f32.mxu0 %vm791_vm2, %v2330_v14  ;;  %v9517_v14 = vld [vmem:[#allocation11_spill] sm:$0xff] }
 0x164   :  { %v2355_v20 = vsel %vm2323_vm6, %v2322_v57, %v9515_v2  ;;  %v9536_v57 = vld [vmem:[#allocation31_spill] sm:$0xff] }
 0x165   :  { %6502 = vmatmul.mubr.msk.f32.gmra.mxu1 %vm791_vm2, %v682_v62  ;;  %v2435_v43 = vsel %vm2371_vm9, %v2355_v20, 0.0  ;;  %v9519_v62 = vld [vmem:[#allocation14_spill] sm:$0xff] }
 0x166   :  { %6504 = vmatprep.mubr.msk.f32.mxu1 %vm791_vm2, %v681_v19  ;;  %6710 = vmatmul.mubr.msk.f32.gmra.mxu0 %vm791_vm2, %v2329_v30  ;;  %v9520_v19 = vld [vmem:[#allocation15_spill] sm:$0xff]  ;;  %v9525_v30 = vld [vmem:[#allocation20_spill] sm:$0xff] }
 0x167   :  { %6712 = vmatprep.mubr.msk.f32.mxu0 %vm791_vm2, %v2328_v55  ;;  %v9528_v55 = vld [vmem:[#allocation23_spill] sm:$0xff] }
 0x169   :  { %6505 = vmatmul.mubr.msk.f32.gmra.mxu1 %vm791_vm2, %v680_v3  ;;  %v9529_v3 = vld [vmem:[#allocation24_spill] sm:$0xff] }
 0x16a   :  { %6507 = vmatprep.mubr.msk.f32.mxu1 %vm791_vm2, %v679_v22  ;;  %6713 = vmatmul.mubr.msk.f32.gmra.mxu0 %vm791_vm2, %v2327_v45  ;;  %v9530_v22 = vld [vmem:[#allocation25_spill] sm:$0xff]  ;;  %v625_v45 = vsel %vm561_vm10, %v9532_v21, 0.0 }
 0x16b   :  { %6715 = vmatprep.mubr.msk.f32.mxu0 %vm791_vm2, %v2326_v50  ;;  %v9535_v50 = vld [vmem:[#allocation30_spill] sm:$0xff] }
 0x16d   :  { %6508 = vmatmul.mubr.msk.f32.gmra.mxu1 %vm791_vm2, %v678_v24  ;;  %v9537_v24 = vld [vmem:[#allocation32_spill] sm:$0xff] }
 0x16e   :  { %6510 = vmatprep.mubr.msk.f32.mxu1 %vm791_vm2, %v677_v36  ;;  %6716 = vmatmul.mubr.msk.f32.gmra.mxu0 %vm791_vm2, %v2325_v18  ;;  %v9538_v36 = vld [vmem:[#allocation33_spill] sm:$0xff]  ;;  %v9539_v18 = vld [vmem:[#allocation34_spill] sm:$0xff] }
 0x16f   :  { %6718 = vmatprep.mubr.msk.f32.mxu0 %vm791_vm2, %v2324_v51 }
 0x171   :  { %6511 = vmatmul.mubr.msk.f32.gmra.mxu1 %vm791_vm2, %v676_v58 }
 0x172   :  { %6517 = vmatprep.mubr.msk.f32.mxu1 %vm791_vm2, %v609_v37  ;;  %6719 = vmatmul.mubr.msk.f32.gmra.mxu0 %vm791_vm2, %v2435_v43 }
 0x175   :  { %6518 = vmatmul.mubr.msk.f32.vlgmr.msra.gmra.mxu1 %vm791_vm2, %v9517_v14 }
 0x176   :  { %6618 = vmatpush3.msra.mxu1 %v7663_v42  ;;  %6520 = vmatprep.mubr.msk.f32.mxu1 %vm791_vm2, %v9518_v9  ;;  %v9524_v42 = vld [vmem:[#allocation19_spill] sm:$0xff] }
 0x177   :  { %6619 = vmatprep.subr.mxu1 %v1936_v28 }
 0x178   :  { %6620 = vmatpush3.msra.mxu1 %v1936_v28 }
 0x179   :  { %6521 = vmatmul.mubr.msk.f32.gmra.mxu1 %vm791_vm2, %v9519_v62 }
 0x17a   :  { %6523 = vmatprep.mubr.msk.f32.mxu1 %vm791_vm2, %v9520_v19 }
 0x17d   :  { %6524 = vmatmul.mubr.msk.f32.gmra.mxu1 %vm791_vm2, %v9521_v7 }
 0x17e   :  { %6526 = vmatprep.mubr.msk.f32.mxu1 %vm791_vm2, %v9522_v34 }
 0x181   :  { %6527 = vmatmul.mubr.msk.f32.gmra.mxu1 %vm791_vm2, %v9523_v54 }
 0x182   :  { %6529 = vmatprep.mubr.msk.f32.mxu1 %vm791_vm2, %v9524_v42 }
 0x185   :  { %6530 = vmatmul.mubr.msk.f32.gmra.mxu1 %vm791_vm2, %v9525_v30 }
 0x186   :  { %6532 = vmatprep.mubr.msk.f32.mxu1 %vm791_vm2, %v9526_v26 }
 0x189   :  { %6533 = vmatmul.mubr.msk.f32.gmra.mxu1 %vm791_vm2, %v9527_v38 }
 0x18a   :  { %6535 = vmatprep.mubr.msk.f32.mxu1 %vm791_vm2, %v9528_v55 }
 0x18d   :  { %6536 = vmatmul.mubr.msk.f32.gmra.mxu1 %vm791_vm2, %v9529_v3 }
 0x18e   :  { %6538 = vmatprep.mubr.msk.f32.mxu1 %vm791_vm2, %v9530_v22 }
 0x191   :  { %6539 = vmatmul.mubr.msk.f32.gmra.mxu1 %vm791_vm2, %v9531_v35 }
 0x192   :  { %6541 = vmatprep.mubr.msk.f32.mxu1 %vm791_vm2, %v625_v45 }
 0x195   :  { %6542 = vmatmul.mubr.msk.f32.gmra.mxu1 %vm791_vm2, %v9533_v59 }
 0x196   :  { %6544 = vmatprep.mubr.msk.f32.mxu1 %vm791_vm2, %v9534_v32 }
 0x199   :  { %6545 = vmatmul.mubr.msk.f32.gmra.mxu1 %vm791_vm2, %v9535_v50 }
 0x19a   :  { %6547 = vmatprep.mubr.msk.f32.mxu1 %vm791_vm2, %v9536_v57 }
 0x19d   :  { %6548 = vmatmul.mubr.msk.f32.gmra.mxu1 %vm791_vm2, %v9537_v24 }
 0x19e   :  { %6550 = vmatprep.mubr.msk.f32.mxu1 %vm791_vm2, %v9538_v36 }
 0x1a1   :  { %6551 = vmatmul.mubr.msk.f32.gmra.mxu1 %vm791_vm2, %v9539_v18 }
 0x1a2   :  { %6553 = vmatprep.mubr.msk.f32.mxu1 %vm791_vm2, %v9540_v61 }
 0x1a5   :  { %6554 = vmatmul.mubr.msk.f32.gmra.mxu1 %vm791_vm2, %v9541_v8 }
 0x1a6   :  { %6556 = vmatprep.mubr.msk.f32.mxu1 %vm791_vm2, %v7618_v12  ;;  %v9543_v12 = vld [vmem:[#allocation37_spill] sm:$0xff] }
 0x1a9   :  { %6557 = vmatmul.mubr.msk.f32.gmra.mxu1 %vm791_vm2, %v7636_v27  ;;  %v9545_v27 = vld [vmem:[#allocation39_spill] sm:$0xff] }
 0x1aa   :  { %6559 = vmatprep.mubr.msk.f32.mxu1 %vm791_vm2, %v7657_v39  ;;  %v9546_v39 = vld [vmem:[#allocation40_spill] sm:$0xff] }
 0x1ad   :  { %6560 = vmatmul.mubr.msk.f32.gmra.mxu1 %vm791_vm2, %v7687_v48  ;;  %v9549_v48 = vld [vmem:[#allocation43_spill] sm:$0xff] }
 0x1ae   :  { %6562 = vmatprep.mubr.msk.f32.mxu1 %vm791_vm2, %v7696_v5  ;;  %v9550_v5 = vld [vmem:[#allocation44_spill] sm:$0xff] }
 0x1b1   :  { %6563 = vmatmul.mubr.msk.f32.gmra.mxu1 %vm791_vm2, %v7702_v53  ;;  %v9551_v53 = vld [vmem:[#allocation45_spill] sm:$0xff] }
 0x1b2   :  { %6621 = vmatprep.mubr.msk.f32.mxu1 %vm791_vm2, %v9542_v13 }
 0x1b5   :  { %6622 = vmatmul.mubr.msk.f32.vlgmr.msra.gmra.mxu1 %vm791_vm2, %v7672_v31  ;;  %v9544_v31 = vld [vmem:[#allocation38_spill] sm:$0xff] }
 0x1b6   :  { %6624 = vmatprep.mubr.msk.f32.mxu1 %vm791_vm2, %v7680_v40  ;;  %v9547_v40 = vld [vmem:[#allocation41_spill] sm:$0xff] }
 0x1b9   :  { %6625 = vmatmul.mubr.msk.f32.gmra.mxu1 %vm791_vm2, %v7708_v15  ;;  %v6571_v15 = vpop.f32.mrf.mxu0 }
 0x1ba   :  { %6627 = vmatprep.mubr.msk.f32.mxu1 %vm791_vm2, %v7716_v23 }
 0x1bb   :  { %v8223_v23 = vpop.f32.mrf.mxu0 }
 0x1bd   :  { %6628 = vmatmul.mubr.msk.f32.gmra.mxu1 %vm791_vm2, %v7720_v17 }
 0x1be   :  { %6630 = vmatprep.mubr.msk.f32.mxu1 %vm791_vm2, %v7724_v60 }
 0x1c1   :  { %6631 = vmatmul.mubr.msk.f32.gmra.mxu1 %vm791_vm2, %v7731_v25  ;;  %v6574_v25 = vpop.f32.mrf.mxu0 }
 0x1c2   :  { %6633 = vmatprep.mubr.msk.f32.mxu1 %vm791_vm2, %v7740_v41 }
 0x1c5   :  { %6634 = vmatmul.mubr.msk.f32.gmra.mxu1 %vm791_vm2, %v7749_v63 }
 0x1c6   :  { %6636 = vmatprep.mubr.msk.f32.mxu1 %vm791_vm2, %v7753_v11  ;;  %v8229_v11 = vpop.f32.mrf.mxu0 }
 0x1c9   :  { %6637 = vmatmul.mubr.msk.f32.gmra.mxu1 %vm791_vm2, %v7757_v1 }
 0x1ca   :  { %6639 = vmatprep.mubr.msk.f32.mxu1 %vm791_vm2, %v7764_v33 }
 0x1cd   :  { %6640 = vmatmul.mubr.msk.f32.gmra.mxu1 %vm791_vm2, %v7768_v6  ;;  %v8233_v6 = vpop.f32.mrf.mxu0 }
 0x1ce   :  { %6642 = vmatprep.mubr.msk.f32.mxu1 %vm791_vm2, %v7772_v16 }
 0x1d1   :  { %6643 = vmatmul.mubr.msk.f32.gmra.mxu1 %vm791_vm2, %v7786_v44 }
 0x1d2   :  { %6645 = vmatprep.mubr.msk.f32.mxu1 %vm791_vm2, %v7790_v0  ;;  %v8237_v0 = vpop.f32.mrf.mxu0 }
 0x1d5   :  { %6646 = vmatmul.mubr.msk.f32.gmra.mxu1 %vm791_vm2, %v7798_v52  ;;  %v9548_v52 = vld [vmem:[#allocation42_spill] sm:$0xff] }
 0x1d6   :  { %6648 = vmatprep.mubr.msk.f32.mxu1 %vm791_vm2, %v9543_v12 }
 0x1d9   :  { %6649 = vmatmul.mubr.msk.f32.gmra.mxu1 %vm791_vm2, %v7806_v10 }
 0x1da   :  { %6651 = vmatprep.mubr.msk.f32.mxu1 %vm791_vm2, %v9544_v31 }
 0x1dd   :  { %6652 = vmatmul.mubr.msk.f32.gmra.mxu1 %vm791_vm2, %v9545_v27 }
 0x1de   :  { %6654 = vmatprep.mubr.msk.f32.mxu1 %vm791_vm2, %v9546_v39 }
 0x1e1   :  { %6655 = vmatmul.mubr.msk.f32.gmra.mxu1 %vm791_vm2, %v7834_v46 }
 0x1e2   :  { %6657 = vmatprep.mubr.msk.f32.mxu1 %vm791_vm2, %v9547_v40 }
 0x1e5   :  { %6658 = vmatmul.mubr.msk.f32.gmra.mxu1 %vm791_vm2, %v9548_v52 }
 0x1e6   :  { %6660 = vmatprep.mubr.msk.f32.mxu1 %vm791_vm2, %v9549_v48 }
 0x1e9   :  { %6661 = vmatmul.mubr.msk.f32.gmra.mxu1 %vm791_vm2, %v9550_v5 }
 0x1ea   :  { %6663 = vmatprep.mubr.msk.f32.mxu1 %vm791_vm2, %v9551_v53 }
 0x1ed   :  { %6664 = vmatmul.mubr.msk.f32.gmra.mxu1 %vm791_vm2, %v7872_v4  ;;  %v8241_v4 = vpop.f32.mrf.mxu0 }
 0x1ee   :  { %6666 = vmatprep.mubr.msk.f32.mxu1 %vm791_vm2, %v7884_v56 }
 0x1ef   :  { %v8243_v51 = vpop.f32.mrf.mxu0 }
 0x1f1   :  { %6667 = vmatmul.mubr.msk.f32.gmra.mxu1 %vm791_vm2, %v7899_v49  ;;  %v8245_v29 = vpop.f32.mrf.mxu0  ;;  %vm3484_vm2 = vcmask 1047559  }
 0x1f2   :  { %v6467_v17 = vpop.f32.mrf.mxu1 }
 0x1f3   :  { %v8251_v43 = vpop.f32.mrf.mxu0 }
 0x1f4   :  { %v8225_v60 = vpop.f32.mrf.mxu1 }
 0x1f5   :  { %v8257_v9 = vpop.f32.mrf.mxu0 }
 0x1f6   :  { %v6470_v41 = vpop.f32.mrf.mxu1 }
 0x1f7   :  { %v8263_v7 = vpop.f32.mrf.mxu0 }
 0x1f8   :  { %v8227_v63 = vpop.f32.mrf.mxu1 }
 0x1f9   :  { %v8269_v42 = vpop.f32.mrf.mxu0 }
 0x1fa   :  { %v6473_v1 = vpop.f32.mrf.mxu1 }
 0x1fb   :  { %v8275_v38 = vpop.f32.mrf.mxu0 }
 0x1fc   :  { %v8231_v33 = vpop.f32.mrf.mxu1 }
 0x1fd   :  { %v8281_v22 = vpop.f32.mrf.mxu0 }
 0x1fe   :  { %v6476_v16 = vpop.f32.mrf.mxu1 }
 0x1ff   :  { %v8287_v45 = vpop.f32.mrf.mxu0 }
 0x200   :  { %v8235_v44 = vpop.f32.mrf.mxu1 }
 0x201   :  { %v8293_v50 = vpop.f32.mrf.mxu0 }
 0x202   :  { %v6479_v10 = vpop.f32.mrf.mxu1 }
 0x203   :  { %v8299_v36 = vpop.f32.mrf.mxu0 }
 0x204   :  { %v8239_v46 = vpop.f32.mrf.mxu1  ;;  %9552 = vst [vmem:[#allocation10_spill] sm:$0xff] %v8299_v36 }
 0x205   :  { %v8305_v12 = vpop.f32.mrf.mxu0 }
 0x206   :  { %9553 = vst [vmem:[#allocation11_spill] sm:$0xff] %v8305_v12 }
 0x207   :  { %v8311_v52 = vpop.f32.mrf.mxu0 }
 0x208   :  { %9555 = vst [vmem:[#allocation14_spill] sm:$0xff] %v8311_v52 }
 0x209   :  { %v6482_v56 = vpop.f32.mrf.mxu1 }
 0x20b   :  { %v1004_v49 = vpop.f32.mrf.mxu1 }
 0x20d   :  { %v6485_v2 = vpop.f32.mrf.mxu1 }
 0x20f   :  { %v1014_v20 = vpop.f32.mrf.mxu1 }
 0x211   :  { %v8247_v58 = vpop.f32.mrf.mxu1 }
 0x213   :  { %v8249_v37 = vpop.f32.mrf.mxu1 }
 0x215   :  { %v8253_v28 = vpop.f32.mrf.mxu1 }
 0x217   :  { %v8255_v14 = vpop.f32.mrf.mxu1 }
 0x219   :  { %v8259_v62 = vpop.f32.mrf.mxu1 }
 0x21b   :  { %v8261_v19 = vpop.f32.mrf.mxu1 }
 0x21d   :  { %v8265_v34 = vpop.f32.mrf.mxu1 }
 0x21f   :  { %v8267_v54 = vpop.f32.mrf.mxu1 }
 0x221   :  { %v8271_v30 = vpop.f32.mrf.mxu1 }
 0x223   :  { %v8273_v26 = vpop.f32.mrf.mxu1 }
 0x225   :  { %v8277_v55 = vpop.f32.mrf.mxu1 }
 0x227   :  { %v8279_v3 = vpop.f32.mrf.mxu1 }
 0x229   :  { %v8283_v35 = vpop.f32.mrf.mxu1 }
 0x22b   :  { %v8285_v21 = vpop.f32.mrf.mxu1 }
 0x22d   :  { %v8289_v59 = vpop.f32.mrf.mxu1 }
 0x22f   :  { %v8291_v32 = vpop.f32.mrf.mxu1 }
 0x231   :  { %v8295_v57 = vpop.f32.mrf.mxu1 }
 0x233   :  { %v8297_v24 = vpop.f32.mrf.mxu1 }
 0x235   :  { %v6519_v18 = vpop.f32.mrf.mxu1 }
 0x236   :  { %v1281_v61 = vadd.f32 %v6519_v18, %v6467_v17  ;;  %v8317_v17 = vpop.f32.mrf.mxu0 }
 0x237   :  { %v8301_v8 = vpop.f32.mrf.mxu1  ;;  %9556 = vst [vmem:[#allocation15_spill] sm:$0xff] %v8317_v17  ;;  %v3599_v17 = vld [vmem:[#allocation4 + $0x38] sm:$0xff] }
 0x238   :  { %v8303_v13 = vadd.f32 %v6571_v15, %v1281_v61  ;;  %v8323_v47 = vpop.f32.mrf.mxu0  ;;  %6721 = vmatprep.subr.mxu0 %v3599_v17 }
 0x239   :  { %v6522_v31 = vpop.f32.mrf.mxu1  ;;  %9557 = vst [vmem:[#allocation16_spill] sm:$0xff] %v8323_v47  ;;  %6722 = vmatpush3.msra.mxu0 %v3599_v17  ;;  %v3863_v47 = vld [vmem:[#allocation4 + $0x58] sm:$0xff] }
 0x23a   :  { %v1291_v27 = vadd.f32 %v6522_v31, %v6470_v41  ;;  %6761 = vmatprep.subr.mxu1 %v3863_v47 }
 0x23b   :  { %v8307_v39 = vpop.f32.mrf.mxu1  ;;  %6762 = vmatpush3.msra.mxu1 %v3863_v47 }
 0x23c   :  { %v8309_v40 = vadd.f32 %v6574_v25, %v1291_v27  ;;  %v8329_v27 = vpop.f32.mrf.mxu0 }
 0x23d   :  { %v6525_v48 = vpop.f32.mrf.mxu1  ;;  %9558 = vst [vmem:[#allocation17_spill] sm:$0xff] %v8329_v27 }
 0x23e   :  { %9554 = vst [vmem:[#allocation13_spill] sm:$0xff] %v8309_v40  ;;  %v8313_v5 = vadd.f32 %v6525_v48, %v6473_v1 }
 0x23f   :  { %v8315_v53 = vpop.f32.mrf.mxu1 }
 0x241   :  { %v6528_v18 = vpop.f32.mrf.mxu1 }
 0x242   :  { %v8319_v15 = vadd.f32 %v6528_v18, %v6476_v16  ;;  %v8335_v16 = vpop.f32.mrf.mxu0 }
 0x243   :  { %v8321_v61 = vpop.f32.mrf.mxu1 }
 0x244   :  { %v8341_v36 = vpop.f32.mrf.mxu0 }
 0x245   :  { %v6531_v41 = vpop.f32.mrf.mxu1  ;;  %9559 = vst [vmem:[#allocation18_spill] sm:$0xff] %v8341_v36 }
 0x246   :  { %v8325_v31 = vadd.f32 %v6531_v41, %v6479_v10  ;;  %v8349_v17 = vpop.f32.mrf.mxu0 }
 0x247   :  { %v8327_v25 = vpop.f32.mrf.mxu1  ;;  %9560 = vst [vmem:[#allocation19_spill] sm:$0xff] %v8349_v17 }
 0x249   :  { %v6534_v1 = vpop.f32.mrf.mxu1 }
 0x24a   :  { %v8331_v48 = vadd.f32 %v6534_v1, %v6482_v56 }
 0x24b   :  { %v1325_v52 = vpop.f32.mrf.mxu1 }
 0x24c   :  { %v8333_v40 = vadd.f32 %v1325_v52, %v1004_v49  ;;  %v3862_v49 = vld [vmem:[#allocation4 + $0x50] sm:$0xff] }
 0x24d   :  { %v6537_v18 = vpop.f32.mrf.mxu1  ;;  %6763 = vmatprep.subr.mxu1 %v3862_v49 }
 0x24e   :  { %v8337_v12 = vadd.f32 %v6537_v18, %v6485_v2  ;;  %6764 = vmatpush3.msra.mxu1 %v3862_v49  ;;  %v3861_v2 = vld [vmem:[#allocation4 + $0x48] sm:$0xff] }
 0x24f   :  { %v1335_v10 = vpop.f32.mrf.mxu1  ;;  %6765 = vmatprep.subr.mxu1 %v3861_v2 }
 0x250   :  { %v8339_v41 = vadd.f32 %v1335_v10, %v1014_v20  ;;  %6766 = vmatpush3.msra.mxu1 %v3861_v2  ;;  %v3860_v10 = vld [vmem:[#allocation4 + $0x40] sm:$0xff] }
 0x251   :  { %v6540_v27 = vpop.f32.mrf.mxu1  ;;  %6767 = vmatprep.subr.mxu1 %v3860_v10 }
 0x252   :  { %v8344_v56 = vadd.f32 %v6540_v27, %v8247_v58  ;;  %6768 = vmatpush3.msra.mxu1 %v3860_v10  ;;  %v8357_v27 = vpop.f32.mrf.mxu0 }
 0x253   :  { %v1345_v52 = vpop.f32.mrf.mxu1 }
 0x254   :  { %v8347_v1 = vadd.f32 %v1345_v52, %v8249_v37 }
 0x255   :  { %v6543_v20 = vpop.f32.mrf.mxu1 }
 0x256   :  { %v8352_v18 = vadd.f32 %v6543_v20, %v8253_v28  ;;  %v8365_v28 = vpop.f32.mrf.mxu0 }
 0x257   :  { %v1355_v58 = vpop.f32.mrf.mxu1  ;;  %9561 = vst [vmem:[#allocation20_spill] sm:$0xff] %v8365_v28 }
 0x258   :  { %v8355_v47 = vadd.f32 %v1355_v58, %v8255_v14  ;;  %v8373_v10 = vpop.f32.mrf.mxu0 }
 0x259   :  { %v6546_v37 = vpop.f32.mrf.mxu1  ;;  %9562 = vst [vmem:[#allocation21_spill] sm:$0xff] %v8373_v10 }
 0x25a   :  { %v8360_v49 = vadd.f32 %v6546_v37, %v8259_v62 }
 0x25b   :  { %v1365_v52 = vpop.f32.mrf.mxu1 }
 0x25c   :  { %v8363_v17 = vadd.f32 %v1365_v52, %v8261_v19  ;;  %v8381_v52 = vpop.f32.mrf.mxu0 }
 0x25d   :  { %v6549_v2 = vpop.f32.mrf.mxu1  ;;  %9563 = vst [vmem:[#allocation22_spill] sm:$0xff] %v8381_v52 }
 0x25e   :  { %v8368_v20 = vadd.f32 %v6549_v2, %v8265_v34 }
 0x25f   :  { %v1375_v36 = vpop.f32.mrf.mxu1 }
 0x260   :  { %v8371_v14 = vadd.f32 %v1375_v36, %v8267_v54  ;;  %v8389_v36 = vpop.f32.mrf.mxu0 }
 0x261   :  { %v6552_v58 = vpop.f32.mrf.mxu1  ;;  %9564 = vst [vmem:[#allocation23_spill] sm:$0xff] %v8389_v36  ;;  %v1276_v36 = vadd.f32 %v8301_v8, %v8225_v60 }
 0x262   :  { %v8376_v62 = vadd.f32 %v6552_v58, %v8271_v30 }
 0x263   :  { %v1385_v37 = vpop.f32.mrf.mxu1  ;;  %v1758_v8 = vadd.f32 %v8223_v23, %v1276_v36  ;;  %v8438_v23 = vadd.f32 %v8245_v29, %v8325_v31  ;;  %v8458_v29 = vadd.f32 %v8269_v42, %v8337_v12  ;;  %v8474_v42 = vadd.f32 %v8293_v50, %v8352_v18  ;;  %v9565_v12 = vld [vmem:[#allocation10_spill] sm:$0xff]  ;;  %v9569_v50 = vld [vmem:[#allocation15_spill] sm:$0xff] }
 0x264   :  { %v8379_v19 = vadd.f32 %v1385_v37, %v8273_v26  ;;  %v8397_v37 = vpop.f32.mrf.mxu0  ;;  %v8492_v18 = vadd.f32 %v9569_v50, %v8368_v20 }
 0x265   :  { %v6555_v28 = vpop.f32.mrf.mxu1 }
 0x266   :  { %v8384_v34 = vadd.f32 %v6555_v28, %v8277_v55 }
 0x267   :  { %v1395_v2 = vpop.f32.mrf.mxu1 }
 0x268   :  { %v8387_v54 = vadd.f32 %v1395_v2, %v8279_v3  ;;  %v6675_v2 = vpop.f32.mrf.mxu0 }
 0x269   :  { %v6558_v10 = vpop.f32.mrf.mxu1 }
 0x26a   :  { %v8392_v30 = vadd.f32 %v6558_v10, %v8283_v35  ;;  %v1286_v35 = vadd.f32 %v8307_v39, %v8227_v63  ;;  %v2601_v60 = vpop.f32.mrf.mxu0 }
 0x26b   :  { %v1405_v58 = vpop.f32.mrf.mxu1 }
 0x26c   :  { %v8395_v26 = vadd.f32 %v1405_v58, %v8285_v21  ;;  %v1296_v21 = vadd.f32 %v8315_v53, %v8231_v33  ;;  %v1306_v58 = vadd.f32 %v8321_v61, %v8235_v44  ;;  %v1760_v33 = vadd.f32 %v8229_v11, %v1286_v35  ;;  %v3598_v11 = vld [vmem:[#allocation4 + $0x30] sm:$0xff] }
 0x26d   :  { %v6561_v52 = vpop.f32.mrf.mxu1  ;;  %v1763_v44 = vadd.f32 %v8233_v6, %v8313_v5  ;;  %v8443_v6 = vld [vmem:[%s9437_s4] ss:$0 sm:$0xff]  ;;  %6723 = vmatprep.subr.mxu0 %v3598_v11  ;;  %v8504_v35 = vadd.f32 %v8335_v16, %v8379_v19  ;;  %v9574_v16 = vld [vmem:[#allocation20_spill] sm:$0xff] }
 0x26e   :  { %v8400_v55 = vadd.f32 %v6561_v52, %v8289_v59  ;;  %6724 = vmatpush3.msra.mxu0 %v3598_v11  ;;  %v8521_v19 = vadd.f32 %v9574_v16, %v8395_v26 }
 0x26f   :  { %v1415_v28 = vpop.f32.mrf.mxu1 }
 0x270   :  { %v8403_v3 = vadd.f32 %v1415_v28, %v8291_v32  ;;  %v1316_v32 = vadd.f32 %v8327_v25, %v8239_v46  ;;  %v8431_v46 = vadd.f32 %v8241_v4, %v8319_v15  ;;  %v8450_v4 = vadd.f32 %v8257_v9, %v8331_v48  ;;  %v6678_v9 = vpop.f32.mrf.mxu0  ;;  %v9567_v48 = vld [vmem:[#allocation13_spill] sm:$0xff]  ;;  %9575 = vst [vmem:[#allocation24_spill] sm:$0xff] %v8521_v19 }
 0x271   :  { %v6564_v10 = vpop.f32.mrf.mxu1  ;;  %v8462_v15 = vadd.f32 %v8275_v38, %v8339_v41  ;;  %v9566_v38 = vld [vmem:[#allocation11_spill] sm:$0xff] }
 0x272   :  { %v8414_v59 = vadd.f32 %v6564_v10, %v8295_v57  ;;  %v8426_v57 = vadd.f32 %v8237_v0, %v1296_v21  ;;  %v8482_v31 = vadd.f32 %v9566_v38, %v8360_v49  ;;  %v9571_v49 = vld [vmem:[#allocation17_spill] sm:$0xff] }
 0x273   :  { %v1425_v52 = vpop.f32.mrf.mxu1 }
 0x274   :  { %v8419_v28 = vadd.f32 %v1425_v52, %v8297_v24  ;;  %v8434_v24 = vadd.f32 %v8243_v51, %v1306_v58  ;;  %v8454_v51 = vadd.f32 %v8263_v7, %v8333_v40  ;;  %v8470_v7 = vadd.f32 %v8287_v45, %v8347_v1  ;;  %v9568_v45 = vld [vmem:[#allocation14_spill] sm:$0xff] }
 0x275   :  { %v6623_v63 = vpop.f32.mrf.mxu1  ;;  %v8478_v40 = vadd.f32 %v9565_v12, %v8355_v47  ;;  %v9570_v47 = vld [vmem:[#allocation16_spill] sm:$0xff]  ;;  %v9572_v52 = vld [vmem:[#allocation18_spill] sm:$0xff] }
 0x276   :  { %v2260_v39 = vadd.f32 %v6623_v63, %v8303_v13  ;;  %v8446_v13 = vadd.f32 %v8251_v43, %v1316_v32  ;;  %v8466_v43 = vadd.f32 %v8281_v22, %v8344_v56  ;;  %v8488_v56 = vadd.f32 %v9568_v45, %v8363_v17  ;;  %v2611_v32 = vpop.f32.mrf.mxu0 }
 0x277   :  { %v2100_v0 = vpop.f32.mrf.mxu1  ;;  %v8496_v36 = vadd.f32 %v9570_v47, %v8371_v14  ;;  %v9573_v14 = vld [vmem:[#allocation19_spill] sm:$0xff] }
 0x278   :  { %v2761_v5 = vadd.f32 %v6675_v2, %v2260_v39  ;;  %v2259_v53 = vadd.f32 %v2100_v0, %v1758_v8  ;;  %v8500_v2 = vadd.f32 %v9571_v49, %v8376_v62  ;;  %v8513_v63 = vadd.f32 %v9573_v14, %v8387_v54  ;;  %v9576_v54 = vld [vmem:[#allocation21_spill] sm:$0xff] }
 0x279   :  { %v6626_v61 = vpop.f32.mrf.mxu1  ;;  %v8517_v62 = vadd.f32 %v8357_v27, %v8392_v30 }
 0x27a   :  { %v2800_v22 = vadd.f32 %v8443_v6, %v2761_v5  ;;  %v2760_v25 = vadd.f32 %v2601_v60, %v2259_v53  ;;  %v2262_v41 = vadd.f32 %v6626_v61, %v9567_v48  ;;  %v8509_v60 = vadd.f32 %v9572_v52, %v8384_v34  ;;  %v6681_v61 = vpop.f32.mrf.mxu0 }
 0x27b   :  { %v2110_v1 = vpop.f32.mrf.mxu1  ;;  %v8527_v53 = vadd.f32 %v9576_v54, %v8400_v55 }
 0x27c   :  { %v2832_v21 = vmax.f32 %v2800_v22, 0.0  ;;  %v2799_v17 = vadd.f32 %v8443_v6, %v2760_v25  ;;  %v2763_v10 = vadd.f32 %v6678_v9, %v2262_v41  ;;  %v2261_v58 = vadd.f32 %v2110_v1, %v1760_v33  ;;  %v2621_v16 = vpop.f32.mrf.mxu0 }
 0x27d   :  { %v6629_v20 = vpop.f32.mrf.mxu1  ;;  %9577 = vst [vmem:[#allocation25_spill] sm:$0xff] %v8527_v53 }
 0x27e   :  { %v2896_v8 = vcombine.high %v2832_v21, %v2832_v21  ;;  %v2974_v33 = vsel %vm2959_vm11, %v2832_v21, -inf  ;;  %v2831_v39 = vmax.f32 %v2799_v17, 0.0  ;;  %v2802_v11 = vadd.f32 %v8443_v6, %v2763_v10 }
 0x27f   :  { %v2975_v34 = vrot.slane %v2974_v33, 4  ;;  %v2762_v0 = vadd.f32 %v2611_v32, %v2261_v58  ;;  %v2264_v5 = vadd.f32 %v6629_v20, %v1763_v44  ;;  %v2120_v55 = vpop.f32.mrf.mxu1 }
 0x280   :  { %v2981_v27 = vsel %vm2959_vm11, %v2896_v8, -inf  ;;  %v2895_v30 = vcombine.high %v2831_v39, %v2831_v39  ;;  %v2960_v9 = vsel %vm2959_vm11, %v2831_v39, -inf  ;;  %v2834_v26 = vmax.f32 %v2802_v11, 0.0 }
 0x281   :  { %v2976_v12 = vmax.f32 %v2974_v33, %v2975_v34  ;;  %v2982_v38 = vrot.slane %v2981_v27, 4  ;;  %v2961_v22 = vrot.slane %v2960_v9, 4  ;;  %v2801_v25 = vadd.f32 %v8443_v6, %v2762_v0  ;;  %v6632_v34 = vpop.f32.mrf.mxu1 }
 0x282   :  { %v2967_v48 = vsel %vm2959_vm11, %v2895_v30, -inf  ;;  %v2898_v41 = vcombine.high %v2834_v26, %v2834_v26  ;;  %v3002_v44 = vsel %vm2959_vm11, %v2834_v26, -inf  ;;  %v2765_v45 = vadd.f32 %v6681_v61, %v2264_v5 }
 0x283   :  { %v2977_v1 = vrot.slane %v2976_v12, 2  ;;  %v2983_v50 = vmax.f32 %v2981_v27, %v2982_v38  ;;  %v2962_v47 = vmax.f32 %v2960_v9, %v2961_v22  ;;  %v2968_v49 = vrot.slane %v2967_v48, 4 }
 0x284   :  { %v3003_v21 = vrot.slane %v3002_v44, 4  ;;  %v3009_v17 = vsel %vm2959_vm11, %v2898_v41, -inf  ;;  %v2833_v10 = vmax.f32 %v2801_v25, 0.0  ;;  %v2804_v58 = vadd.f32 %v8443_v6, %v2765_v45  ;;  %v9578_v25 = vld [vmem:[#allocation22_spill] sm:$0xff]  ;;  %v6684_v41 = vpop.f32.mrf.mxu0 }
 0x285   :  { %v2978_v32 = vmax.f32 %v2976_v12, %v2977_v1  ;;  %v2984_v20 = vrot.slane %v2983_v50, 2  ;;  %v2963_v52 = vrot.slane %v2962_v47, 2  ;;  %v2969_v14 = vmax.f32 %v2967_v48, %v2968_v49 }
 0x286   :  { %v3004_v8 = vmax.f32 %v3002_v44, %v3003_v21  ;;  %v3010_v33 = vrot.slane %v3009_v17, 4  ;;  %v2897_v39 = vcombine.high %v2833_v10, %v2833_v10  ;;  %v2988_v11 = vsel %vm2959_vm11, %v2833_v10, -inf }
 0x287   :  { %v2979_v0 = vrot.slane %v2978_v32, 1  ;;  %v2985_v5 = vmax.f32 %v2983_v50, %v2984_v20  ;;  %v2964_v54 = vmax.f32 %v2962_v47, %v2963_v52  ;;  %v2970_v27 = vrot.slane %v2969_v14, 2  ;;  %v2130_v50 = vpop.f32.mrf.mxu1  ;;  %v9580_v47 = vld [vmem:[#allocation23_spill] sm:$0xff] }
 0x288   :  { %v3005_v30 = vrot.slane %v3004_v8, 2  ;;  %v3011_v9 = vmax.f32 %v3009_v17, %v3010_v33  ;;  %v2989_v26 = vrot.slane %v2988_v11, 4  ;;  %v2995_v61 = vsel %vm2959_vm11, %v2897_v39, -inf }
 0x289   :  { %v2986_v12 = vrot.slane %v2985_v5, 1  ;;  %v2965_v38 = vrot.slane %v2964_v54, 1  ;;  %v2971_v22 = vmax.f32 %v2969_v14, %v2970_v27  ;;  %v8540_v48 = vadd.f32 %v9578_v25, %v8403_v3  ;;  %v2631_v27 = vpop.f32.mrf.mxu0 }
 0x28a   :  { %v3006_v44 = vmax.f32 %v3004_v8, %v3005_v30  ;;  %v2990_v45 = vmax.f32 %v2988_v11, %v2989_v26  ;;  %v2996_v1 = vrot.slane %v2995_v61, 4  ;;  %v8544_v49 = vadd.f32 %v9580_v47, %v8414_v59  ;;  %v6635_v26 = vpop.f32.mrf.mxu1 }
 0x28b   :  { %9579 = vst [vmem:[#allocation26_spill] sm:$0xff] %v8540_v48  ;;  %v8546_v21 = vmax.f32 %v2978_v32, %v2979_v0  ;;  %v2972_v17 = vrot.slane %v2971_v22, 1  ;;  %v2836_v10 = vmax.f32 %v2804_v58, 0.0  ;;  %v8550_v20 = vadd.f32 %v8397_v37, %v8419_v28 }
 0x28c   :  { %9581 = vst [vmem:[#allocation27_spill] sm:$0xff] %v8544_v49  ;;  %v8552_v52 = vmax.f32 %v2985_v5, %v2986_v12  ;;  %v3012_v3 = vrot.slane %v3011_v9, 2  ;;  %v2991_v14 = vrot.slane %v2990_v45, 2  ;;  %v2997_v8 = vmax.f32 %v2995_v61, %v2996_v1 }
 0x28d   :  { %9582 = vst [vmem:[#allocation28_spill] sm:$0xff] %v8550_v20  ;;  %v2966_v33 = vmax.f32 %v2964_v54, %v2965_v38  ;;  %v2900_v39 = vcombine.high %v2836_v10, %v2836_v10  ;;  %v3030_v11 = vsel %vm2959_vm11, %v2836_v10, -inf  ;;  %v2263_v59 = vadd.f32 %v2120_v55, %v8426_v57 }
 0x28e   :  { %v3007_v32 = vrot.slane %v3006_v44, 1  ;;  %v2992_v0 = vmax.f32 %v2990_v45, %v2991_v14  ;;  %v2998_v30 = vrot.slane %v2997_v8, 2  ;;  %v3031_v58 = vrot.slane %v3030_v11, 4  ;;  %v6687_v45 = vpop.f32.mrf.mxu0 }
 0x28f   :  { %v2973_v25 = vmax.f32 %v2971_v22, %v2972_v17  ;;  %v3037_v37 = vsel %vm2959_vm11, %v2900_v39, -inf  ;;  %v2764_v28 = vadd.f32 %v2621_v16, %v2263_v59  ;;  %v2266_v5 = vadd.f32 %v6632_v34, %v8431_v46 }
 0x290   :  { %v2993_v12 = vrot.slane %v2992_v0, 1  ;;  %v2999_v61 = vmax.f32 %v2997_v8, %v2998_v30  ;;  %v3032_v54 = vmax.f32 %v3030_v11, %v3031_v58  ;;  %v3038_v38 = vrot.slane %v3037_v37, 4 }
 0x291   :  { %v2803_v1 = vadd.f32 %v8443_v6, %v2764_v28  ;;  %v2767_v47 = vadd.f32 %v6684_v41, %v2266_v5  ;;  %v2265_v57 = vadd.f32 %v2130_v50, %v8434_v24  ;;  %v2268_v55 = vadd.f32 %v6635_v26, %v8438_v23  ;;  %v2140_v23 = vpop.f32.mrf.mxu1 }
 0x292   :  { %v8561_v10 = vmax.f32 %v3011_v9, %v3012_v3  ;;  %v3000_v22 = vrot.slane %v2999_v61, 1  ;;  %v3033_v17 = vrot.slane %v3032_v54, 2  ;;  %v3039_v14 = vmax.f32 %v3037_v37, %v3038_v38 }
 0x293   :  { %v2835_v16 = vmax.f32 %v2803_v1, 0.0  ;;  %v2806_v46 = vadd.f32 %v8443_v6, %v2767_v47  ;;  %v2766_v34 = vadd.f32 %v2631_v27, %v2265_v57  ;;  %v2769_v8 = vadd.f32 %v6687_v45, %v2268_v55 }
 0x294   :  { %v8565_v39 = vsel %vm3472_vm12, %v2973_v25, %v2966_v33  ;;  %v8567_v11 = vmax.f32 %v3006_v44, %v3007_v32  ;;  %v8569_v41 = vmax.f32 %v2992_v0, %v2993_v12  ;;  %v8571_v24 = vmax.f32 %v3032_v54, %v3033_v17  ;;  %v6638_v12 = vpop.f32.mrf.mxu1  ;;  %v2641_v54 = vpop.f32.mrf.mxu0 }
 0x295   :  { %v2899_v9 = vcombine.high %v2835_v16, %v2835_v16  ;;  %v3016_v50 = vsel %vm2959_vm11, %v2835_v16, -inf  ;;  %v2838_v3 = vmax.f32 %v2806_v46, 0.0  ;;  %v2805_v59 = vadd.f32 %v8443_v6, %v2766_v34 }
 0x296   :  { %v8575_v30 = vmax.f32 %v2999_v61, %v3000_v22  ;;  %v3040_v27 = vrot.slane %v3039_v14, 2  ;;  %v3017_v58 = vrot.slane %v3016_v50, 4  ;;  %v2808_v33 = vadd.f32 %v8443_v6, %v2769_v8 }
 0x297   :  { %v3023_v44 = vsel %vm2959_vm11, %v2899_v9, -inf  ;;  %v2902_v32 = vcombine.high %v2838_v3, %v2838_v3  ;;  %v3058_v0 = vsel %vm2959_vm11, %v2838_v3, -inf  ;;  %v2837_v26 = vmax.f32 %v2805_v59, 0.0  ;;  %v6690_v3 = vpop.f32.mrf.mxu0 }
 0x298   :  { %v3035_v25 = vrot.slane %v8571_v24, 1  ;;  %v3018_v37 = vmax.f32 %v3016_v50, %v3017_v58  ;;  %v3024_v28 = vrot.slane %v3023_v44, 4  ;;  %v2267_v5 = vadd.f32 %v2140_v23, %v8446_v13  ;;  %v2150_v50 = vpop.f32.mrf.mxu1 }
 0x299   :  { %v3059_v61 = vrot.slane %v3058_v0, 4  ;;  %v3065_v38 = vsel %vm2959_vm11, %v2902_v32, -inf  ;;  %v2901_v1 = vcombine.high %v2837_v26, %v2837_v26  ;;  %v3044_v47 = vsel %vm2959_vm11, %v2837_v26, -inf  ;;  %v2651_v49 = vpop.f32.mrf.mxu0 }
 0x29a   :  { %v3041_v57 = vmax.f32 %v3039_v14, %v3040_v27  ;;  %v3019_v55 = vrot.slane %v3018_v37, 2  ;;  %v3025_v45 = vmax.f32 %v3023_v44, %v3024_v28  ;;  %v3066_v22 = vrot.slane %v3065_v38, 4  ;;  %v3597_v27 = vld [vmem:[#allocation4 + $0x28] sm:$0xff] }
 0x29b   :  { %v3060_v17 = vmax.f32 %v3058_v0, %v3059_v61  ;;  %v3045_v16 = vrot.slane %v3044_v47, 4  ;;  %v3051_v46 = vsel %vm2959_vm11, %v2901_v1, -inf  ;;  %v2840_v34 = vmax.f32 %v2808_v33, 0.0  ;;  %6725 = vmatprep.subr.mxu0 %v3597_v27 }
 0x29c   :  { %v3020_v8 = vmax.f32 %v3018_v37, %v3019_v55  ;;  %v3026_v9 = vrot.slane %v3025_v45, 2  ;;  %v3067_v13 = vmax.f32 %v3065_v38, %v3066_v22  ;;  %v3052_v23 = vrot.slane %v3051_v46, 4  ;;  %6726 = vmatpush3.msra.mxu0 %v3597_v27 }
 0x29d   :  { %v3061_v59 = vrot.slane %v3060_v17, 2  ;;  %v3046_v58 = vmax.f32 %v3044_v47, %v3045_v16  ;;  %v2904_v32 = vcombine.high %v2840_v34, %v2840_v34  ;;  %v3086_v14 = vsel %vm2959_vm11, %v2840_v34, -inf  ;;  %v6641_v47 = vpop.f32.mrf.mxu1  ;;  %v3596_v16 = vld [vmem:[#allocation4 + $0x20] sm:$0xff] }
 0x29e   :  { %v3021_v44 = vrot.slane %v3020_v8, 1  ;;  %v3027_v26 = vmax.f32 %v3025_v45, %v3026_v9  ;;  %v3068_v0 = vrot.slane %v3067_v13, 2  ;;  %v3053_v28 = vmax.f32 %v3051_v46, %v3052_v23  ;;  %6727 = vmatprep.subr.mxu0 %v3596_v16 }
 0x29f   :  { %v3062_v61 = vmax.f32 %v3060_v17, %v3061_v59  ;;  %v3047_v33 = vrot.slane %v3046_v58, 2  ;;  %v3087_v37 = vrot.slane %v3086_v14, 4  ;;  %v3093_v1 = vsel %vm2959_vm11, %v2904_v32, -inf  ;;  %6728 = vmatpush3.msra.mxu0 %v3596_v16 }
 0x2a0   :  { %v3042_v38 = vrot.slane %v3041_v57, 1  ;;  %v3022_v55 = vmax.f32 %v3020_v8, %v3021_v44  ;;  %v3028_v22 = vrot.slane %v3027_v26, 1  ;;  %v3054_v20 = vrot.slane %v3053_v28, 2 }
 0x2a1   :  { %v8587_v34 = vmax.f32 %v3067_v13, %v3068_v0  ;;  %v3048_v48 = vmax.f32 %v3046_v58, %v3047_v33  ;;  %v3088_v45 = vmax.f32 %v3086_v14, %v3087_v37  ;;  %v3094_v9 = vrot.slane %v3093_v1, 4  ;;  %v2160_v14 = vpop.f32.mrf.mxu1  ;;  %v8595_v0 = vld [vmem:[#allocation4 + $0x98] sm:$0xff] }
 0x2a2   :  { %v3029_v46 = vmax.f32 %v3027_v26, %v3028_v22  ;;  %v3063_v17 = vrot.slane %v3062_v61, 1  ;;  %v3055_v23 = vmax.f32 %v3053_v28, %v3054_v20  ;;  %v2768_v59 = vadd.f32 %v2641_v54, %v2267_v5  ;;  %v6693_v26 = vpop.f32.mrf.mxu0  ;;  %6801 = vmatprep.subr.mxu1 %v8595_v0 }
 0x2a3   :  { %v3036_v32 = vmax.f32 %v8571_v24, %v3035_v25  ;;  %v3049_v27 = vrot.slane %v3048_v48, 1  ;;  %v3089_v8 = vrot.slane %v3088_v45, 2  ;;  %v3095_v44 = vmax.f32 %v3093_v1, %v3094_v9 }
 0x2a4   :  { %v8590_v53 = vmax.f32 %v3041_v57, %v3042_v38  ;;  %v3486_v19 = vsel %vm3472_vm12, %v3029_v46, %v3022_v55  ;;  %v2807_v13 = vadd.f32 %v8443_v6, %v2768_v59  ;;  %v2270_v58 = vadd.f32 %v6638_v12, %v8450_v4  ;;  %v2661_v16 = vpop.f32.mrf.mxu0 }
 0x2a5   :  { %v8598_v20 = vsel %vm3474_vm13, %v3036_v32, %v3486_v19  ;;  %v3056_v25 = vrot.slane %v3055_v23, 1  ;;  %v3090_v5 = vmax.f32 %v3088_v45, %v3089_v8  ;;  %v8602_v54 = vmax.f32 %v3062_v61, %v3063_v17 }
 0x2a6   :  { %v2839_v57 = vmax.f32 %v2807_v13, 0.0  ;;  %v2771_v28 = vadd.f32 %v6690_v3, %v2270_v58  ;;  %v2269_v33 = vadd.f32 %v2150_v50, %v8454_v51  ;;  %v8605_v4 = vmax.f32 %v3048_v48, %v3049_v27  ;;  %v3570_v51 = vld [vmem:[#allocation4 + $0x18] sm:$0xff] }
 0x2a7   :  { %v3096_v12 = vrot.slane %v3095_v44, 2  ;;  %v2272_v37 = vadd.f32 %v6641_v47, %v8458_v29  ;;  %v2271_v19 = vadd.f32 %v2160_v14, %v8462_v15  ;;  %v8611_v61 = vmax.f32 %v3055_v23, %v3056_v25  ;;  %6741 = vmatprep.subr.mxu0 %v3570_v51 }
 0x2a8   :  { %v2903_v1 = vcombine.high %v2839_v57, %v2839_v57  ;;  %v3072_v38 = vsel %vm2959_vm11, %v2839_v57, -inf  ;;  %v2810_v55 = vadd.f32 %v8443_v6, %v2771_v28  ;;  %v2770_v22 = vadd.f32 %v2651_v49, %v2269_v33 }
 0x2a9   :  { %v3091_v45 = vrot.slane %v3090_v5, 1  ;;  %v3073_v3 = vrot.slane %v3072_v38, 4  ;;  %v2773_v9 = vadd.f32 %v6693_v26, %v2272_v37  ;;  %v2772_v47 = vadd.f32 %v2661_v16, %v2271_v19 }
 0x2aa   :  { %v3079_v48 = vsel %vm2959_vm11, %v2903_v1, -inf  ;;  %v2842_v50 = vmax.f32 %v2810_v55, 0.0  ;;  %v2809_v29 = vadd.f32 %v8443_v6, %v2770_v22  ;;  %v3097_v15 = vmax.f32 %v3095_v44, %v3096_v12 }
 0x2ab   :  { %v3074_v46 = vmax.f32 %v3072_v38, %v3073_v3  ;;  %v3080_v17 = vrot.slane %v3079_v48, 4  ;;  %v2812_v59 = vadd.f32 %v8443_v6, %v2773_v9  ;;  %v2811_v27 = vadd.f32 %v8443_v6, %v2772_v47 }
 0x2ac   :  { %v2906_v49 = vcombine.high %v2842_v50, %v2842_v50  ;;  %v3114_v23 = vsel %vm2959_vm11, %v2842_v50, -inf  ;;  %v2841_v32 = vmax.f32 %v2809_v29, 0.0  ;;  %v8618_v26 = vmax.f32 %v3090_v5, %v3091_v45  ;;  %v6644_v45 = vpop.f32.mrf.mxu1 }
 0x2ad   :  { %v3075_v8 = vrot.slane %v3074_v46, 2  ;;  %v3081_v13 = vmax.f32 %v3079_v48, %v3080_v17  ;;  %v3115_v58 = vrot.slane %v3114_v23, 4  ;;  %v2844_v14 = vmax.f32 %v2812_v59, 0.0 }
 0x2ae   :  { %v3121_v25 = vsel %vm2959_vm11, %v2906_v49, -inf  ;;  %v2905_v57 = vcombine.high %v2841_v32, %v2841_v32  ;;  %v3100_v44 = vsel %vm2959_vm11, %v2841_v32, -inf  ;;  %v2843_v5 = vmax.f32 %v2811_v27, 0.0  ;;  %v2170_v27 = vpop.f32.mrf.mxu1 }
 0x2af   :  { %v3076_v28 = vmax.f32 %v3074_v46, %v3075_v8  ;;  %v3082_v33 = vrot.slane %v3081_v13, 2  ;;  %v3116_v12 = vmax.f32 %v3114_v23, %v3115_v58  ;;  %v3122_v37 = vrot.slane %v3121_v25, 4  ;;  %v6696_v8 = vpop.f32.mrf.mxu0 }
 0x2b0   :  { %v3101_v19 = vrot.slane %v3100_v44, 4  ;;  %v3107_v1 = vsel %vm2959_vm11, %v2905_v57, -inf  ;;  %v2908_v38 = vcombine.high %v2844_v14, %v2844_v14  ;;  %v3142_v55 = vsel %vm2959_vm11, %v2844_v14, -inf }
 0x2b1   :  { %v3083_v22 = vmax.f32 %v3081_v13, %v3082_v33  ;;  %v3117_v16 = vrot.slane %v3116_v12, 2  ;;  %v3123_v3 = vmax.f32 %v3121_v25, %v3122_v37  ;;  %v3108_v51 = vrot.slane %v3107_v1, 4 }
 0x2b2   :  { %v3102_v9 = vmax.f32 %v3100_v44, %v3101_v19  ;;  %v3143_v48 = vrot.slane %v3142_v55, 4  ;;  %v3149_v50 = vsel %vm2959_vm11, %v2908_v38, -inf  ;;  %v3098_v29 = vrot.slane %v3097_v15, 1 }
 0x2b3   :  { %v3077_v47 = vrot.slane %v3076_v28, 1  ;;  %v3084_v46 = vrot.slane %v3083_v22, 1  ;;  %v3118_v17 = vmax.f32 %v3116_v12, %v3117_v16  ;;  %v3109_v49 = vmax.f32 %v3107_v1, %v3108_v51 }
 0x2b4   :  { %v3103_v59 = vrot.slane %v3102_v9, 2  ;;  %v3144_v23 = vmax.f32 %v3142_v55, %v3143_v48  ;;  %v3150_v32 = vrot.slane %v3149_v50, 4  ;;  %v3124_v14 = vrot.slane %v3123_v3, 2  ;;  %v2671_v48 = vpop.f32.mrf.mxu0 }
 0x2b5   :  { %v3085_v58 = vmax.f32 %v3083_v22, %v3084_v46  ;;  %v3119_v13 = vrot.slane %v3118_v17, 1  ;;  %v2907_v25 = vcombine.high %v2843_v5, %v2843_v5  ;;  %v3110_v44 = vrot.slane %v3109_v49, 2 }
 0x2b6   :  { %v3104_v57 = vmax.f32 %v3102_v9, %v3103_v59  ;;  %v3145_v33 = vrot.slane %v3144_v23, 2  ;;  %v3151_v37 = vmax.f32 %v3149_v50, %v3150_v32  ;;  %v8625_v19 = vmax.f32 %v3097_v15, %v3098_v29  ;;  %v6647_v50 = vpop.f32.mrf.mxu1 }
 0x2b7   :  { %v3078_v38 = vmax.f32 %v3076_v28, %v3077_v47  ;;  %v3128_v12 = vsel %vm2959_vm11, %v2843_v5, -inf  ;;  %v3135_v1 = vsel %vm2959_vm11, %v2907_v25, -inf  ;;  %v3111_v16 = vmax.f32 %v3109_v49, %v3110_v44 }
 0x2b8   :  { %v3105_v55 = vrot.slane %v3104_v57, 1  ;;  %v3146_v51 = vmax.f32 %v3144_v23, %v3145_v33  ;;  %v3152_v22 = vrot.slane %v3151_v37, 2  ;;  %v3129_v46 = vrot.slane %v3128_v12, 4 }
 0x2b9   :  { %v3136_v24 = vrot.slane %v3135_v1, 4  ;;  %v2274_v9 = vadd.f32 %v6644_v45, %v8466_v43  ;;  %v2273_v59 = vadd.f32 %v2170_v27, %v8470_v7  ;;  %v8632_v15 = vsel %vm3472_vm12, %v3085_v58, %v3078_v38  ;;  %v6699_v7 = vpop.f32.mrf.mxu0  ;;  %v2180_v38 = vpop.f32.mrf.mxu1 }
 0x2ba   :  { %v8634_v28 = vmax.f32 %v3118_v17, %v3119_v13  ;;  %v8636_v5 = vmax.f32 %v3123_v3, %v3124_v14  ;;  %v3112_v29 = vrot.slane %v3111_v16, 1  ;;  %v3130_v47 = vmax.f32 %v3128_v12, %v3129_v46 }
 0x2bb   :  { %v3137_v49 = vmax.f32 %v3135_v1, %v3136_v24  ;;  %v2775_v23 = vadd.f32 %v6696_v8, %v2274_v9  ;;  %v2774_v32 = vadd.f32 %v2671_v48, %v2273_v59  ;;  %v8638_v25 = vmax.f32 %v3104_v57, %v3105_v55 }
 0x2bc   :  { %v3147_v44 = vrot.slane %v3146_v51, 1  ;;  %v8640_v33 = vmax.f32 %v3151_v37, %v3152_v22  ;;  %v2276_v43 = vadd.f32 %v6647_v50, %v8474_v42  ;;  %v3131_v45 = vrot.slane %v3130_v47, 2  ;;  %v2681_v50 = vpop.f32.mrf.mxu0 }
 0x2bd   :  { %v3138_v58 = vrot.slane %v3137_v49, 2  ;;  %v2814_v17 = vadd.f32 %v8443_v6, %v2775_v23  ;;  %v2813_v3 = vadd.f32 %v8443_v6, %v2774_v32  ;;  %v8645_v13 = vmax.f32 %v3111_v16, %v3112_v29  ;;  %v6650_v23 = vpop.f32.mrf.mxu1 }
 0x2be   :  { %v2777_v24 = vadd.f32 %v6699_v7, %v2276_v43  ;;  %v3014_v8 = vrot.slane %v8561_v10, 1  ;;  %v3475_v14 = vsel %vm3474_vm13, %v8546_v21, %v8565_v39  ;;  %v3132_v42 = vmax.f32 %v3130_v47, %v3131_v45 }
 0x2bf   :  { %v3139_v27 = vmax.f32 %v3137_v49, %v3138_v58  ;;  %v2846_v57 = vmax.f32 %v2814_v17, 0.0  ;;  %v2845_v37 = vmax.f32 %v2813_v3, 0.0  ;;  %v8651_v12 = vmax.f32 %v3146_v51, %v3147_v44 }
 0x2c0   :  { %v3154_v1 = vrot.slane %v8640_v33, 1  ;;  %v2816_v55 = vadd.f32 %v8443_v6, %v2777_v24  ;;  %v3015_v16 = vmax.f32 %v8561_v10, %v3014_v8  ;;  %v3133_v22 = vrot.slane %v3132_v42, 1 }
 0x2c1   :  { %v2910_v48 = vcombine.high %v2846_v57, %v2846_v57  ;;  %v3170_v21 = vsel %vm2959_vm11, %v2846_v57, -inf  ;;  %v3477_v39 = vsel %vm3476_vm14, %v8552_v52, %v3475_v14  ;;  %v2909_v9 = vcombine.high %v2845_v37, %v2845_v37  ;;  %v6702_v57 = vpop.f32.mrf.mxu0 }
 0x2c2   :  { %v3171_v46 = vrot.slane %v3170_v21, 4  ;;  %v3156_v59 = vsel %vm2959_vm11, %v2845_v37, -inf  ;;  %v2848_v51 = vmax.f32 %v2816_v55, 0.0  ;;  %v3140_v29 = vrot.slane %v3139_v27, 1 }
 0x2c3   :  { %v3177_v47 = vsel %vm2959_vm11, %v2910_v48, -inf  ;;  %v3157_v49 = vrot.slane %v3156_v59, 4  ;;  %v2275_v10 = vadd.f32 %v2180_v38, %v8478_v40  ;;  %v3163_v43 = vsel %vm2959_vm11, %v2909_v9, -inf  ;;  %v2190_v48 = vpop.f32.mrf.mxu1 }
 0x2c4   :  { %v3172_v32 = vmax.f32 %v3170_v21, %v3171_v46  ;;  %v3178_v44 = vrot.slane %v3177_v47, 4  ;;  %v2912_v7 = vcombine.high %v2848_v51, %v2848_v51  ;;  %v3134_v45 = vmax.f32 %v3132_v42, %v3133_v22 }
 0x2c5   :  { %v3158_v52 = vmax.f32 %v3156_v59, %v3157_v49  ;;  %v3164_v58 = vrot.slane %v3163_v43, 4  ;;  %v3198_v17 = vsel %vm2959_vm11, %v2848_v51, -inf  ;;  %v3479_v38 = vsel %vm3478_vm15, %v8569_v41, %v3477_v39  ;;  %v2691_v41 = vpop.f32.mrf.mxu0 }
 0x2c6   :  { %v3173_v3 = vrot.slane %v3172_v32, 2  ;;  %v3179_v24 = vmax.f32 %v3177_v47, %v3178_v44  ;;  %v3199_v8 = vrot.slane %v3198_v17, 4  ;;  %v3205_v14 = vsel %vm2959_vm11, %v2912_v7, -inf }
 0x2c7   :  { %v3159_v37 = vrot.slane %v3158_v52, 2  ;;  %v3165_v55 = vmax.f32 %v3163_v43, %v3164_v58  ;;  %v3206_v40 = vrot.slane %v3205_v14, 4  ;;  %v3141_v21 = vmax.f32 %v3139_v27, %v3140_v29 }
 0x2c8   :  { %v3174_v46 = vmax.f32 %v3172_v32, %v3173_v3  ;;  %v3200_v42 = vmax.f32 %v3198_v17, %v3199_v8  ;;  %v3481_v22 = vsel %vm3480_vm0, %v8575_v30, %v3479_v38  ;;  %v3180_v44 = vrot.slane %v3179_v24, 2  ;;  %v6653_v32 = vpop.f32.mrf.mxu1 }
 0x2c9   :  { %v3160_v9 = vmax.f32 %v3158_v52, %v3159_v37  ;;  %v3166_v59 = vrot.slane %v3165_v55, 2  ;;  %v3207_v51 = vmax.f32 %v3205_v14, %v3206_v40  ;;  %v3483_v47 = vsel %vm3482_vm1, %v8567_v11, %v3481_v22 }
 0x2ca   :  { %v3175_v49 = vrot.slane %v3174_v46, 1  ;;  %v3201_v43 = vrot.slane %v3200_v42, 2  ;;  %v8672_v7 = vsel %vm3484_vm2, %v3015_v16, %v3483_v47  ;;  %v2776_v30 = vadd.f32 %v2681_v50, %v2275_v10 }
 0x2cb   :  { %v3161_v39 = vrot.slane %v3160_v9, 1  ;;  %v3167_v27 = vmax.f32 %v3165_v55, %v3166_v59  ;;  %v3208_v29 = vrot.slane %v3207_v51, 2  ;;  %6769 = vmatprep.mubr.msk.f32.mxu1 %vm3600_vm8, %v8672_v7  ;;  %v8677_v52 = vmax.f32 %v8640_v33, %v3154_v1  ;;  %v6705_v33 = vpop.f32.mrf.mxu0 }
 0x2cc   :  { %v3202_v58 = vmax.f32 %v3200_v42, %v3201_v43  ;;  %v2278_v11 = vadd.f32 %v6650_v23, %v8482_v31  ;;  %v2277_v17 = vadd.f32 %v2190_v48, %v8488_v56  ;;  %v8682_v16 = vsel %vm3472_vm12, %v3141_v21, %v3134_v45  ;;  %v2200_v43 = vpop.f32.mrf.mxu1 }
 0x2cd   :  { %v3168_v3 = vrot.slane %v3167_v27, 1  ;;  %v3209_v8 = vmax.f32 %v3207_v51, %v3208_v29  ;;  %v2815_v14 = vadd.f32 %v8443_v6, %v2776_v30  ;;  %v8685_v37 = vmax.f32 %v3179_v24, %v3180_v44 }
 0x2ce   :  { %v2779_v55 = vadd.f32 %v6702_v57, %v2278_v11  ;;  %v2778_v50 = vadd.f32 %v2691_v41, %v2277_v17  ;;  %v2280_v10 = vadd.f32 %v6653_v32, %v8492_v18  ;;  %v8688_v1 = vmax.f32 %v3174_v46, %v3175_v49 }
 0x2cf   :  { %v8690_v40 = vmax.f32 %v3160_v9, %v3161_v39  ;;  %v3203_v31 = vrot.slane %v3202_v58, 1  ;;  %v2847_v56 = vmax.f32 %v2815_v14, 0.0  ;;  %v8692_v23 = vmax.f32 %v3167_v27, %v3168_v3 }
 0x2d0   :  { %v2818_v45 = vadd.f32 %v8443_v6, %v2779_v55  ;;  %v2817_v38 = vadd.f32 %v8443_v6, %v2778_v50  ;;  %v2781_v48 = vadd.f32 %v6705_v33, %v2280_v10  ;;  %v3210_v24 = vrot.slane %v3209_v8, 1  ;;  %v6656_v10 = vpop.f32.mrf.mxu1 }
 0x2d1   :  { %v2911_v21 = vcombine.high %v2847_v56, %v2847_v56  ;;  %v3184_v57 = vsel %vm2959_vm11, %v2847_v56, -inf  ;;  %v3488_v18 = vsel %vm3476_vm14, %v8590_v53, %v8598_v20  ;;  %v8701_v59 = vmax.f32 %v3202_v58, %v3203_v31 }
 0x2d2   :  { %v3185_v46 = vrot.slane %v3184_v57, 4  ;;  %v2850_v42 = vmax.f32 %v2818_v45, 0.0  ;;  %v2849_v22 = vmax.f32 %v2817_v38, 0.0  ;;  %v2820_v9 = vadd.f32 %v8443_v6, %v2781_v48 }
 0x2d3   :  { %v3191_v51 = vsel %vm2959_vm11, %v2911_v21, -inf  ;;  %v9583_v47 = vrot.slane %v8587_v34, 1  ;;  %v3489_v44 = vsel %vm3478_vm15, %v8605_v4, %v3488_v18  ;;  %v8715_v18 = vmax.f32 %v3209_v8, %v3210_v24 }
 0x2d4   :  { %v3186_v41 = vmax.f32 %v3184_v57, %v3185_v46  ;;  %v3192_v39 = vrot.slane %v3191_v51, 4  ;;  %v2914_v53 = vcombine.high %v2850_v42, %v2850_v42  ;;  %v3226_v20 = vsel %vm2959_vm11, %v2850_v42, -inf }
 0x2d5   :  { %v3071_v49 = vmax.f32 %v8587_v34, %v9583_v47  ;;  %v3227_v27 = vrot.slane %v3226_v20, 4  ;;  %v2913_v29 = vcombine.high %v2849_v22, %v2849_v22  ;;  %v3212_v30 = vsel %vm2959_vm11, %v2849_v22, -inf  ;;  %v2701_v34 = vpop.f32.mrf.mxu0 }
 0x2d6   :  { %v2852_v32 = vmax.f32 %v2820_v9, 0.0  ;;  %v3187_v58 = vrot.slane %v3186_v41, 2  ;;  %v3193_v11 = vmax.f32 %v3191_v51, %v3192_v39  ;;  %v3233_v17 = vsel %vm2959_vm11, %v2914_v53, -inf }
 0x2d7   :  { %v3213_v3 = vrot.slane %v3212_v30, 4  ;;  %v3228_v14 = vmax.f32 %v3226_v20, %v3227_v27  ;;  %v3234_v55 = vrot.slane %v3233_v17, 4  ;;  %v3219_v4 = vsel %vm2959_vm11, %v2913_v29, -inf  ;;  %v6708_v9 = vpop.f32.mrf.mxu0 }
 0x2d8   :  { %v2916_v50 = vcombine.high %v2852_v32, %v2852_v32  ;;  %v3188_v33 = vmax.f32 %v3186_v41, %v3187_v58  ;;  %v3194_v31 = vrot.slane %v3193_v11, 2  ;;  %v3220_v45 = vrot.slane %v3219_v4, 4  ;;  %v2210_v41 = vpop.f32.mrf.mxu1 }
 0x2d9   :  { %v3214_v56 = vmax.f32 %v3212_v30, %v3213_v3  ;;  %v3229_v38 = vrot.slane %v3228_v14, 2  ;;  %v3235_v48 = vmax.f32 %v3233_v17, %v3234_v55  ;;  %v3254_v21 = vsel %vm2959_vm11, %v2852_v32, -inf }
 0x2da   :  { %v3261_v57 = vsel %vm2959_vm11, %v2916_v50, -inf  ;;  %v3195_v46 = vmax.f32 %v3193_v11, %v3194_v31  ;;  %v3221_v22 = vmax.f32 %v3219_v4, %v3220_v45  ;;  %v3189_v51 = vrot.slane %v3188_v33, 1  ;;  %v6659_v45 = vpop.f32.mrf.mxu1 }
 0x2db   :  { %v3215_v42 = vrot.slane %v3214_v56, 2  ;;  %v3230_v47 = vmax.f32 %v3228_v14, %v3229_v38  ;;  %v3255_v39 = vrot.slane %v3254_v21, 4  ;;  %v3262_v53 = vrot.slane %v3261_v57, 4  ;;  %v2711_v14 = vpop.f32.mrf.mxu0 }
 0x2dc   :  { %v3196_v20 = vrot.slane %v3195_v46, 1  ;;  %v3236_v27 = vrot.slane %v3235_v48, 2  ;;  %v3222_v30 = vrot.slane %v3221_v22, 2  ;;  %v2279_v32 = vadd.f32 %v2200_v43, %v8496_v36  ;;  %v4210_v43 = vld [vmem:[#allocation4 + $0x90] sm:$0xff] }
 0x2dd   :  { %v3216_v29 = vmax.f32 %v3214_v56, %v3215_v42  ;;  %v3256_v58 = vmax.f32 %v3254_v21, %v3255_v39  ;;  %v3263_v17 = vmax.f32 %v3261_v57, %v3262_v53  ;;  %v2282_v8 = vadd.f32 %v6656_v10, %v8500_v2  ;;  %v6711_v42 = vpop.f32.mrf.mxu0  ;;  %v4208_v39 = vld [vmem:[#allocation4 + $0x80] sm:$0xff] }
 0x2de   :  { %v3197_v24 = vmax.f32 %v3195_v46, %v3196_v20  ;;  %v3231_v11 = vrot.slane %v3230_v47, 1  ;;  %v3223_v3 = vmax.f32 %v3221_v22, %v3222_v30  ;;  %v3490_v55 = vsel %vm3480_vm0, %v8611_v61, %v3489_v44 }
 0x2df   :  { %v3217_v4 = vrot.slane %v3216_v29, 1  ;;  %v3257_v50 = vrot.slane %v3256_v58, 2  ;;  %v3264_v31 = vrot.slane %v3263_v17, 2  ;;  %v3491_v56 = vsel %vm3482_vm1, %v8602_v54, %v3490_v55 }
 0x2e0   :  { %v3190_v38 = vmax.f32 %v3188_v33, %v3189_v51  ;;  %v8723_v21 = vmax.f32 %v3235_v48, %v3236_v27  ;;  %v3224_v36 = vrot.slane %v3223_v3, 1  ;;  %v8726_v2 = vsel %vm3484_vm2, %v3071_v49, %v3491_v56  ;;  %v4209_v49 = vld [vmem:[#allocation4 + $0x88] sm:$0xff] }
 0x2e1   :  { %v8728_v10 = vmax.f32 %v3256_v58, %v3257_v50  ;;  %v8730_v57 = vmax.f32 %v3263_v17, %v3264_v31  ;;  %6770 = vmatmul.mubr.msk.f32.vlgmr.msra.gmra.mxu1 %vm3600_vm8, %v8726_v2  ;;  %v2780_v61 = vadd.f32 %v2701_v34, %v2279_v32  ;;  %v2783_v44 = vadd.f32 %v6708_v9, %v2282_v8  ;;  %v2220_v58 = vpop.f32.mrf.mxu1 }
 0x2e2   :  { %v8734_v46 = vmax.f32 %v3230_v47, %v3231_v11  ;;  %v2281_v54 = vadd.f32 %v2210_v41, %v8504_v35  ;;  %v2284_v33 = vadd.f32 %v6659_v45, %v8509_v60  ;;  %v3126_v48 = vrot.slane %v8636_v5, 1  ;;  %6802 = vmatpush3.msra.mxu1 %v8595_v0 }
 0x2e3   :  { %v8741_v22 = vsel %vm3472_vm12, %v3197_v24, %v3190_v38  ;;  %v8743_v51 = vmax.f32 %v3216_v29, %v3217_v4  ;;  %v2819_v34 = vadd.f32 %v8443_v6, %v2780_v61  ;;  %v2822_v9 = vadd.f32 %v8443_v6, %v2783_v44  ;;  %6803 = vmatprep.subr.mxu1 %v4210_v43  ;;  %v8757_v6 = vld [vmem:[%s9437_s4] ss:$0 sm:$0xff] }
 0x2e4   :  { %v8747_v47 = vmax.f32 %v3223_v3, %v3224_v36  ;;  %v2782_v35 = vadd.f32 %v2711_v14, %v2281_v54  ;;  %v2785_v60 = vadd.f32 %v6711_v42, %v2284_v33  ;;  %v3494_v0 = vsel %vm3474_vm13, %v8618_v26, %v8632_v15  ;;  %6804 = vmatpush3.msra.mxu1 %v4210_v43 }
 0x2e5   :  { %v3259_v53 = vrot.slane %v8728_v10, 1  ;;  %v3266_v41 = vrot.slane %v8730_v57, 1  ;;  %v2851_v20 = vmax.f32 %v2819_v34, 0.0  ;;  %v2854_v27 = vmax.f32 %v2822_v9, 0.0  ;;  %6805 = vmatprep.subr.mxu1 %v4209_v49 }
 0x2e6   :  { %v2821_v29 = vadd.f32 %v8757_v6, %v2782_v35  ;;  %v2824_v30 = vadd.f32 %v8757_v6, %v2785_v60  ;;  %v8762_v26 = vmax.f32 %v8636_v5, %v3126_v48  ;;  %v3495_v15 = vsel %vm3476_vm14, %v8625_v19, %v3494_v0  ;;  %6806 = vmatpush3.msra.mxu1 %v4209_v49 }
 0x2e7   :  { %v2915_v17 = vcombine.high %v2851_v20, %v2851_v20  ;;  %v3240_v32 = vsel %vm2959_vm11, %v2851_v20, -inf  ;;  %v2918_v8 = vcombine.high %v2854_v27, %v2854_v27  ;;  %v3282_v24 = vsel %vm2959_vm11, %v2854_v27, -inf  ;;  %6807 = vmatprep.subr.mxu1 %v4208_v39 }
 0x2e8   :  { %v3241_v11 = vrot.slane %v3240_v32, 4  ;;  %v3283_v3 = vrot.slane %v3282_v24, 4  ;;  %v2853_v55 = vmax.f32 %v2821_v29, 0.0  ;;  %v2856_v14 = vmax.f32 %v2824_v30, 0.0  ;;  %6808 = vmatpush3.msra.mxu1 %v4208_v39  ;;  %v2721_v39 = vpop.f32.mrf.mxu0 }
 0x2e9   :  { %v3247_v5 = vsel %vm2959_vm11, %v2915_v17, -inf  ;;  %v3289_v4 = vsel %vm2959_vm11, %v2918_v8, -inf  ;;  %v3496_v19 = vsel %vm3478_vm15, %v8638_v25, %v3495_v15  ;;  %v2283_v50 = vadd.f32 %v2220_v58, %v8513_v63  ;;  %v6662_v15 = vpop.f32.mrf.mxu1 }
 0x2ea   :  { %v3242_v31 = vmax.f32 %v3240_v32, %v3241_v11  ;;  %v3248_v56 = vrot.slane %v3247_v5, 4  ;;  %v3284_v45 = vmax.f32 %v3282_v24, %v3283_v3  ;;  %v3290_v38 = vrot.slane %v3289_v4, 4 }
 0x2eb   :  { %v2917_v36 = vcombine.high %v2853_v55, %v2853_v55  ;;  %v3268_v43 = vsel %vm2959_vm11, %v2853_v55, -inf  ;;  %v2920_v61 = vcombine.high %v2856_v14, %v2856_v14  ;;  %v3310_v44 = vsel %vm2959_vm11, %v2856_v14, -inf }
 0x2ec   :  { %v3243_v54 = vrot.slane %v3242_v31, 2  ;;  %v3249_v33 = vmax.f32 %v3247_v5, %v3248_v56  ;;  %v3285_v48 = vrot.slane %v3284_v45, 2  ;;  %v3291_v49 = vmax.f32 %v3289_v4, %v3290_v38  ;;  %v6714_v4 = vpop.f32.mrf.mxu0 }
 0x2ed   :  { %v3269_v42 = vrot.slane %v3268_v43, 4  ;;  %v3275_v34 = vsel %vm2959_vm11, %v2917_v36, -inf  ;;  %v3311_v25 = vrot.slane %v3310_v44, 4  ;;  %v3317_v63 = vsel %vm2959_vm11, %v2920_v61, -inf  ;;  %v2230_v36 = vpop.f32.mrf.mxu1 }
 0x2ee   :  { %v8778_v9 = vmax.f32 %v8728_v10, %v3259_v53  ;;  %v3244_v35 = vmax.f32 %v3242_v31, %v3243_v54  ;;  %v3250_v60 = vrot.slane %v3249_v33, 2  ;;  %v3286_v0 = vmax.f32 %v3284_v45, %v3285_v48 }
 0x2ef   :  { %v3270_v20 = vmax.f32 %v3268_v43, %v3269_v42  ;;  %v3276_v27 = vrot.slane %v3275_v34, 4  ;;  %v3312_v29 = vmax.f32 %v3310_v44, %v3311_v25  ;;  %v3318_v30 = vrot.slane %v3317_v63, 4  ;;  %v2731_v25 = vpop.f32.mrf.mxu0 }
 0x2f0   :  { %v3245_v58 = vrot.slane %v3244_v35, 1  ;;  %v3251_v17 = vmax.f32 %v3249_v33, %v3250_v60  ;;  %v3292_v32 = vrot.slane %v3291_v49, 2  ;;  %v2784_v8 = vadd.f32 %v2721_v39, %v2283_v50 }
 0x2f1   :  { %v3271_v24 = vrot.slane %v3270_v20, 2  ;;  %v3277_v11 = vmax.f32 %v3275_v34, %v3276_v27  ;;  %v3313_v3 = vrot.slane %v3312_v29, 2  ;;  %v3319_v55 = vmax.f32 %v3317_v63, %v3318_v30 }
 0x2f2   :  { %v3246_v14 = vmax.f32 %v3244_v35, %v3245_v58  ;;  %v3252_v10 = vrot.slane %v3251_v17, 1  ;;  %v3287_v53 = vrot.slane %v3286_v0, 1  ;;  %v3497_v5 = vsel %vm3480_vm0, %v8645_v13, %v3496_v19  ;;  %v9584_v58 = vld [vmem:[#allocation24_spill] sm:$0xff] }
 0x2f3   :  { %v3272_v31 = vmax.f32 %v3270_v20, %v3271_v24  ;;  %v3278_v56 = vrot.slane %v3277_v11, 2  ;;  %v3314_v45 = vmax.f32 %v3312_v29, %v3313_v3  ;;  %v3320_v38 = vrot.slane %v3319_v55, 2  ;;  %v6717_v24 = vpop.f32.mrf.mxu0 }
 0x2f4   :  { %v3253_v43 = vmax.f32 %v3251_v17, %v3252_v10  ;;  %v3498_v50 = vsel %vm3482_vm1, %v8634_v28, %v3497_v5  ;;  %v2823_v61 = vadd.f32 %v8757_v6, %v2784_v8  ;;  %v2286_v44 = vadd.f32 %v6662_v15, %v8517_v62 }
 0x2f5   :  { %v3273_v54 = vrot.slane %v3272_v31, 1  ;;  %v3279_v33 = vmax.f32 %v3277_v11, %v3278_v56  ;;  %v3315_v48 = vrot.slane %v3314_v45, 1  ;;  %v8786_v42 = vmax.f32 %v3319_v55, %v3320_v38 }
 0x2f6   :  { %v8791_v13 = vmax.f32 %v8730_v57, %v3266_v41  ;;  %v8795_v19 = vsel %vm3484_vm2, %v8762_v26, %v3498_v50  ;;  %v2855_v34 = vmax.f32 %v2823_v61, 0.0  ;;  %v2787_v28 = vadd.f32 %v6714_v4, %v2286_v44  ;;  %v6665_v57 = vpop.f32.mrf.mxu1 }
 0x2f7   :  { %v8798_v63 = vsel %vm3472_vm12, %v3253_v43, %v3246_v14  ;;  %v8800_v62 = vmax.f32 %v3286_v0, %v3287_v53  ;;  %v8802_v35 = vmax.f32 %v3291_v49, %v3292_v32  ;;  %v3280_v60 = vrot.slane %v3279_v33, 1  ;;  %6772 = vmatprep.mubr.msk.f32.mxu1 %vm3600_vm8, %v8795_v19  ;;  %v9585_v32 = vld [vmem:[#allocation25_spill] sm:$0xff] }
 0x2f8   :  { %v8806_v41 = vmax.f32 %v3272_v31, %v3273_v54  ;;  %v8808_v39 = vmax.f32 %v3314_v45, %v3315_v48  ;;  %v2919_v26 = vcombine.high %v2855_v34, %v2855_v34  ;;  %v3296_v20 = vsel %vm2959_vm11, %v2855_v34, -inf }
 0x2f9   :  { %v3322_v27 = vrot.slane %v8786_v42, 1  ;;  %v4173_v29 = vrot.slane %v8795_v19, 2  ;;  %v3297_v0 = vrot.slane %v3296_v20, 4  ;;  %v2826_v49 = vadd.f32 %v8757_v6, %v2787_v28 }
 0x2fa   :  { %v8814_v30 = vmax.f32 %v3279_v33, %v3280_v60  ;;  %v3303_v15 = vsel %vm2959_vm11, %v2919_v26, -inf  ;;  %v2285_v17 = vadd.f32 %v2230_v36, %v9584_v58  ;;  %v2288_v8 = vadd.f32 %v6665_v57, %v9585_v32 }
 0x2fb   :  { %v3298_v11 = vmax.f32 %v3296_v20, %v3297_v0  ;;  %v3304_v3 = vrot.slane %v3303_v15, 4  ;;  %v2858_v55 = vmax.f32 %v2826_v49, 0.0  ;;  %v3501_v14 = vsel %vm3474_vm13, %v8651_v12, %v8682_v16  ;;  %v2240_v16 = vpop.f32.mrf.mxu1 }
 0x2fc   :  { %v2786_v10 = vadd.f32 %v2731_v25, %v2285_v17  ;;  %v2789_v53 = vadd.f32 %v6717_v24, %v2288_v8  ;;  %v3182_v5 = vrot.slane %v8685_v37, 1  ;;  %v3502_v4 = vsel %vm3476_vm14, %v8677_v52, %v3501_v14  ;;  %v9586_v8 = vld [vmem:[#allocation26_spill] sm:$0xff] }
 0x2fd   :  { %v3299_v31 = vrot.slane %v3298_v11, 2  ;;  %v3305_v56 = vmax.f32 %v3303_v15, %v3304_v3  ;;  %v2922_v45 = vcombine.high %v2858_v55, %v2858_v55  ;;  %v3338_v38 = vsel %vm2959_vm11, %v2858_v55, -inf  ;;  %v6668_v58 = vpop.f32.mrf.mxu1 }
 0x2fe   :  { %v3339_v36 = vrot.slane %v3338_v38, 4  ;;  %v2825_v43 = vadd.f32 %v8757_v6, %v2786_v10  ;;  %v2828_v50 = vadd.f32 %v8757_v6, %v2789_v53  ;;  %v3503_v12 = vsel %vm3478_vm15, %v8690_v40, %v3502_v4  ;;  %v2741_v40 = vpop.f32.mrf.mxu0 }
 0x2ff   :  { %v3300_v61 = vmax.f32 %v3298_v11, %v3299_v31  ;;  %v3306_v44 = vrot.slane %v3305_v56, 2  ;;  %v3345_v54 = vsel %vm2959_vm11, %v2922_v45, -inf  ;;  %v3504_v52 = vsel %vm3480_vm0, %v8692_v23, %v3503_v12 }
 0x300   :  { %v3340_v33 = vmax.f32 %v3338_v38, %v3339_v36  ;;  %v3346_v48 = vrot.slane %v3345_v54, 4  ;;  %v2857_v34 = vmax.f32 %v2825_v43, 0.0  ;;  %v2860_v28 = vmax.f32 %v2828_v50, 0.0  ;;  %v2250_v38 = vpop.f32.mrf.mxu1 }
 0x301   :  { %v3301_v25 = vrot.slane %v3300_v61, 1  ;;  %v3307_v60 = vmax.f32 %v3305_v56, %v3306_v44  ;;  %v3183_v57 = vmax.f32 %v8685_v37, %v3182_v5  ;;  %v3505_v26 = vsel %vm3482_vm1, %v8688_v1, %v3504_v52  ;;  %v6720_v5 = vpop.f32.mrf.mxu0  ;;  %v9587_v44 = vld [vmem:[#allocation27_spill] sm:$0xff] }
 0x302   :  { %v3341_v20 = vrot.slane %v3340_v33, 2  ;;  %v3347_v0 = vmax.f32 %v3345_v54, %v3346_v48  ;;  %v2921_v49 = vcombine.high %v2857_v34, %v2857_v34  ;;  %v3324_v15 = vsel %vm2959_vm11, %v2857_v34, -inf  ;;  %v9588_v48 = vld [vmem:[#allocation28_spill] sm:$0xff] }
 0x303   :  { %v3308_v17 = vrot.slane %v3307_v60, 1  ;;  %v3325_v23 = vrot.slane %v3324_v15, 4  ;;  %v2924_v32 = vcombine.high %v2860_v28, %v2860_v28  ;;  %v2287_v24 = vadd.f32 %v2240_v16, %v9586_v8 }
 0x304   :  { %v3342_v11 = vmax.f32 %v3340_v33, %v3341_v20  ;;  %v3348_v3 = vrot.slane %v3347_v0, 2  ;;  %v3331_v55 = vsel %vm2959_vm11, %v2921_v49, -inf  ;;  %v3366_v37 = vsel %vm2959_vm11, %v2860_v28, -inf  ;;  %v2751_v28 = vpop.f32.mrf.mxu0 }
 0x305   :  { %v8841_v1 = vmax.f32 %v8786_v42, %v3322_v27  ;;  %v3326_v14 = vmax.f32 %v3324_v15, %v3325_v23  ;;  %v3332_v10 = vrot.slane %v3331_v55, 4  ;;  %v3367_v53 = vrot.slane %v3366_v37, 4 }
 0x306   :  { %v3302_v4 = vmax.f32 %v3300_v61, %v3301_v25  ;;  %v3309_v31 = vmax.f32 %v3307_v60, %v3308_v17  ;;  %v3373_v56 = vsel %vm2959_vm11, %v2924_v32, -inf  ;;  %v8845_v45 = vsel %vm3484_vm2, %v3183_v57, %v3505_v26 }
 0x307   :  { %v3343_v36 = vrot.slane %v3342_v11, 1  ;;  %v3327_v43 = vrot.slane %v3326_v14, 2  ;;  %v3333_v50 = vmax.f32 %v3331_v55, %v3332_v10  ;;  %v3368_v12 = vmax.f32 %v3366_v37, %v3367_v53  ;;  %6773 = vmatmul.mubr.msk.f32.gmra.mxu1 %vm3600_vm8, %v8845_v45 }
 0x308   :  { %v8849_v42 = vmax.f32 %v3347_v0, %v3348_v3  ;;  %v3374_v27 = vrot.slane %v3373_v56, 4  ;;  %v2788_v16 = vadd.f32 %v2741_v40, %v2287_v24  ;;  %v2290_v61 = vadd.f32 %v6668_v58, %v9587_v44 }
 0x309   :  { %v3328_v54 = vmax.f32 %v3326_v14, %v3327_v43  ;;  %v3334_v52 = vrot.slane %v3333_v50, 2  ;;  %v3369_v33 = vrot.slane %v3368_v12, 2  ;;  %v2289_v34 = vadd.f32 %v2250_v38, %v9588_v48 }
 0x30a   :  { %v3375_v25 = vmax.f32 %v3373_v56, %v3374_v27  ;;  %v2827_v60 = vadd.f32 %v8757_v6, %v2788_v16  ;;  %v2791_v57 = vadd.f32 %v6720_v5, %v2290_v61  ;;  %v3238_v26 = vrot.slane %v8723_v21, 1 }
 0x30b   :  { %v3329_v20 = vrot.slane %v3328_v54, 1  ;;  %v3335_v49 = vmax.f32 %v3333_v50, %v3334_v52  ;;  %v3370_v0 = vmax.f32 %v3368_v12, %v3369_v33  ;;  %v2790_v15 = vadd.f32 %v2751_v28, %v2289_v34 }
 0x30c   :  { %v8856_v40 = vsel %vm3472_vm12, %v3309_v31, %v3302_v4  ;;  %v3376_v58 = vrot.slane %v3375_v25, 2  ;;  %v2859_v17 = vmax.f32 %v2827_v60, 0.0  ;;  %v2830_v23 = vadd.f32 %v8757_v6, %v2791_v57 }
 0x30d   :  { %v8859_v32 = vmax.f32 %v3342_v11, %v3343_v36  ;;  %v3336_v8 = vrot.slane %v3335_v49, 1  ;;  %v2829_v24 = vadd.f32 %v8757_v6, %v2790_v15  ;;  %v3239_v3 = vmax.f32 %v8723_v21, %v3238_v26 }
 0x30e   :  { %v3371_v55 = vrot.slane %v3370_v0, 1  ;;  %v2923_v37 = vcombine.high %v2859_v17, %v2859_v17  ;;  %v3352_v14 = vsel %vm2959_vm11, %v2859_v17, -inf  ;;  %v2862_v10 = vmax.f32 %v2830_v23, 0.0 }
 0x30f   :  { %v8864_v53 = vmax.f32 %v3328_v54, %v3329_v20  ;;  %v3377_v5 = vmax.f32 %v3375_v25, %v3376_v58  ;;  %v3353_v4 = vrot.slane %v3352_v14, 4  ;;  %v2861_v31 = vmax.f32 %v2829_v24, 0.0 }
 0x310   :  { %v8866_v56 = vmax.f32 %v3335_v49, %v3336_v8  ;;  %v3359_v11 = vsel %vm2959_vm11, %v2923_v37, -inf  ;;  %v2926_v38 = vcombine.high %v2862_v10, %v2862_v10  ;;  %v3394_v36 = vsel %vm2959_vm11, %v2862_v10, -inf }
 0x311   :  { %v3354_v6 = vmax.f32 %v3352_v14, %v3353_v4  ;;  %v3360_v43 = vrot.slane %v3359_v11, 4  ;;  %v3395_v21 = vrot.slane %v3394_v36, 4  ;;  %v2925_v50 = vcombine.high %v2861_v31, %v2861_v31 }
 0x312   :  { %v3372_v12 = vmax.f32 %v3370_v0, %v3371_v55  ;;  %v3401_v27 = vsel %vm2959_vm11, %v2926_v38, -inf  ;;  %v3380_v16 = vsel %vm2959_vm11, %v2861_v31, -inf  ;;  %v3508_v44 = vsel %vm3474_vm13, %v8701_v59, %v8741_v22 }
 0x313   :  { %v3355_v61 = vrot.slane %v3354_v6, 2  ;;  %v3361_v54 = vmax.f32 %v3359_v11, %v3360_v43  ;;  %v3396_v52 = vmax.f32 %v3394_v36, %v3395_v21  ;;  %v3402_v33 = vrot.slane %v3401_v27, 4 }
 0x314   :  { %v3381_v48 = vrot.slane %v3380_v16, 4  ;;  %v3387_v34 = vsel %vm2959_vm11, %v2925_v50, -inf  ;;  %v3509_v28 = vsel %vm3476_vm14, %v8715_v18, %v3508_v44  ;;  %v3294_v25 = vrot.slane %v8802_v35, 1 }
 0x315   :  { %v3356_v60 = vmax.f32 %v3354_v6, %v3355_v61  ;;  %v3362_v57 = vrot.slane %v3361_v54, 2  ;;  %v3397_v26 = vrot.slane %v3396_v52, 2  ;;  %v3403_v20 = vmax.f32 %v3401_v27, %v3402_v33 }
 0x316   :  { %v3378_v49 = vrot.slane %v3377_v5, 1  ;;  %v3382_v0 = vmax.f32 %v3380_v16, %v3381_v48  ;;  %v3388_v15 = vrot.slane %v3387_v34, 4  ;;  %v3510_v59 = vsel %vm3478_vm15, %v8743_v51, %v3509_v28 }
 0x317   :  { %v3357_v22 = vrot.slane %v3356_v60, 1  ;;  %v3363_v58 = vmax.f32 %v3361_v54, %v3362_v57  ;;  %v3398_v17 = vmax.f32 %v3396_v52, %v3397_v26  ;;  %v3404_v23 = vrot.slane %v3403_v20, 2 }
 0x318   :  { %v3383_v8 = vrot.slane %v3382_v0, 2  ;;  %v3389_v24 = vmax.f32 %v3387_v34, %v3388_v15  ;;  %v3511_v18 = vsel %vm3480_vm0, %v8747_v47, %v3510_v59  ;;  %v3515_v55 = vsel %vm3474_vm13, %v8778_v9, %v8798_v63 }
 0x319   :  { %v3358_v37 = vmax.f32 %v3356_v60, %v3357_v22  ;;  %v3364_v14 = vrot.slane %v3363_v58, 1  ;;  %v3405_v10 = vmax.f32 %v3403_v20, %v3404_v23  ;;  %v3295_v4 = vmax.f32 %v8802_v35, %v3294_v25 }
 0x31a   :  { %v3384_v31 = vmax.f32 %v3382_v0, %v3383_v8  ;;  %v3390_v51 = vrot.slane %v3389_v24, 2  ;;  %v3512_v11 = vsel %vm3482_vm1, %v8734_v46, %v3511_v18  ;;  %v3516_v38 = vsel %vm3476_vm14, %v8791_v13, %v3515_v55 }
 0x31b   :  { %v3365_v36 = vmax.f32 %v3363_v58, %v3364_v14  ;;  %v3399_v6 = vrot.slane %v3398_v17, 1  ;;  %v8892_v47 = vsel %vm3484_vm2, %v3239_v3, %v3512_v11  ;;  %v3517_v9 = vsel %vm3478_vm15, %v8806_v41, %v3516_v38 }
 0x31c   :  { %v3385_v63 = vrot.slane %v3384_v31, 1  ;;  %v3391_v43 = vmax.f32 %v3389_v24, %v3390_v51  ;;  %6775 = vmatprep.mubr.msk.f32.mxu1 %vm3600_vm8, %v8892_v47  ;;  %v3518_v35 = vsel %vm3480_vm0, %v8814_v30, %v3517_v9  ;;  %v3350_v46 = vrot.slane %v8849_v42, 1  ;;  %v6926_v9 = vld [vmem:[#allocation4 + $0x18] sm:$0xff] }
 0x31d   :  { %v3528_v13 = vsel %vm3472_vm12, %v3365_v36, %v3358_v37  ;;  %v3519_v21 = vsel %vm3482_vm1, %v8800_v62, %v3518_v35  ;;  %v3522_v3 = vsel %vm3474_vm13, %v8808_v39, %v8856_v40  ;;  %v3406_v41 = vrot.slane %v3405_v10, 1 }
 0x31e   :  { %v3379_v50 = vmax.f32 %v3377_v5, %v3378_v49  ;;  %v3386_v27 = vmax.f32 %v3384_v31, %v3385_v63  ;;  %v3392_v16 = vrot.slane %v3391_v43, 1  ;;  %v8908_v44 = vsel %vm3484_vm2, %v3295_v4, %v3519_v21  ;;  %v3569_v31 = vld [vmem:[#allocation4 + $0x10] sm:$0xff] }
 0x31f   :  { %v3400_v61 = vmax.f32 %v3398_v17, %v3399_v6  ;;  %6776 = vmatmul.mubr.msk.f32.gmra.mxu1 %vm3600_vm8, %v8908_v44  ;;  %v3351_v30 = vmax.f32 %v8849_v42, %v3350_v46  ;;  %v3523_v62 = vsel %vm3476_vm14, %v8841_v1, %v3522_v3  ;;  %v3529_v54 = vsel %vm3474_vm13, %v3372_v12, %v3528_v13  ;;  %v3568_v46 = vld [vmem:[#allocation4 + $0x8] sm:$0xff] }
 0x320   :  { %v3393_v52 = vmax.f32 %v3391_v43, %v3392_v16  ;;  %v3524_v39 = vsel %vm3478_vm15, %v8864_v53, %v3523_v62  ;;  %v3530_v40 = vsel %vm3476_vm14, %v3379_v50, %v3529_v54  ;;  %v4172_v5 = vrot.slane %v8726_v2, 2 }
 0x321   :  { %v3525_v33 = vsel %vm3480_vm0, %v8866_v56, %v3524_v39  ;;  %v3407_v48 = vmax.f32 %v3405_v10, %v3406_v41  ;;  %v3531_v34 = vsel %vm3478_vm15, %v3386_v27, %v3530_v40  ;;  %v4171_v42 = vrot.slane %v8672_v7, 2  ;;  %v9589_v56 = vld [vmem:[#allocation9_spill] sm:$0xff] }
 0x322   :  { %v3526_v1 = vsel %vm3482_vm1, %v8859_v32, %v3525_v33  ;;  %v3532_v12 = vsel %vm3480_vm0, %v3393_v52, %v3531_v34  ;;  %v3571_v28 = vrot.slane %v8672_v7, 7  ;;  %v3572_v53 = vrot.slane %v8726_v2, 7  ;;  %v4033_v34 = vld [vmem:[#allocation4 + $0x78] sm:$0xff] }
 0x323   :  { %v8930_v25 = vsel %vm3484_vm2, %v3351_v30, %v3526_v1  ;;  %v3533_v60 = vsel %vm3482_vm1, %v3400_v61, %v3532_v12  ;;  %v4185_v57 = vsel %vm2323_vm6, %v4171_v42, %v4172_v5  ;;  %v4174_v26 = vrot.slane %v8845_v45, 2  ;;  %v3567_v61 = vld [vmem:[#allocation4] sm:$0xff] }
 0x324   :  { %6778 = vmatprep.mubr.msk.f32.mxu1 %vm3600_vm8, %v8930_v25  ;;  %v8941_v32 = vsel %vm3484_vm2, %v3407_v48, %v3533_v60  ;;  %v3573_v20 = vrot.slane %v8795_v19, 7  ;;  %v8945_v49 = vadd.s32 24, %v9589_v56  ;;  %v4175_v0 = vrot.slane %v8892_v47, 2 }
 0x325   :  { %6779 = vmatmul.mubr.msk.f32.gmra.mxu1 %vm3600_vm8, %v8941_v32  ;;  %v3578_v15 = vrot.slane %v8941_v32, 7  ;;  %v4183_v59 = vsel %vm2323_vm6, %v4173_v29, %v4174_v26  ;;  %v3574_v22 = vrot.slane %v8845_v45, 7  ;;  %v4176_v58 = vrot.slane %v8908_v44, 2 }
 0x326   :  { %6809 = vmatprep.mubr.msk.f32.mxu1 %vm3600_vm8, %v4185_v57  ;;  %v4182_v17 = vsel %vm2323_vm6, %v4174_v26, %v4175_v0  ;;  %v3575_v23 = vrot.slane %v8892_v47, 7  ;;  %v4184_v24 = vsel %vm2323_vm6, %v4172_v5, %v4173_v29  ;;  %v4177_v10 = vrot.slane %v8930_v25, 2 }
 0x327   :  { %v3586_v8 = vsel %vm675_vm5, %v3578_v15, %v3571_v28  ;;  %v3583_v18 = vsel %vm675_vm5, %v3573_v20, %v3574_v22  ;;  %v4181_v55 = vsel %vm2323_vm6, %v4175_v0, %v4176_v58  ;;  %v3576_v4 = vrot.slane %v8908_v44, 7 }
 0x328   :  { %v3587_v37 = vsel %vm708_vm7, %v3586_v8, 0.0  ;;  %v3582_v14 = vsel %vm675_vm5, %v3574_v22, %v3575_v23  ;;  %v3585_v29 = vsel %vm675_vm5, %v3571_v28, %v3572_v53  ;;  %vm4190_vm9 = vcmp.lt.s32.totalorder %v8945_v49, 30  ;;  %v4031_v22 = vld [vmem:[#allocation4 + $0x68] sm:$0xff] }
 0x329   :  { %6729 = vmatprep.mubr.msk.f32.mxu0 %vm3600_vm8, %v3587_v37  ;;  %6810 = vmatmul.mubr.msk.f32.vlgmr.msra.gmra.mxu1 %vm3600_vm8, %v4184_v24  ;;  %v4178_v51 = vrot.slane %v8941_v32, 2  ;;  %v3577_v11 = vrot.slane %v8930_v25, 7  ;;  %v3584_v38 = vsel %vm675_vm5, %v3572_v53, %v3573_v20  ;;  %v4180_v36 = vsel %vm2323_vm6, %v4176_v58, %v4177_v10  ;;  %v4030_v58 = vld [vmem:[#allocation4 + $0x60] sm:$0xff] }
 0x32a   :  { %6730 = vmatmul.mubr.msk.f32.vlgmr.msra.gmra.mxu0 %vm3600_vm8, %v3585_v29  ;;  %6812 = vmatprep.mubr.msk.f32.mxu1 %vm3600_vm8, %v4183_v59  ;;  %v3581_v6 = vsel %vm675_vm5, %v3575_v23, %v3576_v4  ;;  %v4202_v35 = vsel %vm4190_vm9, %v4182_v17, 0.0  ;;  %v3550_v21 = vrot.slane %v8941_v32, 6  ;;  %v3545_v3 = vrot.slane %v8795_v19, 6  ;;  %v6054_v37 = vld [vmem:[%s9440_s7 + $0x70] sm:$0xff]  ;;  %v6052_v29 = vld [vmem:[%s9440_s7 + $0x60] sm:$0xff] }
 0x32b   :  { %6742 = vmatpush3.msra.mxu0 %v6926_v9  ;;  %6732 = vmatprep.mubr.msk.f32.mxu0 %vm3600_vm8, %v3584_v38  ;;  %v4179_v63 = vsel %vm2323_vm6, %v4177_v10, %v4178_v51  ;;  %v3580_v43 = vsel %vm675_vm5, %v3576_v4, %v3577_v11  ;;  %v3579_v13 = vsel %vm675_vm5, %v3577_v11, %v3578_v15  ;;  %v3546_v41 = vrot.slane %v8845_v45, 6  ;;  %v4032_v15 = vld [vmem:[#allocation4 + $0x70] sm:$0xff]  ;;  %v6053_v10 = vld [vmem:[%s9440_s7 + $0x68] sm:$0xff]  ;;  %v4550_v11 = vld [vmem:[%s9440_s7 + $0x18] sm:$0xff] }
 0x32c   :  { %6743 = vmatprep.subr.mxu0 %v3569_v31  ;;  %v3547_v50 = vrot.slane %v8892_v47, 6  ;;  %v3995_v27 = vrot.slane %v8795_v19, 1  ;;  %v3591_v16 = vsel %vm708_vm7, %v3582_v14, 0.0  ;;  %v3548_v30 = vrot.slane %v8908_v44, 6  ;;  %v4553_v14 = vld [vmem:[%s9440_s7 + $0x30] sm:$0xff]  ;;  %v4552_v4 = vld [vmem:[%s9440_s7 + $0x28] sm:$0xff] }
 0x32d   :  { %6813 = vmatmul.mubr.msk.f32.gmra.mxu1 %vm3600_vm8, %v4202_v35  ;;  %6744 = vmatpush3.msra.mxu0 %v3569_v31  ;;  %v3549_v62 = vrot.slane %v8930_v25, 6  ;;  %v3555_v54 = vsel %vm528_vm3, %v3545_v3, %v3546_v41  ;;  %v3996_v39 = vrot.slane %v8845_v45, 1  ;;  %v3997_v40 = vrot.slane %v8892_v47, 1  ;;  %v4551_v31 = vld [vmem:[%s9440_s7 + $0x20] sm:$0xff]  ;;  %v6050_v38 = vld [vmem:[%s9440_s7 + $0x50] sm:$0xff]  ;;  %v4548_v9 = vld [vmem:[%s9440_s7 + $0x8] sm:$0xff] }
 0x32e   :  { %6733 = vmatmul.mubr.msk.f32.gmra.mxu0 %vm3600_vm8, %v3583_v18  ;;  %6815 = vmatprep.mubr.msk.f32.mxu1 %vm3600_vm8, %v4181_v55  ;;  %v3554_v52 = vsel %vm528_vm3, %v3546_v41, %v3547_v50  ;;  %v3553_v5 = vsel %vm528_vm3, %v3547_v50, %v3548_v30  ;;  %v4186_v45 = vsel %vm2323_vm6, %v4178_v51, %v4171_v42  ;;  %v3543_v47 = vrot.slane %v8672_v7, 6  ;;  %v4554_v55 = vld [vmem:[%s9440_s7 + $0x38] sm:$0xff] }
 0x32f   :  { %6735 = vmatprep.mubr.msk.f32.mxu0 %vm3600_vm8, %v3591_v16  ;;  %6745 = vmatprep.subr.mxu0 %v3568_v46  ;;  %v3552_v33 = vsel %vm528_vm3, %v3548_v30, %v3549_v62  ;;  %v3551_v48 = vsel %vm528_vm3, %v3549_v62, %v3550_v21  ;;  %v4005_v1 = vsel %vm1822_vm4, %v3995_v27, %v3996_v39  ;;  %v3998_v28 = vrot.slane %v8908_v44, 1  ;;  %v6051_v51 = vld [vmem:[%s9440_s7 + $0x58] sm:$0xff] }
 0x330   :  { %6746 = vmatpush3.msra.mxu0 %v3568_v46  ;;  %v4004_v12 = vsel %vm1822_vm4, %v3996_v39, %v3997_v40  ;;  %v3999_v53 = vrot.slane %v8930_v25, 1  ;;  %v4000_v42 = vrot.slane %v8941_v32, 1  ;;  %v3558_v60 = vsel %vm528_vm3, %v3550_v21, %v3543_v47  ;;  %6840 = vmatprep.subr.mxu1 %v4554_v55  ;;  %v9143_v35 = vld [vmem:[%s9440_s7 + $0xb8] sm:$0xff] }
 0x331   :  { %6816 = vmatmul.mubr.msk.f32.gmra.mxu1 %vm3600_vm8, %v4180_v36  ;;  %6747 = vmatprep.subr.mxu0 %v3567_v61  ;;  %v4206_v57 = vsel %vm4190_vm9, %v4186_v45, 0.0  ;;  %v4003_v26 = vsel %vm1822_vm4, %v3997_v40, %v3998_v28  ;;  %v3544_v32 = vrot.slane %v8726_v2, 6  ;;  %v3559_v20 = vsel %vm561_vm10, %v3558_v60, 0.0  ;;  %v4549_v36 = vld [vmem:[%s9440_s7 + $0x10] sm:$0xff]  ;;  %v9148_v46 = vld [vmem:[%s9440_s7 + $0xf8] sm:$0xff] }
 0x332   :  { %6736 = vmatmul.mubr.msk.f32.gmra.mxu0 %vm3600_vm8, %v3581_v6  ;;  %6818 = vmatprep.mubr.msk.f32.mxu1 %vm3600_vm8, %v4179_v63  ;;  %v4002_v44 = vsel %vm1822_vm4, %v3998_v28, %v3999_v53  ;;  %v4001_v25 = vsel %vm1822_vm4, %v3999_v53, %v4000_v42  ;;  %v3563_v17 = vsel %vm561_vm10, %v3554_v52, 0.0  ;;  %v3994_v23 = vrot.slane %v8726_v2, 1  ;;  %v6049_v6 = vld [vmem:[%s9440_s7 + $0x48] sm:$0xff]  ;;  %v6048_v63 = vld [vmem:[%s9440_s7 + $0x40] sm:$0xff] }
 0x333   :  { %6738 = vmatprep.mubr.msk.f32.mxu0 %vm3600_vm8, %v3580_v43  ;;  %6748 = vmatpush3.msra.mxu0 %v3567_v61  ;;  %v3557_v0 = vsel %vm528_vm3, %v3543_v47, %v3544_v32  ;;  %v3556_v59 = vsel %vm528_vm3, %v3544_v32, %v3545_v3  ;;  %v3993_v8 = vrot.slane %v8672_v7, 1  ;;  %vm4012_vm11 = vcmp.lt.s32.totalorder %v8945_v49, 31  ;;  %v6055_v49 = vld [vmem:[%s9440_s7 + $0x78] sm:$0xff]  ;;  %v4547_v43 = vld [vmem:[%s9440_s7] sm:$0xff] }
 0x334   :  { %6781 = vmatprep.subr.mxu0 %v4033_v34  ;;  %v4006_v18 = vsel %vm1822_vm4, %v3994_v23, %v3995_v27  ;;  %v4024_v2 = vsel %vm4012_vm11, %v4004_v12, 0.0  ;;  %6841 = vmatpush3.msra.mxu1 %v4554_v55  ;;  %vm4570_vm9 = vcmask 523264  }
 0x335   :  { %6819 = vmatmul.mubr.msk.f32.gmra.mxu1 %vm3600_vm8, %v4206_v57  ;;  %v4007_v24 = vsel %vm1822_vm4, %v3993_v8, %v3994_v23  ;;  %v4008_v7 = vsel %vm1822_vm4, %v4000_v42, %v3993_v8  ;;  %6842 = vmatprep.subr.mxu1 %v4553_v14 }
 0x336   :  { %6739 = vmatmul.mubr.msk.f32.gmra.mxu0 %vm3600_vm8, %v3579_v13  ;;  %v4028_v19 = vsel %vm4012_vm11, %v4008_v7, 0.0  ;;  %6843 = vmatpush3.msra.mxu1 %v4553_v14 }
 0x337   :  { %6749 = vmatprep.mubr.msk.f32.mxu0 %vm3600_vm8, %v3559_v20  ;;  %6844 = vmatprep.subr.mxu1 %v4552_v4 }
 0x338   :  { %6845 = vmatpush3.msra.mxu1 %v4552_v4 }
 0x339   :  { %6846 = vmatprep.subr.mxu1 %v4551_v31 }
 0x33a   :  { %6750 = vmatmul.mubr.msk.f32.vlgmr.msra.gmra.mxu0 %vm3600_vm8, %v3557_v0  ;;  %6847 = vmatpush3.msra.mxu1 %v4551_v31 }
 0x33b   :  { %6782 = vmatpush3.msra.mxu0 %v4033_v34  ;;  %6752 = vmatprep.mubr.msk.f32.mxu0 %vm3600_vm8, %v3556_v59  ;;  %v9173_v59 = vld [vmem:[%s9439_s6] ss:$0 sm:$0xff] }
 0x33c   :  { %6783 = vmatprep.subr.mxu0 %v4032_v15  ;;  %6848 = vmatprep.subr.mxu1 %v4550_v11 }
 0x33d   :  { %6784 = vmatpush3.msra.mxu0 %v4032_v15  ;;  %6849 = vmatpush3.msra.mxu1 %v4550_v11 }
 0x33e   :  { %6753 = vmatmul.mubr.msk.f32.gmra.mxu0 %vm3600_vm8, %v3555_v54  ;;  %6785 = vmatprep.subr.mxu0 %v4031_v22 }
 0x33f   :  { %6755 = vmatprep.mubr.msk.f32.mxu0 %vm3600_vm8, %v3563_v17  ;;  %6786 = vmatpush3.msra.mxu0 %v4031_v22 }
 0x340   :  { %6787 = vmatprep.subr.mxu0 %v4030_v58  ;;  %6850 = vmatprep.subr.mxu1 %v4549_v36 }
 0x341   :  { %6788 = vmatpush3.msra.mxu0 %v4030_v58  ;;  %6851 = vmatpush3.msra.mxu1 %v4549_v36 }
 0x342   :  { %6756 = vmatmul.mubr.msk.f32.gmra.mxu0 %vm3600_vm8, %v3553_v5  ;;  %6821 = vmatprep.subr.mxu0 %v6055_v49 }
 0x343   :  { %6758 = vmatprep.mubr.msk.f32.mxu0 %vm3600_vm8, %v3552_v33  ;;  %6852 = vmatprep.subr.mxu1 %v4548_v9 }
 0x344   :  { %6853 = vmatpush3.msra.mxu1 %v4548_v9 }
 0x345   :  { %6854 = vmatprep.subr.mxu1 %v4547_v43 }
 0x346   :  { %6759 = vmatmul.mubr.msk.f32.gmra.mxu0 %vm3600_vm8, %v3551_v48  ;;  %6855 = vmatpush3.msra.mxu1 %v4547_v43 }
 0x347   :  { %6789 = vmatprep.mubr.msk.f32.mxu0 %vm3600_vm8, %v4007_v24  ;;  %6878 = vmatprep.subr.mxu1 %v9148_v46 }
 0x34a   :  { %6790 = vmatmul.mubr.msk.f32.vlgmr.msra.gmra.mxu0 %vm3600_vm8, %v4006_v18 }
 0x34b   :  { %6792 = vmatprep.mubr.msk.f32.mxu0 %vm3600_vm8, %v4005_v1  ;;  %6822 = vmatpush3.msra.mxu0 %v6055_v49 }
 0x34c   :  { %6823 = vmatprep.subr.mxu0 %v6054_v37 }
 0x34d   :  { %6824 = vmatpush3.msra.mxu0 %v6054_v37 }
 0x34e   :  { %6793 = vmatmul.mubr.msk.f32.gmra.mxu0 %vm3600_vm8, %v4024_v2  ;;  %6825 = vmatprep.subr.mxu0 %v6053_v10 }
 0x34f   :  { %6795 = vmatprep.mubr.msk.f32.mxu0 %vm3600_vm8, %v4003_v26  ;;  %6826 = vmatpush3.msra.mxu0 %v6053_v10 }
 0x350   :  { %6827 = vmatprep.subr.mxu0 %v6052_v29 }
 0x351   :  { %6828 = vmatpush3.msra.mxu0 %v6052_v29 }
 0x352   :  { %6796 = vmatmul.mubr.msk.f32.gmra.mxu0 %vm3600_vm8, %v4002_v44  ;;  %6829 = vmatprep.subr.mxu0 %v6051_v51 }
 0x353   :  { %6798 = vmatprep.mubr.msk.f32.mxu0 %vm3600_vm8, %v4001_v25  ;;  %6830 = vmatpush3.msra.mxu0 %v6051_v51 }
 0x354   :  { %6831 = vmatprep.subr.mxu0 %v6050_v38 }
 0x355   :  { %6832 = vmatpush3.msra.mxu0 %v6050_v38 }
 0x356   :  { %6799 = vmatmul.mubr.msk.f32.gmra.mxu0 %vm3600_vm8, %v4028_v19  ;;  %6833 = vmatprep.subr.mxu0 %v6049_v6  ;;  %vm4396_vm8 = vcmask 519168  }
 0x357   :  { %6834 = vmatpush3.msra.mxu0 %v6049_v6 }
 0x358   :  { %6835 = vmatprep.subr.mxu0 %v6048_v63 }
 0x359   :  { %6836 = vmatpush3.msra.mxu0 %v6048_v63 }
 0x35a   :  { %6859 = vmatprep.subr.mxu0 %v9143_v35 }
 0x3a1   :  { %v6771_v3 = vpop.f32.mrf.mxu1 }
 0x3a3   :  { %v3946_v27 = vpop.f32.mrf.mxu1 }
 0x3c7   :  { %v6774_v61 = vpop.f32.mrf.mxu1 }
 0x3c9   :  { %v3956_v54 = vpop.f32.mrf.mxu1 }
 0x3df   :  { %v6777_v39 = vpop.f32.mrf.mxu1 }
 0x3e1   :  { %v9158_v33 = vpop.f32.mrf.mxu1 }
 0x3e5   :  { %v9160_v45 = vpop.f32.mrf.mxu1 }
 0x3e7   :  { %v9162_v1 = vpop.f32.mrf.mxu1 }
 0x3e9   :  { %v6811_v42 = vpop.f32.mrf.mxu1 }
 0x3ea   :  { %v6731_v13 = vpop.f32.mrf.mxu0 }
 0x3eb   :  { %v4302_v32 = vpop.f32.mrf.mxu1 }
 0x3ec   :  { %v3691_v21 = vpop.f32.mrf.mxu0 }
 0x3ed   :  { %v6814_v18 = vpop.f32.mrf.mxu1 }
 0x3ee   :  { %v6734_v41 = vpop.f32.mrf.mxu0 }
 0x3ef   :  { %v4312_v51 = vpop.f32.mrf.mxu1 }
 0x3f0   :  { %v3701_v50 = vpop.f32.mrf.mxu0 }
 0x3f2   :  { %v6737_v16 = vpop.f32.mrf.mxu0 }
 0x3f4   :  { %v9152_v30 = vpop.f32.mrf.mxu0 }
 0x3f6   :  { %v9154_v62 = vpop.f32.mrf.mxu0 }
 0x3f8   :  { %v9156_v52 = vpop.f32.mrf.mxu0 }
 0x3fa   :  { %v6751_v40 = vpop.f32.mrf.mxu0 }
 0x3fb   :  { %v3826_v28 = vadd.f32 %v6751_v40, %v6731_v13 }
 0x3fc   :  { %v3820_v5 = vpop.f32.mrf.mxu0 }
 0x3fd   :  { %v3821_v60 = vadd.f32 %v3820_v5, %v3691_v21  ;;  %v3986_v44 = vadd.f32 %v6771_v3, %v3826_v28 }
 0x3fe   :  { %v6754_v48 = vpop.f32.mrf.mxu0 }
 0x3ff   :  { %v3836_v26 = vadd.f32 %v6754_v48, %v6734_v41  ;;  %v3985_v15 = vadd.f32 %v3946_v27, %v3821_v60 }
 0x400   :  { %v3830_v47 = vpop.f32.mrf.mxu0 }
 0x401   :  { %v3831_v20 = vadd.f32 %v3830_v47, %v3701_v50  ;;  %v3988_v23 = vadd.f32 %v6774_v61, %v3836_v26  ;;  %v6817_v61 = vpop.f32.mrf.mxu1 }
 0x402   :  { %v6757_v34 = vpop.f32.mrf.mxu0 }
 0x403   :  { %v3846_v8 = vadd.f32 %v6757_v34, %v6737_v16  ;;  %v3987_v49 = vadd.f32 %v3956_v54, %v3831_v20 }
 0x404   :  { %v9164_v12 = vpop.f32.mrf.mxu0 }
 0x405   :  { %v3990_v29 = vadd.f32 %v6777_v39, %v3846_v8 }
 0x406   :  { %v9166_v53 = vpop.f32.mrf.mxu0 }
 0x408   :  { %v9168_v57 = vpop.f32.mrf.mxu0 }
 0x40a   :  { %v6791_v25 = vpop.f32.mrf.mxu0 }
 0x40b   :  { %v4164_v0 = vadd.f32 %v6791_v25, %v3986_v44 }
 0x40c   :  { %v4124_v22 = vpop.f32.mrf.mxu0 }
 0x40d   :  { %v4342_v58 = vadd.f32 %v6811_v42, %v4164_v0  ;;  %v4163_v17 = vadd.f32 %v4124_v22, %v3985_v15  ;;  %v3841_v0 = vadd.f32 %v9164_v12, %v9152_v30  ;;  %v4322_v30 = vpop.f32.mrf.mxu1  ;;  %v3851_v12 = vadd.f32 %v9168_v57, %v9156_v52 }
 0x40e   :  { %v6794_v24 = vpop.f32.mrf.mxu0 }
 0x40f   :  { %v4357_v2 = vadd.f32 %v9173_v59, %v4342_v58  ;;  %v4341_v7 = vadd.f32 %v4302_v32, %v4163_v17  ;;  %v4166_v19 = vadd.f32 %v6794_v24, %v3988_v23  ;;  %v3856_v24 = vadd.f32 %v9166_v53, %v9154_v62  ;;  %v6820_v52 = vpop.f32.mrf.mxu1 }
 0x410   :  { %v4134_v55 = vpop.f32.mrf.mxu0 }
 0x411   :  { %v4365_v37 = vmax.f32 %v4357_v2, 0.0  ;;  %v4356_v14 = vadd.f32 %v9173_v59, %v4341_v7  ;;  %v4344_v10 = vadd.f32 %v6814_v18, %v4166_v19  ;;  %v4165_v4 = vadd.f32 %v4134_v55, %v3987_v49 }
 0x412   :  { %v6797_v31 = vpop.f32.mrf.mxu0 }
 0x413   :  { %v4381_v11 = vcombine.high %v4365_v37, %v4365_v37  ;;  %v4411_v38 = vsel %vm4396_vm8, %v4365_v37, -inf  ;;  %v4364_v36 = vmax.f32 %v4356_v14, 0.0  ;;  %v4359_v6 = vadd.f32 %v9173_v59, %v4344_v10 }
 0x414   :  { %v4412_v9 = vrot.slane %v4411_v38, 4  ;;  %v4343_v63 = vadd.f32 %v4312_v51, %v4165_v4  ;;  %v4168_v43 = vadd.f32 %v6797_v31, %v3990_v29  ;;  %v4144_v58 = vpop.f32.mrf.mxu0  ;;  %v3989_v4 = vadd.f32 %v9158_v33, %v3841_v0 }
 0x415   :  { %v4418_v13 = vsel %vm4396_vm8, %v4381_v11, -inf  ;;  %v4380_v21 = vcombine.high %v4364_v36, %v4364_v36  ;;  %v4397_v3 = vsel %vm4396_vm8, %v4364_v36, -inf  ;;  %v4367_v41 = vmax.f32 %v4359_v6, 0.0 }
 0x416   :  { %v4413_v50 = vmax.f32 %v4411_v38, %v4412_v9  ;;  %v4398_v27 = vrot.slane %v4397_v3, 4  ;;  %v4358_v16 = vadd.f32 %v9173_v59, %v4343_v63  ;;  %v4419_v54 = vrot.slane %v4418_v13, 4  ;;  %v6800_v29 = vpop.f32.mrf.mxu0 }
 0x417   :  { %v4404_v39 = vsel %vm4396_vm8, %v4380_v21, -inf  ;;  %v4439_v48 = vsel %vm4396_vm8, %v4367_v41, -inf  ;;  %v4346_v47 = vadd.f32 %v6817_v61, %v4168_v43  ;;  %v4383_v26 = vcombine.high %v4367_v41, %v4367_v41 }
 0x418   :  { %v4399_v40 = vmax.f32 %v4397_v3, %v4398_v27  ;;  %v4405_v5 = vrot.slane %v4404_v39, 4  ;;  %v4366_v34 = vmax.f32 %v4358_v16, 0.0  ;;  %v4414_v28 = vrot.slane %v4413_v50, 2  ;;  %v4154_v41 = vpop.f32.mrf.mxu0 }
 0x419   :  { %v4420_v44 = vmax.f32 %v4418_v13, %v4419_v54  ;;  %v4440_v25 = vrot.slane %v4439_v48, 4  ;;  %v4361_v22 = vadd.f32 %v9173_v59, %v4346_v47  ;;  %v4446_v7 = vsel %vm4396_vm8, %v4383_v26, -inf }
 0x41a   :  { %v4400_v42 = vrot.slane %v4399_v40, 2  ;;  %v4406_v60 = vmax.f32 %v4404_v39, %v4405_v5  ;;  %v4382_v32 = vcombine.high %v4366_v34, %v4366_v34  ;;  %v4425_v20 = vsel %vm4396_vm8, %v4366_v34, -inf }
 0x41b   :  { %v4426_v23 = vrot.slane %v4425_v20, 4  ;;  %v4415_v18 = vmax.f32 %v4413_v50, %v4414_v28  ;;  %v4421_v19 = vrot.slane %v4420_v44, 2  ;;  %v4441_v49 = vmax.f32 %v4439_v48, %v4440_v25  ;;  %v4332_v28 = vpop.f32.mrf.mxu1 }
 0x41c   :  { %v4407_v15 = vrot.slane %v4406_v60, 2  ;;  %v4401_v17 = vmax.f32 %v4399_v40, %v4400_v42  ;;  %v4432_v8 = vsel %vm4396_vm8, %v4382_v32, -inf  ;;  %v4369_v10 = vmax.f32 %v4361_v22, 0.0 }
 0x41d   :  { %v4427_v55 = vmax.f32 %v4425_v20, %v4426_v23  ;;  %v4433_v37 = vrot.slane %v4432_v8, 4  ;;  %v4447_v51 = vrot.slane %v4446_v7, 4  ;;  %v4167_v36 = vadd.f32 %v4144_v58, %v3989_v4 }
 0x41e   :  { %v4408_v2 = vmax.f32 %v4406_v60, %v4407_v15  ;;  %v4402_v31 = vrot.slane %v4401_v17, 1  ;;  %v4385_v11 = vcombine.high %v4369_v10, %v4369_v10  ;;  %v4467_v38 = vsel %vm4396_vm8, %v4369_v10, -inf }
 0x41f   :  { %v4428_v62 = vrot.slane %v4427_v55, 2  ;;  %v4434_v53 = vmax.f32 %v4432_v8, %v4433_v37  ;;  %v3992_v6 = vadd.f32 %v9160_v45, %v3856_v24  ;;  %v4416_v9 = vrot.slane %v4415_v18, 1 }
 0x420   :  { %v4409_v14 = vrot.slane %v4408_v2, 1  ;;  %v4422_v63 = vmax.f32 %v4420_v44, %v4421_v19  ;;  %v4442_v43 = vrot.slane %v4441_v49, 2  ;;  %v4468_v21 = vrot.slane %v4467_v38, 4 }
 0x421   :  { %v4435_v13 = vrot.slane %v4434_v53, 2  ;;  %v4474_v33 = vsel %vm4396_vm8, %v4385_v11, -inf  ;;  %v4345_v3 = vadd.f32 %v4322_v30, %v4167_v36  ;;  %v4403_v50 = vmax.f32 %v4401_v17, %v4402_v31 }
 0x422   :  { %v4410_v57 = vmax.f32 %v4408_v2, %v4409_v14  ;;  %v4448_v27 = vmax.f32 %v4446_v7, %v4447_v51  ;;  %v4429_v16 = vmax.f32 %v4427_v55, %v4428_v62  ;;  %v3991_v61 = vadd.f32 %v9162_v1, %v3851_v12 }
 0x423   :  { %v4436_v54 = vmax.f32 %v4434_v53, %v4435_v13  ;;  %v4469_v39 = vmax.f32 %v4467_v38, %v4468_v21  ;;  %v4475_v40 = vrot.slane %v4474_v33, 4  ;;  %v4360_v45 = vadd.f32 %v9173_v59, %v4345_v3 }
 0x424   :  { %v4417_v5 = vmax.f32 %v4415_v18, %v4416_v9  ;;  %v4423_v48 = vrot.slane %v4422_v63, 1  ;;  %v4170_v47 = vadd.f32 %v6800_v29, %v3992_v6  ;;  %v4169_v34 = vadd.f32 %v4154_v41, %v3991_v61 }
 0x425   :  { %v4525_v42 = vsel %vm3472_vm12, %v4410_v57, %v4403_v50  ;;  %v4443_v60 = vmax.f32 %v4441_v49, %v4442_v43  ;;  %v4476_v26 = vmax.f32 %v4474_v33, %v4475_v40  ;;  %v4368_v44 = vmax.f32 %v4360_v45, 0.0 }
 0x426   :  { %v4449_v25 = vrot.slane %v4448_v27, 2  ;;  %v4430_v32 = vrot.slane %v4429_v16, 1  ;;  %v4348_v20 = vadd.f32 %v6820_v52, %v4170_v47  ;;  %v4347_v0 = vadd.f32 %v4332_v28, %v4169_v34 }
 0x427   :  { %v4437_v1 = vrot.slane %v4436_v54, 1  ;;  %v4470_v15 = vrot.slane %v4469_v39, 2  ;;  %v4384_v22 = vcombine.high %v4368_v44, %v4368_v44  ;;  %v4453_v58 = vsel %vm4396_vm8, %v4368_v44, -inf }
 0x428   :  { %v4526_v17 = vsel %vm3474_vm13, %v4417_v5, %v4525_v42  ;;  %v4454_v23 = vrot.slane %v4453_v58, 4  ;;  %v4363_v8 = vadd.f32 %v9173_v59, %v4348_v20  ;;  %v4362_v24 = vadd.f32 %v9173_v59, %v4347_v0 }
 0x429   :  { %v4424_v18 = vmax.f32 %v4422_v63, %v4423_v48  ;;  %v4444_v2 = vrot.slane %v4443_v60, 1  ;;  %v4477_v7 = vrot.slane %v4476_v26, 2  ;;  %v4460_v19 = vsel %vm4396_vm8, %v4384_v22, -inf }
 0x42a   :  { %v4455_v49 = vmax.f32 %v4453_v58, %v4454_v23  ;;  %v4461_v55 = vrot.slane %v4460_v19, 4  ;;  %v4371_v37 = vmax.f32 %v4363_v8, 0.0  ;;  %v4370_v30 = vmax.f32 %v4362_v24, 0.0 }
 0x42b   :  { %v4431_v12 = vmax.f32 %v4429_v16, %v4430_v32  ;;  %v4438_v14 = vmax.f32 %v4436_v54, %v4437_v1  ;;  %v4527_v10 = vsel %vm3476_vm14, %v4424_v18, %v4526_v17  ;;  %v4471_v4 = vmax.f32 %v4469_v39, %v4470_v15 }
 0x42c   :  { %v4456_v29 = vrot.slane %v4455_v49, 2  ;;  %v4462_v31 = vmax.f32 %v4460_v19, %v4461_v55  ;;  %v4387_v51 = vcombine.high %v4371_v37, %v4371_v37  ;;  %v4495_v62 = vsel %vm4396_vm8, %v4371_v37, -inf }
 0x42d   :  { %v4478_v59 = vmax.f32 %v4476_v26, %v4477_v7  ;;  %v4496_v53 = vrot.slane %v4495_v62, 4  ;;  %v4386_v11 = vcombine.high %v4370_v30, %v4370_v30  ;;  %v4481_v38 = vsel %vm4396_vm8, %v4370_v30, -inf }
 0x42e   :  { %v4457_v36 = vmax.f32 %v4455_v49, %v4456_v29  ;;  %v4463_v6 = vrot.slane %v4462_v31, 2  ;;  %v4502_v9 = vsel %vm4396_vm8, %v4387_v51, -inf  ;;  %v4482_v63 = vrot.slane %v4481_v38, 4 }
 0x42f   :  { %v4528_v43 = vsel %vm3478_vm15, %v4431_v12, %v4527_v10  ;;  %v4497_v13 = vmax.f32 %v4495_v62, %v4496_v53  ;;  %v4503_v52 = vrot.slane %v4502_v9, 4  ;;  %v4488_v57 = vsel %vm4396_vm8, %v4386_v11, -inf }
 0x430   :  { %v4458_v21 = vrot.slane %v4457_v36, 1  ;;  %v4464_v33 = vmax.f32 %v4462_v31, %v4463_v6  ;;  %v4483_v3 = vmax.f32 %v4481_v38, %v4482_v63  ;;  %v4489_v41 = vrot.slane %v4488_v57, 4 }
 0x431   :  { %v4450_v50 = vmax.f32 %v4448_v27, %v4449_v25  ;;  %v4472_v16 = vrot.slane %v4471_v4, 1  ;;  %v4498_v61 = vrot.slane %v4497_v13, 2  ;;  %v4504_v54 = vmax.f32 %v4502_v9, %v4503_v52  ;;  %v6076_v52 = vld [vmem:[%s9440_s7 + $0xf0] sm:$0xff] }
 0x432   :  { %v4479_v39 = vrot.slane %v4478_v59, 1  ;;  %v4465_v40 = vrot.slane %v4464_v33, 1  ;;  %v4484_v45 = vrot.slane %v4483_v3, 2  ;;  %v4490_v5 = vmax.f32 %v4488_v57, %v4489_v41  ;;  %v6073_v41 = vld [vmem:[%s9440_s7 + $0xd8] sm:$0xff] }
 0x433   :  { %v4529_v48 = vsel %vm3480_vm0, %v4438_v14, %v4528_v43  ;;  %v4499_v47 = vmax.f32 %v4497_v13, %v4498_v61  ;;  %v4505_v34 = vrot.slane %v4504_v54, 2  ;;  %v4459_v28 = vmax.f32 %v4457_v36, %v4458_v21  ;;  %v6066_v43 = vld [vmem:[%s9440_s7 + $0xb0] sm:$0xff]  ;;  %v6065_v21 = vld [vmem:[%s9440_s7 + $0xa8] sm:$0xff] }
 0x434   :  { %v4466_v42 = vmax.f32 %v4464_v33, %v4465_v40  ;;  %v4485_v26 = vmax.f32 %v4483_v3, %v4484_v45  ;;  %v4491_v44 = vrot.slane %v4490_v5, 2  ;;  %v4445_v32 = vmax.f32 %v4443_v60, %v4444_v2  ;;  %v6075_v33 = vld [vmem:[%s9440_s7 + $0xe8] sm:$0xff]  ;;  %v6063_v3 = vld [vmem:[%s9440_s7 + $0x98] sm:$0xff]  ;;  %v6060_v40 = vld [vmem:[%s9440_s7 + $0x80] sm:$0xff] }
 0x435   :  { %v4451_v20 = vrot.slane %v4450_v50, 1  ;;  %v4473_v0 = vmax.f32 %v4471_v4, %v4472_v16  ;;  %v4506_v1 = vmax.f32 %v4504_v54, %v4505_v34  ;;  %v4480_v27 = vmax.f32 %v4478_v59, %v4479_v39  ;;  %v6072_v16 = vld [vmem:[%s9440_s7 + $0xd0] sm:$0xff]  ;;  %v6061_v61 = vld [vmem:[%s9440_s7 + $0x88] sm:$0xff]  ;;  %v6070_v45 = vld [vmem:[%s9440_s7 + $0xc0] sm:$0xff] }
 0x436   :  { %v4532_v25 = vsel %vm3472_vm12, %v4466_v42, %v4459_v28  ;;  %v4486_v15 = vrot.slane %v4485_v26, 1  ;;  %v4492_v22 = vmax.f32 %v4490_v5, %v4491_v44  ;;  %v4500_v17 = vrot.slane %v4499_v47, 1  ;;  %v6071_v54 = vld [vmem:[%s9440_s7 + $0xc8] sm:$0xff]  ;;  %v6087_v34 = vld [vmem:[%s9440_s7 + $0x138] sm:$0xff] }
 0x437   :  { %v4533_v58 = vsel %vm3474_vm13, %v4473_v0, %v4532_v25  ;;  %v4530_v23 = vsel %vm3482_vm1, %v4445_v32, %v4529_v48  ;;  %v4507_v8 = vrot.slane %v4506_v1, 1  ;;  %v4452_v19 = vmax.f32 %v4450_v50, %v4451_v20  ;;  %v6062_v50 = vld [vmem:[%s9440_s7 + $0x90] sm:$0xff]  ;;  %v6085_v44 = vld [vmem:[%s9440_s7 + $0x128] sm:$0xff]  ;;  %v6084_v32 = vld [vmem:[%s9440_s7 + $0x120] sm:$0xff] }
 0x438   :  { %v4487_v24 = vmax.f32 %v4485_v26, %v4486_v15  ;;  %v4493_v18 = vrot.slane %v4492_v22, 1  ;;  %v4534_v7 = vsel %vm3476_vm14, %v4480_v27, %v4533_v58  ;;  %v4501_v49 = vmax.f32 %v4499_v47, %v4500_v17  ;;  %v6086_v26 = vld [vmem:[%s9440_s7 + $0x130] sm:$0xff]  ;;  %v6083_v20 = vld [vmem:[%s9440_s7 + $0x118] sm:$0xff]  ;;  %v6080_v27 = vld [vmem:[%s9440_s7 + $0x100] sm:$0xff] }
 0x439   :  { %v9219_v55 = vsel %vm3484_vm2, %v4452_v19, %v4530_v23  ;;  %v4508_v37 = vmax.f32 %v4506_v1, %v4507_v8  ;;  %v6082_v0 = vld [vmem:[%s9440_s7 + $0x110] sm:$0xff]  ;;  %v6081_v1 = vld [vmem:[%s9440_s7 + $0x108] sm:$0xff]  ;;  %v5133_v58 = vld [vmem:[#allocation6 + $0xf0] sm:$0xff] }
 0x43a   :  { %v4494_v60 = vmax.f32 %v4492_v22, %v4493_v18  ;;  %v4535_v2 = vsel %vm3478_vm15, %v4487_v24, %v4534_v7  ;;  %v4555_v10 = vrot.slane %v9219_v55, 7  ;;  %v4541_v29 = vrot.slane %v9219_v55, 6  ;;  %v5134_v22 = vld [vmem:[#allocation6 + $0xf8] sm:$0xff]  ;;  %v5132_v17 = vld [vmem:[#allocation6 + $0xe8] sm:$0xff]  ;;  %v5131_v23 = vld [vmem:[#allocation6 + $0xe0] sm:$0xff] }
 0x43b   :  { %v4823_v62 = vrot.slane %v9219_v55, 1  ;;  %v4923_v5 = vrot.slane %v9219_v55, 2  ;;  %v5183_v8 = vld [vmem:[#allocation6 + $0x1f8] sm:$0xff]  ;;  %v6998_v24 = vmov 0.0   ;;  %v5182_v7 = vld [vmem:[#allocation6 + $0x1f0] sm:$0xff] }
 0x43c   :  { %v4536_v30 = vsel %vm3480_vm0, %v4494_v60, %v4535_v2  ;;  %v5130_v18 = vld [vmem:[#allocation6 + $0xd8] sm:$0xff]  ;;  %v5129_v19 = vld [vmem:[#allocation6 + $0xd0] sm:$0xff]  ;;  %v5181_v60 = vld [vmem:[#allocation6 + $0x1e8] sm:$0xff] }
 0x43d   :  { %v4537_v12 = vsel %vm3482_vm1, %v4501_v49, %v4536_v30  ;;  %v5180_v2 = vld [vmem:[#allocation6 + $0x1e0] sm:$0xff]  ;;  %v5128_v49 = vld [vmem:[#allocation6 + $0xc8] sm:$0xff]  ;;  %v5178_v30 = vld [vmem:[#allocation6 + $0x1d0] sm:$0xff] }
 0x43e   :  { %v9224_v14 = vsel %vm3484_vm2, %v4508_v37, %v4537_v12  ;;  %v5127_v37 = vld [vmem:[#allocation6 + $0xc0] sm:$0xff]  ;;  %v5177_v12 = vld [vmem:[#allocation6 + $0x1c8] sm:$0xff] }
 0x43f   :  { %v4556_v4 = vrot.slane %v9224_v14, 7  ;;  %v4542_v31 = vrot.slane %v9224_v14, 6  ;;  %v4824_v51 = vrot.slane %v9224_v14, 1  ;;  %v4924_v39 = vrot.slane %v9224_v14, 2 }
 0x441   :  { %v4558_v59 = vsel %vm675_vm5, %v4556_v4, %v4555_v10  ;;  %v4544_v53 = vsel %vm528_vm3, %v4542_v31, %v4541_v29  ;;  %v4557_v11 = vsel %vm675_vm5, %v4555_v10, %v4556_v4  ;;  %v4543_v38 = vsel %vm528_vm3, %v4541_v29, %v4542_v31  ;;  %v5176_v10 = vld [vmem:[#allocation6 + $0x1c0] sm:$0xff]  ;;  %v5125_v4 = vld [vmem:[#allocation6 + $0xb0] sm:$0xff]  ;;  %v5175_v29 = vld [vmem:[#allocation6 + $0x1b8] sm:$0xff] }
 0x442   :  { %v4559_v36 = vsel %vm708_vm7, %v4558_v59, 0.0  ;;  %v4545_v6 = vsel %vm561_vm10, %v4544_v53, 0.0  ;;  %v4560_v9 = vsel %vm708_vm7, %v4557_v11, 0.0  ;;  %v4546_v63 = vsel %vm561_vm10, %v4543_v38, 0.0  ;;  %v5124_v31 = vld [vmem:[#allocation6 + $0xa8] sm:$0xff]  ;;  %v5122_v53 = vld [vmem:[#allocation6 + $0x98] sm:$0xff] }
 0x443   :  { %6837 = vmatprep.mubr.msk.f32.mxu0 %vm4570_vm9, %v4559_v36  ;;  %6856 = vmatprep.mubr.msk.f32.mxu1 %vm4570_vm9, %v4545_v6  ;;  %v4825_v13 = vsel %vm1822_vm4, %v4823_v62, %v4824_v51  ;;  %v4826_v48 = vsel %vm1822_vm4, %v4824_v51, %v4823_v62  ;;  %v4925_v47 = vsel %vm2323_vm6, %v4923_v5, %v4924_v39  ;;  %v5174_v51 = vld [vmem:[#allocation6 + $0x1b0] sm:$0xff]  ;;  %v5123_v62 = vld [vmem:[#allocation6 + $0xa0] sm:$0xff]  ;;  %v5173_v59 = vld [vmem:[#allocation6 + $0x1a8] sm:$0xff]  ;;  %vm5040_vm3 = vcmask 1043456  }
 0x444   :  { %6838 = vmatmul.mubr.msk.f32.vlgmr.msra.gmra.mxu0 %vm4570_vm9, %v4560_v9  ;;  %6857 = vmatmul.mubr.msk.f32.vlgmr.msra.gmra.mxu1 %vm4570_vm9, %v4546_v63  ;;  %v4829_v57 = vsel %vm1822_vm4, %v4825_v13, 0.0  ;;  %v4830_v28 = vsel %vm1822_vm4, %v4826_v48, 0.0  ;;  %v4929_v42 = vsel %vm2323_vm6, %v4925_v47, 0.0  ;;  %v4926_v25 = vsel %vm2323_vm6, %v4924_v39, %v4923_v5  ;;  %v5172_v11 = vld [vmem:[#allocation6 + $0x1a0] sm:$0xff]  ;;  %v5121_v38 = vld [vmem:[#allocation6 + $0x90] sm:$0xff]  ;;  %v5171_v36 = vld [vmem:[#allocation6 + $0x198] sm:$0xff] }
 0x445   :  { %6860 = vmatpush3.msra.mxu0 %v9143_v35  ;;  %6879 = vmatpush3.msra.mxu1 %v9148_v46  ;;  %v6064_v35 = vld [vmem:[%s9440_s7 + $0xa0] sm:$0xff]  ;;  %v4930_v15 = vsel %vm2323_vm6, %v4926_v25, 0.0  ;;  %v5120_v6 = vld [vmem:[#allocation6 + $0x88] sm:$0xff]  ;;  %v5119_v63 = vld [vmem:[#allocation6 + $0x80] sm:$0xff]  ;;  %vm5077_vm4 = vcmask 1047556   ;;  %vm5136_vm6 = vcmask 1040384  }
 0x446   :  { %6861 = vmatprep.subr.mxu0 %v6066_v43  ;;  %6875 = vmatprep.mubr.msk.f32.mxu0 %vm4570_vm9, %v9219_v55  ;;  %v6074_v46 = vld [vmem:[%s9440_s7 + $0xe0] sm:$0xff]  ;;  %v5179_v55 = vld [vmem:[#allocation6 + $0x1d8] sm:$0xff]  ;;  %v5160_v48 = vld [vmem:[#allocation6 + $0x140] sm:$0xff] }
 0x447   :  { %6880 = vmatprep.subr.mxu1 %v6076_v52  ;;  %6894 = vmatprep.mubr.msk.f32.mxu1 %vm4570_vm9, %v4829_v57  ;;  %v5170_v9 = vld [vmem:[#allocation6 + $0x190] sm:$0xff]  ;;  %v5118_v13 = vld [vmem:[#allocation6 + $0x78] sm:$0xff]  ;;  %vm5137_vm11 = vmor %vm5136_vm6, %vm3474_vm13 }
 0x448   :  { %6862 = vmatpush3.msra.mxu0 %v6066_v43  ;;  %6881 = vmatpush3.msra.mxu1 %v6076_v52  ;;  %v5169_v43 = vld [vmem:[#allocation6 + $0x188] sm:$0xff]  ;;  %v5168_v52 = vld [vmem:[#allocation6 + $0x180] sm:$0xff]  ;;  %v5117_v57 = vld [vmem:[#allocation6 + $0x70] sm:$0xff] }
 0x449   :  { %6863 = vmatprep.subr.mxu0 %v6065_v21  ;;  %6882 = vmatprep.subr.mxu1 %v6075_v33  ;;  %v5162_v39 = vld [vmem:[#allocation6 + $0x150] sm:$0xff]  ;;  %v5110_v5 = vld [vmem:[#allocation6 + $0x38] sm:$0xff]  ;;  %vm5138_vm8 = vmor %vm5137_vm11, %vm3478_vm15 }
 0x44a   :  { %6864 = vmatpush3.msra.mxu0 %v6065_v21  ;;  %6883 = vmatpush3.msra.mxu1 %v6075_v33  ;;  %v5167_v21 = vld [vmem:[#allocation6 + $0x178] sm:$0xff]  ;;  %v5116_v33 = vld [vmem:[#allocation6 + $0x68] sm:$0xff]  ;;  %v5109_v47 = vld [vmem:[#allocation6 + $0x30] sm:$0xff] }
 0x44b   :  { %6865 = vmatprep.subr.mxu0 %v6064_v35  ;;  %6884 = vmatprep.subr.mxu1 %v6074_v46  ;;  %v5154_v25 = vld [vmem:[#allocation6 + $0x110] sm:$0xff] }
 0x44c   :  { %6866 = vmatpush3.msra.mxu0 %v6064_v35  ;;  %6885 = vmatpush3.msra.mxu1 %v6074_v46  ;;  %v5166_v35 = vld [vmem:[#allocation6 + $0x170] sm:$0xff]  ;;  %v5115_v46 = vld [vmem:[#allocation6 + $0x60] sm:$0xff] }
 0x44d   :  { %6867 = vmatprep.subr.mxu0 %v6063_v3  ;;  %6886 = vmatprep.subr.mxu1 %v6073_v41 }
 0x44e   :  { %6868 = vmatpush3.msra.mxu0 %v6063_v3  ;;  %6887 = vmatpush3.msra.mxu1 %v6073_v41  ;;  %v5165_v3 = vld [vmem:[#allocation6 + $0x168] sm:$0xff]  ;;  %v5114_v41 = vld [vmem:[#allocation6 + $0x58] sm:$0xff] }
 0x44f   :  { %6869 = vmatprep.subr.mxu0 %v6062_v50  ;;  %6888 = vmatprep.subr.mxu1 %v6072_v16 }
 0x450   :  { %6870 = vmatpush3.msra.mxu0 %v6062_v50  ;;  %6889 = vmatpush3.msra.mxu1 %v6072_v16  ;;  %v5164_v50 = vld [vmem:[#allocation6 + $0x160] sm:$0xff]  ;;  %v5113_v16 = vld [vmem:[#allocation6 + $0x50] sm:$0xff] }
 0x451   :  { %6871 = vmatprep.subr.mxu0 %v6061_v61  ;;  %6890 = vmatprep.subr.mxu1 %v6071_v54 }
 0x452   :  { %6872 = vmatpush3.msra.mxu0 %v6061_v61  ;;  %6891 = vmatpush3.msra.mxu1 %v6071_v54  ;;  %v5163_v61 = vld [vmem:[#allocation6 + $0x158] sm:$0xff]  ;;  %v5112_v54 = vld [vmem:[#allocation6 + $0x48] sm:$0xff] }
 0x453   :  { %6873 = vmatprep.subr.mxu0 %v6060_v40  ;;  %6892 = vmatprep.subr.mxu1 %v6070_v45 }
 0x454   :  { %6874 = vmatpush3.msra.mxu0 %v6060_v40  ;;  %6893 = vmatpush3.msra.mxu1 %v6070_v45  ;;  %v5111_v40 = vld [vmem:[#allocation6 + $0x40] sm:$0xff]  ;;  %v5161_v45 = vld [vmem:[#allocation6 + $0x148] sm:$0xff] }
 0x455   :  { %6876 = vmatmul.mubr.msk.f32.vlgmr.msra.gmra.mxu0 %vm4570_vm9, %v9224_v14  ;;  %6895 = vmatmul.mubr.msk.f32.vlgmr.msra.gmra.mxu1 %vm4570_vm9, %v4830_v28  ;;  %v5126_v14 = vld [vmem:[#allocation6 + $0xb8] sm:$0xff]  ;;  %v5108_v28 = vld [vmem:[#allocation6 + $0x28] sm:$0xff] }
 0x456   :  { %6897 = vmatprep.subr.mxu0 %v6087_v34  ;;  %6913 = vmatprep.mubr.msk.f32.mxu0 %vm4570_vm9, %v4929_v42  ;;  %v5158_v42 = vld [vmem:[#allocation6 + $0x130] sm:$0xff] }
 0x457   :  { %6898 = vmatpush3.msra.mxu0 %v6087_v34  ;;  %5195 = vmatprep.subr.mxu1 %v5183_v8  ;;  %v5159_v34 = vld [vmem:[#allocation6 + $0x138] sm:$0xff] }
 0x458   :  { %6899 = vmatprep.subr.mxu0 %v6086_v26  ;;  %5196 = vmatpush1.msra.mxu1 %v5182_v7 }
 0x459   :  { %6900 = vmatpush3.msra.mxu0 %v6086_v26  ;;  %5197 = vmatprep.subr.mxu1 %v5181_v60  ;;  %v5107_v26 = vld [vmem:[#allocation6 + $0x20] sm:$0xff] }
 0x45a   :  { %6901 = vmatprep.subr.mxu0 %v6085_v44  ;;  %5198 = vmatpush1.msra.mxu1 %v5180_v2 }
 0x45b   :  { %6902 = vmatpush3.msra.mxu0 %v6085_v44  ;;  %5199 = vmatprep.subr.mxu1 %v5179_v55  ;;  %v5157_v44 = vld [vmem:[#allocation6 + $0x128] sm:$0xff] }
 0x45c   :  { %6903 = vmatprep.subr.mxu0 %v6084_v32  ;;  %5200 = vmatpush1.msra.mxu1 %v5178_v30 }
 0x45d   :  { %6904 = vmatpush3.msra.mxu0 %v6084_v32  ;;  %5201 = vmatprep.subr.mxu1 %v5177_v12  ;;  %v5106_v32 = vld [vmem:[#allocation6 + $0x18] sm:$0xff] }
 0x45e   :  { %6905 = vmatprep.subr.mxu0 %v6083_v20  ;;  %5202 = vmatpush1.msra.mxu1 %v5176_v10 }
 0x45f   :  { %6906 = vmatpush3.msra.mxu0 %v6083_v20  ;;  %5203 = vmatprep.subr.mxu1 %v5175_v29  ;;  %v5156_v20 = vld [vmem:[#allocation6 + $0x120] sm:$0xff]  ;;  %v6090_v29 = vld [vmem:[%s9441_s8] ss:$0 sm:$0xff] }
 0x460   :  { %6907 = vmatprep.subr.mxu0 %v6082_v0  ;;  %5204 = vmatpush1.msra.mxu1 %v5174_v51 }
 0x461   :  { %6908 = vmatpush3.msra.mxu0 %v6082_v0  ;;  %5205 = vmatprep.subr.mxu1 %v5173_v59  ;;  %v5105_v0 = vld [vmem:[#allocation6 + $0x10] sm:$0xff] }
 0x462   :  { %6909 = vmatprep.subr.mxu0 %v6081_v1  ;;  %5206 = vmatpush1.msra.mxu1 %v5172_v11 }
 0x463   :  { %6910 = vmatpush3.msra.mxu0 %v6081_v1  ;;  %5207 = vmatprep.subr.mxu1 %v5171_v36  ;;  %v5155_v1 = vld [vmem:[#allocation6 + $0x118] sm:$0xff] }
 0x464   :  { %6911 = vmatprep.subr.mxu0 %v6080_v27  ;;  %5208 = vmatpush1.msra.mxu1 %v5170_v9 }
 0x465   :  { %6912 = vmatpush3.msra.mxu0 %v6080_v27  ;;  %5209 = vmatprep.subr.mxu1 %v5169_v43  ;;  %v5104_v27 = vld [vmem:[#allocation6 + $0x8] sm:$0xff] }
 0x466   :  { %6914 = vmatmul.mubr.msk.f32.vlgmr.msra.gmra.mxu0 %vm4570_vm9, %v4930_v15  ;;  %5277 = vmatprep.subr.mxu0 %v5134_v22  ;;  %v5103_v15 = vld [vmem:[#allocation6] sm:$0xff]  ;;  %v5153_v22 = vld [vmem:[#allocation6 + $0x108] sm:$0xff] }
 0x467   :  { %5341 = vmatprep.mubr.f32.mxu0 %v6998_v24  ;;  %5278 = vmatpush1.msra.mxu0 %v5133_v58  ;;  %v5494_v58 = vld [vmem:[#allocation6 + $0x3f8] sm:$0xff] }
 0x468   :  { %5279 = vmatprep.subr.mxu0 %v5132_v17  ;;  %5210 = vmatpush1.msra.mxu1 %v5168_v52  ;;  %v5152_v17 = vld [vmem:[#allocation6 + $0x100] sm:$0xff] }
 0x469   :  { %5280 = vmatpush1.msra.mxu0 %v5131_v23  ;;  %5211 = vmatprep.subr.mxu1 %v5167_v21  ;;  %v5380_v23 = vld [vmem:[#allocation6 + $0x2f8] sm:$0xff] }
 0x46a   :  { %5281 = vmatprep.subr.mxu0 %v5130_v18  ;;  %5212 = vmatpush1.msra.mxu1 %v5166_v35 }
 0x46b   :  { %5282 = vmatpush1.msra.mxu0 %v5129_v19  ;;  %5213 = vmatprep.subr.mxu1 %v5165_v3 }
 0x46c   :  { %5283 = vmatprep.subr.mxu0 %v5128_v49  ;;  %5214 = vmatpush1.msra.mxu1 %v5164_v50 }
 0x46d   :  { %5284 = vmatpush1.msra.mxu0 %v5127_v37  ;;  %5215 = vmatprep.subr.mxu1 %v5163_v61 }
 0x46e   :  { %5285 = vmatprep.subr.mxu0 %v5126_v14  ;;  %5216 = vmatpush1.msra.mxu1 %v5162_v39 }
 0x46f   :  { %5286 = vmatpush1.msra.mxu0 %v5125_v4  ;;  %5217 = vmatprep.subr.mxu1 %v5161_v45 }
 0x470   :  { %5287 = vmatprep.subr.mxu0 %v5124_v31  ;;  %5218 = vmatpush1.msra.mxu1 %v5160_v48 }
 0x471   :  { %5288 = vmatpush1.msra.mxu0 %v5123_v62  ;;  %5219 = vmatprep.subr.mxu1 %v5159_v34 }
 0x472   :  { %5289 = vmatprep.subr.mxu0 %v5122_v53  ;;  %5220 = vmatpush1.msra.mxu1 %v5158_v42 }
 0x473   :  { %5290 = vmatpush1.msra.mxu0 %v5121_v38  ;;  %5221 = vmatprep.subr.mxu1 %v5157_v44 }
 0x474   :  { %5291 = vmatprep.subr.mxu0 %v5120_v6  ;;  %5222 = vmatpush1.msra.mxu1 %v5156_v20 }
 0x475   :  { %5292 = vmatpush1.msra.mxu0 %v5119_v63  ;;  %5223 = vmatprep.subr.mxu1 %v5155_v1 }
 0x476   :  { %5293 = vmatprep.subr.mxu0 %v5118_v13  ;;  %5224 = vmatpush1.msra.mxu1 %v5154_v25 }
 0x477   :  { %5294 = vmatpush1.msra.mxu0 %v5117_v57  ;;  %5225 = vmatprep.subr.mxu1 %v5153_v22 }
 0x478   :  { %5295 = vmatprep.subr.mxu0 %v5116_v33  ;;  %5226 = vmatpush1.msra.mxu1 %v5152_v17 }
 0x479   :  { %5296 = vmatpush1.msra.mxu0 %v5115_v46  ;;  %5259 = vmatprep.mubr.f32.mxu1 %v6998_v24 }
 0x47a   :  { %5297 = vmatprep.subr.mxu0 %v5114_v41  ;;  %5381 = vmatprep.subr.mxu1 %v5380_v23 }
 0x47b   :  { %5298 = vmatpush1.msra.mxu0 %v5113_v16 }
 0x47c   :  { %5299 = vmatprep.subr.mxu0 %v5112_v54 }
 0x47d   :  { %5300 = vmatpush1.msra.mxu0 %v5111_v40 }
 0x47e   :  { %5301 = vmatprep.subr.mxu0 %v5110_v5 }
 0x47f   :  { %5302 = vmatpush1.msra.mxu0 %v5109_v47 }
 0x480   :  { %5303 = vmatprep.subr.mxu0 %v5108_v28 }
 0x481   :  { %5304 = vmatpush1.msra.mxu0 %v5107_v26  ;;  %v6999_v26 = vmov 1983009808  }
 0x482   :  { %5305 = vmatprep.subr.mxu0 %v5106_v32  ;;  %v5085_v44 = vunpack.c.l.s4 %v6999_v26  ;;  %v5369_v26 = vld [vmem:[#allocation6 + $0x2a0] sm:$0xff] }
 0x483   :  { %5306 = vmatpush1.msra.mxu0 %v5105_v0 }
 0x484   :  { %5307 = vmatprep.subr.mxu0 %v5104_v27 }
 0x485   :  { %5308 = vmatpush1.msra.mxu0 %v5103_v15  ;;  %v5086_v15 = vunpack.c.0.s8 %v5085_v44  ;;  %v5477_v44 = vld [vmem:[#allocation6 + $0x370] sm:$0xff] }
 0x486   :  { %5506 = vmatprep.subr.mxu0 %v5494_v58 }
 0x487   :  { %v9359_v23 = vsub.s32 %v5086_v15, %v9589_v56  ;;  %v5365_v15 = vld [vmem:[#allocation6 + $0x280] sm:$0xff] }
 0x504   :  { %v6839_v8 = vpop.f32.mrf.mxu0  ;;  %v6858_v18 = vpop.f32.mrf.mxu1 }
 0x505   :  { %v4730_v2 = vadd.f32 %v6858_v18, %v6839_v8 }
 0x506   :  { %v4643_v7 = vpop.f32.mrf.mxu0  ;;  %v4724_v60 = vpop.f32.mrf.mxu1 }
 0x507   :  { %v4725_v55 = vadd.f32 %v4724_v60, %v4643_v7 }
 0x515   :  { %v6877_v19 = vpop.f32.mrf.mxu0  ;;  %v6896_v30 = vpop.f32.mrf.mxu1 }
 0x516   :  { %v4822_v37 = vadd.f32 %v6877_v19, %v4730_v2 }
 0x517   :  { %v4812_v49 = vpop.f32.mrf.mxu0  ;;  %v4912_v10 = vpop.f32.mrf.mxu1 }
 0x518   :  { %v4821_v12 = vadd.f32 %v4812_v49, %v4725_v55  ;;  %v4922_v14 = vadd.f32 %v6896_v30, %v4822_v37 }
 0x51a   :  { %v4921_v31 = vadd.f32 %v4912_v10, %v4821_v12 }
 0x526   :  { %v6915_v4 = vpop.f32.mrf.mxu0 }
 0x527   :  { %v5022_v51 = vadd.f32 %v6915_v4, %v4922_v14 }
 0x528   :  { %v5012_v62 = vpop.f32.mrf.mxu0 }
 0x529   :  { %v5031_v59 = vadd.f32 %v6090_v29, %v5022_v51  ;;  %v5021_v53 = vadd.f32 %v5012_v62, %v4921_v31  ;;  %v5493_v31 = vld [vmem:[#allocation6 + $0x3f0] sm:$0xff] }
 0x52a   :  { %v5465_v51 = vld [vmem:[#allocation6 + $0x310] sm:$0xff] }
 0x52b   :  { %v5033_v11 = vmax.f32 %v5031_v59, 0.0  ;;  %v5030_v38 = vadd.f32 %v6090_v29, %v5021_v53  ;;  %v5492_v59 = vld [vmem:[#allocation6 + $0x3e8] sm:$0xff] }
 0x52d   :  { %v5037_v36 = vcombine.high %v5033_v11, %v5033_v11  ;;  %v5055_v6 = vsel %vm5040_vm3, %v5033_v11, -inf  ;;  %v5032_v9 = vmax.f32 %v5030_v38, 0.0  ;;  %v5491_v11 = vld [vmem:[#allocation6 + $0x3e0] sm:$0xff] }
 0x52e   :  { %v5056_v63 = vrot.slane %v5055_v6, 4 }
 0x52f   :  { %v5062_v43 = vsel %vm5040_vm3, %v5037_v36, -inf  ;;  %v5036_v13 = vcombine.high %v5032_v9, %v5032_v9  ;;  %v5041_v52 = vsel %vm5040_vm3, %v5032_v9, -inf }
 0x530   :  { %v5057_v57 = vmax.f32 %v5055_v6, %v5056_v63  ;;  %v5063_v21 = vrot.slane %v5062_v43, 4  ;;  %v5042_v33 = vrot.slane %v5041_v52, 4  ;;  %v5490_v6 = vld [vmem:[#allocation6 + $0x3d8] sm:$0xff]  ;;  %v5489_v63 = vld [vmem:[#allocation6 + $0x3d0] sm:$0xff] }
 0x531   :  { %v5048_v35 = vsel %vm5040_vm3, %v5036_v13, -inf  ;;  %v5488_v13 = vld [vmem:[#allocation6 + $0x3c8] sm:$0xff] }
 0x532   :  { %v5058_v46 = vrot.slane %v5057_v57, 2  ;;  %v5064_v3 = vmax.f32 %v5062_v43, %v5063_v21  ;;  %v5043_v41 = vmax.f32 %v5041_v52, %v5042_v33  ;;  %v5049_v50 = vrot.slane %v5048_v35, 4  ;;  %v5487_v21 = vld [vmem:[#allocation6 + $0x3c0] sm:$0xff]  ;;  %v5378_v33 = vld [vmem:[#allocation6 + $0x2e8] sm:$0xff] }
 0x534   :  { %v5065_v16 = vrot.slane %v5064_v3, 2  ;;  %v5044_v61 = vrot.slane %v5043_v41, 2  ;;  %v5050_v54 = vmax.f32 %v5048_v35, %v5049_v50  ;;  %v5059_v39 = vmax.f32 %v5057_v57, %v5058_v46  ;;  %v5379_v57 = vld [vmem:[#allocation6 + $0x2f0] sm:$0xff]  ;;  %v5486_v35 = vld [vmem:[#allocation6 + $0x3b8] sm:$0xff]  ;;  %v5377_v46 = vld [vmem:[#allocation6 + $0x2e0] sm:$0xff] }
 0x535   :  { %v5484_v50 = vld [vmem:[#allocation6 + $0x3a8] sm:$0xff] }
 0x536   :  { %v5066_v40 = vmax.f32 %v5064_v3, %v5065_v16  ;;  %v5045_v45 = vmax.f32 %v5043_v41, %v5044_v61  ;;  %v5051_v5 = vrot.slane %v5050_v54, 2  ;;  %v5060_v34 = vrot.slane %v5059_v39, 1  ;;  %v5485_v3 = vld [vmem:[#allocation6 + $0x3b0] sm:$0xff]  ;;  %v5376_v41 = vld [vmem:[#allocation6 + $0x2d8] sm:$0xff]  ;;  %v5483_v61 = vld [vmem:[#allocation6 + $0x3a0] sm:$0xff] }
 0x537   :  { %v5375_v16 = vld [vmem:[#allocation6 + $0x2d0] sm:$0xff] }
 0x538   :  { %v5046_v48 = vrot.slane %v5045_v45, 1  ;;  %v5052_v47 = vmax.f32 %v5050_v54, %v5051_v5  ;;  %v5067_v28 = vrot.slane %v5066_v40, 1  ;;  %v5061_v0 = vmax.f32 %v5059_v39, %v5060_v34  ;;  %v5374_v54 = vld [vmem:[#allocation6 + $0x2c8] sm:$0xff]  ;;  %v5482_v39 = vld [vmem:[#allocation6 + $0x398] sm:$0xff]  ;;  %v5479_v34 = vld [vmem:[#allocation6 + $0x380] sm:$0xff] }
 0x539   :  { %v5372_v5 = vld [vmem:[#allocation6 + $0x2b8] sm:$0xff] }
 0x53a   :  { %v5053_v42 = vrot.slane %v5052_v47, 1  ;;  %v5047_v32 = vmax.f32 %v5045_v45, %v5046_v48  ;;  %v5068_v1 = vmax.f32 %v5066_v40, %v5067_v28  ;;  %v5373_v40 = vld [vmem:[#allocation6 + $0x2c0] sm:$0xff]  ;;  %v5481_v45 = vld [vmem:[#allocation6 + $0x390] sm:$0xff]  ;;  %v5480_v48 = vld [vmem:[#allocation6 + $0x388] sm:$0xff] }
 0x53b   :  { %v5370_v28 = vld [vmem:[#allocation6 + $0x2a8] sm:$0xff] }
 0x53c   :  { %v5054_v20 = vmax.f32 %v5052_v47, %v5053_v42  ;;  %v5371_v47 = vld [vmem:[#allocation6 + $0x2b0] sm:$0xff]  ;;  %v5478_v42 = vld [vmem:[#allocation6 + $0x378] sm:$0xff] }
 0x53e   :  { %v5073_v27 = vsel %vm3472_vm12, %v5054_v20, %v5047_v32  ;;  %v5368_v32 = vld [vmem:[#allocation6 + $0x298] sm:$0xff]  ;;  %v5476_v20 = vld [vmem:[#allocation6 + $0x368] sm:$0xff] }
 0x53f   :  { %v5074_v25 = vsel %vm3474_vm13, %v5061_v0, %v5073_v27  ;;  %vm9382_vm13 = vmor %vm5138_vm8, %vm3482_vm1  ;;  %v5367_v0 = vld [vmem:[#allocation6 + $0x290] sm:$0xff]  ;;  %v5366_v27 = vld [vmem:[#allocation6 + $0x288] sm:$0xff] }
 0x540   :  { %v9354_v22 = vsel %vm3476_vm14, %v5068_v1, %v5074_v25  ;;  %v5475_v1 = vld [vmem:[#allocation6 + $0x360] sm:$0xff]  ;;  %v5474_v25 = vld [vmem:[#allocation6 + $0x358] sm:$0xff] }
 0x541   :  { %v5078_v58 = vrot.slane %v9354_v22, 4 }
 0x543   :  { %v5079_v17 = vsel %vm5077_vm4, %v5078_v58, %v9354_v22  ;;  %v5473_v58 = vld [vmem:[#allocation6 + $0x350] sm:$0xff] }
 0x544   :  { %v5080_v8 = vrot.slane %v5079_v17, 4  ;;  %v5364_v17 = vld [vmem:[#allocation6 + $0x278] sm:$0xff] }
 0x546   :  { %v5081_v18 = vsel %vm5077_vm4, %v5080_v8, %v9354_v22  ;;  %v5472_v8 = vld [vmem:[#allocation6 + $0x348] sm:$0xff] }
 0x547   :  { %v5083_v7 = vcombine.high %v5081_v18, %v5081_v18  ;;  %v9363_v19 = vrot.slane %v5081_v18, %v9359_v23  ;;  %v5363_v18 = vld [vmem:[#allocation6 + $0x270] sm:$0xff] }
 0x549   :  { %v5097_v60 = vrot.slane %v5083_v7, %v9359_v23  ;;  %v9369_v2 = vcombine.high %v9363_v19, %v9363_v19  ;;  %v5471_v7 = vld [vmem:[#allocation6 + $0x340] sm:$0xff] }
 0x54b   :  { %v5101_v49 = vsel %vm561_vm10, %v9369_v2, 0.0  ;;  %v5102_v55 = vsel %vm561_vm10, %v5097_v60, 0.0  ;;  %v5140_v37 = vrot.slane %v9369_v2, 7  ;;  %v5135_v30 = vcombine.high %v5097_v60, %v5097_v60 }
 0x54c   :  { %v5268_v12 = vcombine.low %v5101_v49, %v5102_v55  ;;  %v5142_v14 = vrot.slane %v5097_v60, 7  ;;  %v6091_v60 = vrot.slane %v9363_v19, 9  ;;  %v5362_v49 = vld [vmem:[#allocation6 + $0x268] sm:$0xff]  ;;  %v5470_v55 = vld [vmem:[#allocation6 + $0x338] sm:$0xff] }
 0x54d   :  { %v5141_v10 = vrot.slane %v5140_v37, 2  ;;  %v5145_v4 = vrot.slane %v5135_v30, 7  ;;  %v5361_v30 = vld [vmem:[#allocation6 + $0x260] sm:$0xff] }
 0x54e   :  { %v5275_v29 = vrot.slane %v5268_v12, %v9359_v23  ;;  %v5144_v62 = vrot.slane %v5142_v14, 2  ;;  %v5469_v12 = vld [vmem:[#allocation6 + $0x330] sm:$0xff] }
 0x54f   :  { %v9388_v53 = vsel %vm9382_vm13, %v5141_v10, %v5142_v14  ;;  %v5458_v14 = vsel %vm9382_vm13, %v6091_v60, %v5140_v37  ;;  %v5360_v10 = vld [vmem:[#allocation6 + $0x258] sm:$0xff]  ;;  %v5357_v37 = vld [vmem:[#allocation6 + $0x240] sm:$0xff] }
 0x550   :  { %5342 = vmatmul.mubr.f32.vlgmr.msra.gmra.mxu0 %v5275_v29  ;;  %v5146_v38 = vsel %vm9382_vm13, %v5144_v62, %v5145_v4  ;;  %v5149_v36 = vsel %vm708_vm7, %v9388_v53, 0.0  ;;  %v5468_v4 = vld [vmem:[#allocation6 + $0x328] sm:$0xff]  ;;  %v5461_v19 = vsel %vm675_vm5, %v9388_v53, 0.0  ;;  %v5359_v29 = vld [vmem:[#allocation6 + $0x250] sm:$0xff]  ;;  %v5460_v2 = vsel %vm675_vm5, %v5458_v14, 0.0 }
 0x551   :  { %5507 = vmatpush1.msra.mxu0 %v5493_v31  ;;  %v5150_v9 = vsel %vm708_vm7, %v5146_v38, 0.0  ;;  %5570 = vmatprep.mubr.f32.mxu0 %v6998_v24  ;;  %v5467_v31 = vld [vmem:[#allocation6 + $0x320] sm:$0xff]  ;;  %v5358_v62 = vld [vmem:[#allocation6 + $0x248] sm:$0xff]  ;;  %v5356_v38 = vld [vmem:[#allocation6 + $0x238] sm:$0xff]  ;;  %vm5748_vm5 = vcmask 1041408  }
 0x552   :  { %5508 = vmatprep.subr.mxu0 %v5492_v59  ;;  %v5186_v43 = vcombine.low %v5149_v36, %v5150_v9  ;;  %v5466_v59 = vld [vmem:[#allocation6 + $0x318] sm:$0xff]  ;;  %v5464_v53 = vld [vmem:[#allocation6 + $0x308] sm:$0xff]  ;;  %v5355_v36 = vld [vmem:[#allocation6 + $0x230] sm:$0xff] }
 0x553   :  { %5509 = vmatpush1.msra.mxu0 %v5491_v11  ;;  %v5497_v11 = vcombine.low %v5460_v2, %v5461_v19  ;;  %v5354_v9 = vld [vmem:[#allocation6 + $0x228] sm:$0xff]  ;;  %v5709_v2 = vsub.s32 1, %v9589_v56 }
 0x554   :  { %5510 = vmatprep.subr.mxu0 %v5490_v6  ;;  %v5193_v52 = vrot.slane %v5186_v43, %v9359_v23  ;;  %v5463_v6 = vld [vmem:[#allocation6 + $0x300] sm:$0xff] }
 0x555   :  { %5511 = vmatpush1.msra.mxu0 %v5489_v63  ;;  %v5353_v63 = vld [vmem:[#allocation6 + $0x220] sm:$0xff]  ;;  %v5504_v43 = vrot.slane %v5497_v11, %v9359_v23 }
 0x556   :  { %5260 = vmatmul.mubr.f32.vlgmr.msra.gmra.mxu1 %v5193_v52  ;;  %5512 = vmatprep.subr.mxu0 %v5488_v13  ;;  %v5352_v13 = vld [vmem:[#allocation6 + $0x218] sm:$0xff]  ;;  %v5351_v52 = vld [vmem:[#allocation6 + $0x210] sm:$0xff] }
 0x557   :  { %5382 = vmatpush1.msra.mxu1 %v5379_v57  ;;  %5513 = vmatpush1.msra.mxu0 %v5487_v21  ;;  %v5350_v57 = vld [vmem:[#allocation6 + $0x208] sm:$0xff]  ;;  %v5349_v21 = vld [vmem:[#allocation6 + $0x200] sm:$0xff] }
 0x558   :  { %5383 = vmatprep.subr.mxu1 %v5378_v33  ;;  %5514 = vmatprep.subr.mxu0 %v5486_v35  ;;  %v5616_v33 = vld [vmem:[#allocation6 + $0x4f8] sm:$0xff]  ;;  %v5615_v35 = vld [vmem:[#allocation6 + $0x4f0] sm:$0xff] }
 0x559   :  { %5384 = vmatpush1.msra.mxu1 %v5377_v46  ;;  %5515 = vmatpush1.msra.mxu0 %v5485_v3  ;;  %v5614_v46 = vld [vmem:[#allocation6 + $0x4e8] sm:$0xff]  ;;  %v5613_v3 = vld [vmem:[#allocation6 + $0x4e0] sm:$0xff] }
 0x55a   :  { %5385 = vmatprep.subr.mxu1 %v5376_v41  ;;  %5516 = vmatprep.subr.mxu0 %v5484_v50  ;;  %v5612_v41 = vld [vmem:[#allocation6 + $0x4d8] sm:$0xff]  ;;  %v5611_v50 = vld [vmem:[#allocation6 + $0x4d0] sm:$0xff] }
 0x55b   :  { %5386 = vmatpush1.msra.mxu1 %v5375_v16  ;;  %5517 = vmatpush1.msra.mxu0 %v5483_v61  ;;  %v5610_v16 = vld [vmem:[#allocation6 + $0x4c8] sm:$0xff]  ;;  %v5609_v61 = vld [vmem:[#allocation6 + $0x4c0] sm:$0xff] }
 0x55c   :  { %5387 = vmatprep.subr.mxu1 %v5374_v54  ;;  %5518 = vmatprep.subr.mxu0 %v5482_v39  ;;  %v5608_v54 = vld [vmem:[#allocation6 + $0x4b8] sm:$0xff]  ;;  %v5607_v39 = vld [vmem:[#allocation6 + $0x4b0] sm:$0xff] }
 0x55d   :  { %5388 = vmatpush1.msra.mxu1 %v5373_v40  ;;  %5519 = vmatpush1.msra.mxu0 %v5481_v45  ;;  %v5606_v40 = vld [vmem:[#allocation6 + $0x4a8] sm:$0xff]  ;;  %v5604_v45 = vld [vmem:[#allocation6 + $0x498] sm:$0xff] }
 0x55e   :  { %5389 = vmatprep.subr.mxu1 %v5372_v5  ;;  %5520 = vmatprep.subr.mxu0 %v5480_v48  ;;  %v5603_v5 = vld [vmem:[#allocation6 + $0x490] sm:$0xff]  ;;  %v5602_v48 = vld [vmem:[#allocation6 + $0x488] sm:$0xff] }
 0x55f   :  { %5390 = vmatpush1.msra.mxu1 %v5371_v47  ;;  %5521 = vmatpush1.msra.mxu0 %v5479_v34  ;;  %v5601_v47 = vld [vmem:[#allocation6 + $0x480] sm:$0xff]  ;;  %v5600_v34 = vld [vmem:[#allocation6 + $0x478] sm:$0xff] }
 0x560   :  { %5391 = vmatprep.subr.mxu1 %v5370_v28  ;;  %5522 = vmatprep.subr.mxu0 %v5478_v42  ;;  %v5599_v28 = vld [vmem:[#allocation6 + $0x470] sm:$0xff]  ;;  %v5598_v42 = vld [vmem:[#allocation6 + $0x468] sm:$0xff] }
 0x561   :  { %5392 = vmatpush1.msra.mxu1 %v5369_v26  ;;  %5523 = vmatpush1.msra.mxu0 %v5477_v44  ;;  %v5597_v26 = vld [vmem:[#allocation6 + $0x460] sm:$0xff]  ;;  %v5596_v44 = vld [vmem:[#allocation6 + $0x458] sm:$0xff] }
 0x562   :  { %5393 = vmatprep.subr.mxu1 %v5368_v32  ;;  %5524 = vmatprep.subr.mxu0 %v5476_v20  ;;  %v5595_v32 = vld [vmem:[#allocation6 + $0x450] sm:$0xff]  ;;  %v5594_v20 = vld [vmem:[#allocation6 + $0x448] sm:$0xff] }
 0x563   :  { %5394 = vmatpush1.msra.mxu1 %v5367_v0  ;;  %5525 = vmatpush1.msra.mxu0 %v5475_v1  ;;  %v5593_v0 = vld [vmem:[#allocation6 + $0x440] sm:$0xff]  ;;  %v5592_v1 = vld [vmem:[#allocation6 + $0x438] sm:$0xff] }
 0x564   :  { %5395 = vmatprep.subr.mxu1 %v5366_v27  ;;  %5526 = vmatprep.subr.mxu0 %v5474_v25  ;;  %v5591_v27 = vld [vmem:[#allocation6 + $0x430] sm:$0xff]  ;;  %v5590_v25 = vld [vmem:[#allocation6 + $0x428] sm:$0xff] }
 0x565   :  { %5396 = vmatpush1.msra.mxu1 %v5365_v15  ;;  %5527 = vmatpush1.msra.mxu0 %v5473_v58  ;;  %v5589_v15 = vld [vmem:[#allocation6 + $0x420] sm:$0xff]  ;;  %v5619_v58 = vcombine.low %v6998_v24, %v6998_v24 }
 0x566   :  { %5397 = vmatprep.subr.mxu1 %v5364_v17  ;;  %5528 = vmatprep.subr.mxu0 %v5472_v8  ;;  %v5588_v17 = vld [vmem:[#allocation6 + $0x418] sm:$0xff]  ;;  %v5587_v8 = vld [vmem:[#allocation6 + $0x410] sm:$0xff] }
 0x567   :  { %5398 = vmatpush1.msra.mxu1 %v5363_v18  ;;  %5529 = vmatpush1.msra.mxu0 %v5471_v7  ;;  %v5586_v18 = vld [vmem:[#allocation6 + $0x408] sm:$0xff]  ;;  %v5585_v7 = vld [vmem:[#allocation6 + $0x400] sm:$0xff]  ;;  %v5626_v60 = vrot.slane %v5619_v58, %v9359_v23 }
 0x568   :  { %5399 = vmatprep.subr.mxu1 %v5362_v49  ;;  %5530 = vmatprep.subr.mxu0 %v5470_v55 }
 0x569   :  { %5400 = vmatpush1.msra.mxu1 %v5361_v30  ;;  %5531 = vmatpush1.msra.mxu0 %v5469_v12 }
 0x56a   :  { %5401 = vmatprep.subr.mxu1 %v5360_v10  ;;  %5532 = vmatprep.subr.mxu0 %v5468_v4 }
 0x56b   :  { %5402 = vmatpush1.msra.mxu1 %v5359_v29  ;;  %5533 = vmatpush1.msra.mxu0 %v5467_v31  ;;  %v5705_v29 = vsub.s32 0, %v9589_v56 }
 0x56c   :  { %5403 = vmatprep.subr.mxu1 %v5358_v62  ;;  %5534 = vmatprep.subr.mxu0 %v5466_v59  ;;  %v5701_v62 = vld [vmem:[%s9443_s10] sm:$0x3] }
 0x56d   :  { %5404 = vmatpush1.msra.mxu1 %v5357_v37  ;;  %5535 = vmatpush1.msra.mxu0 %v5465_v51  ;;  %v5706_v51 = vrot.slane %v5701_v62, %v5705_v29 }
 0x56e   :  { %5405 = vmatprep.subr.mxu1 %v5356_v38  ;;  %5536 = vmatprep.subr.mxu0 %v5464_v53 }
 0x56f   :  { %5406 = vmatpush1.msra.mxu1 %v5355_v36  ;;  %5537 = vmatpush1.msra.mxu0 %v5463_v6  ;;  %v5710_v6 = vrot.slane %v5701_v62, %v5709_v2 }
 0x570   :  { %5407 = vmatprep.subr.mxu1 %v5354_v9  ;;  %5571 = vmatmul.mubr.f32.vlgmr.msra.gmra.mxu0 %v5504_v43 }
 0x571   :  { %5408 = vmatpush1.msra.mxu1 %v5353_v63  ;;  %5445 = vmatprep.mubr.f32.mxu1 %v6998_v24 }
 0x572   :  { %5409 = vmatprep.subr.mxu1 %v5352_v13 }
 0x573   :  { %5410 = vmatpush1.msra.mxu1 %v5351_v52 }
 0x574   :  { %5411 = vmatprep.subr.mxu1 %v5350_v57 }
 0x575   :  { %5412 = vmatpush1.msra.mxu1 %v5349_v21 }
 0x576   :  { %5446 = vmatmul.mubr.f32.vlgmr.msra.gmra.mxu1 %v9354_v22  ;;  %5628 = vmatprep.subr.mxu1 %v5616_v33  ;;  %v5605_v22 = vld [vmem:[#allocation6 + $0x4a0] sm:$0xff] }
 0x577   :  { %5629 = vmatpush1.msra.mxu1 %v5615_v35  ;;  %5692 = vmatprep.mubr.f32.mxu1 %v6998_v24 }
 0x578   :  { %5630 = vmatprep.subr.mxu1 %v5614_v46 }
 0x579   :  { %5631 = vmatpush1.msra.mxu1 %v5613_v3 }
 0x57a   :  { %5632 = vmatprep.subr.mxu1 %v5612_v41 }
 0x57b   :  { %5633 = vmatpush1.msra.mxu1 %v5611_v50 }
 0x57c   :  { %5634 = vmatprep.subr.mxu1 %v5610_v16 }
 0x57d   :  { %5635 = vmatpush1.msra.mxu1 %v5609_v61 }
 0x57e   :  { %5636 = vmatprep.subr.mxu1 %v5608_v54 }
 0x57f   :  { %5637 = vmatpush1.msra.mxu1 %v5607_v39 }
 0x580   :  { %5638 = vmatprep.subr.mxu1 %v5606_v40 }
 0x581   :  { %5639 = vmatpush1.msra.mxu1 %v5605_v22 }
 0x582   :  { %5640 = vmatprep.subr.mxu1 %v5604_v45 }
 0x583   :  { %5641 = vmatpush1.msra.mxu1 %v5603_v5 }
 0x584   :  { %5642 = vmatprep.subr.mxu1 %v5602_v48 }
 0x585   :  { %5643 = vmatpush1.msra.mxu1 %v5601_v47 }
 0x586   :  { %5644 = vmatprep.subr.mxu1 %v5600_v34 }
 0x587   :  { %5645 = vmatpush1.msra.mxu1 %v5599_v28 }
 0x588   :  { %5646 = vmatprep.subr.mxu1 %v5598_v42 }
 0x589   :  { %5647 = vmatpush1.msra.mxu1 %v5597_v26 }
 0x58a   :  { %5648 = vmatprep.subr.mxu1 %v5596_v44 }
 0x58b   :  { %5649 = vmatpush1.msra.mxu1 %v5595_v32 }
 0x58c   :  { %5650 = vmatprep.subr.mxu1 %v5594_v20 }
 0x58d   :  { %5651 = vmatpush1.msra.mxu1 %v5593_v0 }
 0x58e   :  { %5652 = vmatprep.subr.mxu1 %v5592_v1 }
 0x58f   :  { %5653 = vmatpush1.msra.mxu1 %v5591_v27 }
 0x590   :  { %5654 = vmatprep.subr.mxu1 %v5590_v25 }
 0x591   :  { %5655 = vmatpush1.msra.mxu1 %v5589_v15 }
 0x592   :  { %5656 = vmatprep.subr.mxu1 %v5588_v17 }
 0x593   :  { %5657 = vmatpush1.msra.mxu1 %v5587_v8 }
 0x594   :  { %5658 = vmatprep.subr.mxu1 %v5586_v18 }
 0x595   :  { %5659 = vmatpush1.msra.mxu1 %v5585_v7 }
 0x596   :  { %5693 = vmatmul.mubr.f32.vlgmr.msra.gmra.mxu1 %v5626_v60 }
 0x610   :  { %v5343_v30 = vpop.f32.mrf.mxu0 }
 0x612   :  { %v5345_v24 = vpop.f32.mrf.mxu0 }
 0x616   :  { %v5261_v49 = vpop.f32.mrf.mxu1 }
 0x617   :  { %v5344_v14 = vadd.f32 %v5343_v30, %v5261_v49 }
 0x618   :  { %v5263_v55 = vpop.f32.mrf.mxu1 }
 0x619   :  { %v5346_v4 = vadd.f32 %v5345_v24, %v5263_v55 }
 0x630   :  { %v5572_v31 = vpop.f32.mrf.mxu0 }
 0x632   :  { %v5574_v11 = vpop.f32.mrf.mxu0 }
 0x636   :  { %v5447_v12 = vpop.f32.mrf.mxu1 }
 0x637   :  { %v5452_v19 = vadd.f32 %v5447_v12, %v5344_v14 }
 0x638   :  { %v5449_v10 = vpop.f32.mrf.mxu1 }
 0x639   :  { %v5453_v59 = vadd.f32 %v5449_v10, %v5346_v4  ;;  %v5577_v37 = vadd.f32 %v5572_v31, %v5452_v19 }
 0x63b   :  { %v5578_v36 = vadd.f32 %v5574_v11, %v5453_v59 }
 0x656   :  { %v5694_v38 = vpop.f32.mrf.mxu1 }
 0x657   :  { %v5699_v53 = vadd.f32 %v5694_v38, %v5577_v37 }
 0x658   :  { %v5696_v9 = vpop.f32.mrf.mxu1 }
 0x659   :  { %v5713_v63 = vadd.f32 %v5706_v51, %v5699_v53  ;;  %v5700_v43 = vadd.f32 %v5696_v9, %v5578_v36 }
 0x65b   :  { %v5714_v13 = vadd.f32 %v5710_v6, %v5700_v43  ;;  %v5715_v52 = vmax.f32 %v5713_v63, 0.0 }
 0x65d   :  { %v5716_v57 = vmax.f32 %v5714_v13, 0.0 }
 0x65f   :  { %v5719_v21 = vcombine.low %v5715_v52, %v5716_v57 }
 0x661   :  { %v5726_v33 = vrot.slane %v5719_v21, %v9359_v23 }
 0x663   :  { %v5727_v35 = vcombine.high %v5726_v33, %v5726_v33  ;;  %v5734_v56 = vrot.slane %v5726_v33, %v9359_v23 }
 0x665   :  { %v5735_v46 = vcombine.high %v5734_v56, %v5734_v56  ;;  %v5742_v3 = vrot.slane %v5727_v35, %v9359_v23  ;;  %v5749_v41 = vsel %vm5748_vm5, %v5734_v56, -inf }
 0x666   :  { %v5750_v50 = vrot.slane %v5749_v41, 4 }
 0x667   :  { %v5743_v16 = vcombine.high %v5742_v3, %v5742_v3  ;;  %v5756_v61 = vsel %vm5748_vm5, %v5735_v46, -inf  ;;  %v5763_v54 = vsel %vm5748_vm5, %v5742_v3, -inf }
 0x668   :  { %v5751_v39 = vmax.f32 %v5749_v41, %v5750_v50  ;;  %v5757_v40 = vrot.slane %v5756_v61, 4  ;;  %v5764_v22 = vrot.slane %v5763_v54, 4 }
 0x669   :  { %v5770_v45 = vsel %vm5748_vm5, %v5743_v16, -inf }
 0x66a   :  { %v5752_v5 = vrot.slane %v5751_v39, 2  ;;  %v5758_v48 = vmax.f32 %v5756_v61, %v5757_v40  ;;  %v5765_v47 = vmax.f32 %v5763_v54, %v5764_v22  ;;  %v5771_v34 = vrot.slane %v5770_v45, 4 }
 0x66c   :  { %v5753_v28 = vmax.f32 %v5751_v39, %v5752_v5  ;;  %v5759_v42 = vrot.slane %v5758_v48, 2  ;;  %v5766_v26 = vrot.slane %v5765_v47, 2  ;;  %v5772_v44 = vmax.f32 %v5770_v45, %v5771_v34 }
 0x66e   :  { %v5760_v32 = vmax.f32 %v5758_v48, %v5759_v42  ;;  %v5767_v20 = vmax.f32 %v5765_v47, %v5766_v26  ;;  %v5773_v0 = vrot.slane %v5772_v44, 2  ;;  %v5754_v1 = vrot.slane %v5753_v28, 1 }
 0x670   :  { %v5761_v27 = vrot.slane %v5760_v32, 1  ;;  %v5768_v25 = vrot.slane %v5767_v20, 1  ;;  %v5774_v15 = vmax.f32 %v5772_v44, %v5773_v0  ;;  %v5755_v8 = vmax.f32 %v5753_v28, %v5754_v1 }
 0x672   :  { %v5762_v58 = vmax.f32 %v5760_v32, %v5761_v27  ;;  %v5775_v17 = vrot.slane %v5774_v15, 1  ;;  %v5769_v18 = vmax.f32 %v5767_v20, %v5768_v25 }
 0x674   :  { %v5776_v7 = vmax.f32 %v5774_v15, %v5775_v17  ;;  %v5781_v60 = vcombine.low %v5755_v8, %v5762_v58 }
 0x676   :  { %v5789_v49 = vcombine.low %v5769_v18, %v5776_v7  ;;  %v5788_v30 = vrot.slane %v5781_v60, %v9359_v23 }
 0x678   :  { %v5796_v55 = vrot.slane %v5789_v49, %v9359_v23 }
 0x67a   :  { %v5799_v12 = vrot.slane %v5796_v55, 7 }
 0x67c   :  { %v5800_v14 = vsel %vm3472_vm12, %v5799_v12, %v5788_v30 }
 0x67d   :  { %v5801_v24 = vsel %vm3476_vm14, %v5799_v12, %v5800_v14 }
 0x67e   :  { %v5802_v10 = vsel %vm3480_vm0, %v5799_v12, %v5801_v24 }
 0x67f   :  { %v5803_v4 = vsel %vm3484_vm2, %v5799_v12, %v5802_v10 }
 0x680   :  { %5805 = vst [vmem:[%s9444_s11] sm:$0xf] %v5803_v4 }
 0x681   :  { %5810 = vsyncpa [#allocation3], 1 }
 0x682   :  { %5811 = vsyncpa [#allocation5], 1 }

</bundles_post_ra>
